<compile_context>
chip_gen: v5e
topology: v5e:2x2
jax: 0.10.0
libtpu: 0.0.40
codegen_flags: <defaults>
</compile_context>

<pallas_src>
import functools

import jax
import jax.numpy as jnp
from jax import lax
from jax.experimental import pallas as pl
from jax.experimental.pallas import tpu as pltpu


def _t2_kernel(x_ref, w1_ref, w2_ref, s1_ref, b1_ref, s2_ref, b2_ref,
               o_ref, pad_sc, *, H, W, C):
    """One batch element per grid step.

    x_ref  : (1, H, W, C)      NHWC input tile (unpadded)
    w1_ref : (9, C, C) bf16    conv1 weights, k = dy*3 + dx, [k][ci, co]
    w2_ref : (9, C, C) bf16    conv2 weights
    s*_ref : (1, C)   f32      folded BN scale
    b*_ref : (1, C)   f32      folded BN bias
    o_ref  : (1, H*W, C) f32   output tile (flattened spatial)
    pad_sc : (H+2, W+2, C) f32 persistent VMEM scratch holding the padded operand
    """
    # ---- re-zero only the 1-pixel halo of the padded scratch (interior is rewritten) ----
    zrow = jnp.zeros((1, W + 2, C), jnp.float32)
    pad_sc[0:1, :, :] = zrow
    pad_sc[H + 1:H + 2, :, :] = zrow
    zcol = jnp.zeros((H + 2, 1, C), jnp.float32)
    pad_sc[:, 0:1, :] = zcol
    pad_sc[:, W + 1:W + 2, :] = zcol

    # ---- place the input into the padded interior (in-kernel padding) ----
    pad_sc[1:H + 1, 1:W + 1, :] = x_ref[0]

    def conv3x3(w_ref):
        """3x3 conv (pad 1) over pad_sc as 9 shifted MXU matmuls, bf16 in / f32 acc."""
        acc = None
        for k in range(9):
            dy, dx = k // 3, k % 3
            patch = (pad_sc[dy:dy + H, dx:dx + W, :]
                     .reshape(H * W, C).astype(jnp.bfloat16))
            d = jnp.dot(patch, w_ref[k], preferred_element_type=jnp.float32)
            acc = d if acc is None else acc + d
        return acc  # (H*W, C) f32

    # ---- conv1 + folded BN1 + ReLU ----
    y1 = jnp.maximum(conv3x3(w1_ref) * s1_ref[...] + b1_ref[...], 0.0)

    # ---- write intermediate into padded scratch interior (halo still zero) ----
    pad_sc[1:H + 1, 1:W + 1, :] = y1.reshape(H, W, C)

    # ---- conv2 + folded BN2 (Identity activation) ----
    y2 = conv3x3(w2_ref) * s2_ref[...] + b2_ref[...]

    # ---- residual add (re-load x from VMEM ref: short live range) ----
    x_in = x_ref[0].reshape(H * W, C)
    o_ref[0] = x_in + y2


def t2_forward(x_nchw, w1_oihw, w2_oihw, s1, b1, s2, b2):
    """T2 forward. x_nchw: (N, C, H, W) float32. Returns (N, C, H, W) float32."""
    N, C, H, W = x_nchw.shape

    # Glue: NCHW -> NHWC (module boundary stays NCHW to match PyTorch).
    x_nhwc = jnp.transpose(x_nchw, (0, 2, 3, 1)).astype(jnp.float32)

    # Glue: OIHW -> (9, Cin, Cout) bf16, k = dy*3 + dx.
    def prep_w(w):
        return (jnp.transpose(w, (2, 3, 1, 0))
                .reshape(9, C, C).astype(jnp.bfloat16))

    w1 = prep_w(w1_oihw)
    w2 = prep_w(w2_oihw)
    s1r = s1.reshape(1, C).astype(jnp.float32)
    b1r = b1.reshape(1, C).astype(jnp.float32)
    s2r = s2.reshape(1, C).astype(jnp.float32)
    b2r = b2.reshape(1, C).astype(jnp.float32)

    kernel = functools.partial(_t2_kernel, H=H, W=W, C=C)

    out_flat = pl.pallas_call(
        kernel,
        out_shape=jax.ShapeDtypeStruct((N, H * W, C), jnp.float32),
        grid_spec=pltpu.PrefetchScalarGridSpec(
            num_scalar_prefetch=0,
            grid=(N,),
            in_specs=[
                pl.BlockSpec((1, H, W, C), lambda n: (n, 0, 0, 0)),
                pl.BlockSpec((9, C, C), lambda n: (0, 0, 0)),
                pl.BlockSpec((9, C, C), lambda n: (0, 0, 0)),
                pl.BlockSpec((1, C), lambda n: (0, 0)),
                pl.BlockSpec((1, C), lambda n: (0, 0)),
                pl.BlockSpec((1, C), lambda n: (0, 0)),
                pl.BlockSpec((1, C), lambda n: (0, 0)),
            ],
            out_specs=pl.BlockSpec((1, H * W, C), lambda n: (n, 0, 0)),
            scratch_shapes=[pltpu.VMEM((H + 2, W + 2, C), jnp.float32)],
        ),
        compiler_params=pltpu.CompilerParams(
            dimension_semantics=("parallel",)),
    )(x_nhwc, w1, w2, s1r, b1r, s2r, b2r)

    # Glue: flat NHWC -> NCHW to match PyTorch convention (reshape is metadata-only).
    out_nhwc = out_flat.reshape(N, H, W, C)
    return jnp.transpose(out_nhwc, (0, 3, 1, 2))


def t2_reference(x_nchw, w1, w2, s1, b1, s2, b2):
    """Pure-JAX f32 reference (lax.conv) matching PyTorch T2 eval-mode forward."""
    dn = ("NCHW", "OIHW", "NCHW")
    y = lax.conv_general_dilated(x_nchw, w1, (1, 1), "SAME", dimension_numbers=dn)
    y = y * s1[None, :, None, None] + b1[None, :, None, None]
    y = jnp.maximum(y, 0.0)
    y = lax.conv_general_dilated(y, w2, (1, 1), "SAME", dimension_numbers=dn)
    y = y * s2[None, :, None, None] + b2[None, :, None, None]
    return x_nchw + y


if __name__ == "__main__":
    # Small shapes: batch=2, channels=4 (T2 requires idim == odim for the residual), 16x16 spatial.
    N, C, H, W = 2, 4, 16, 16
    key = jax.random.PRNGKey(0)
    ks = jax.random.split(key, 9)

    x = jax.random.normal(ks[0], (N, C, H, W), dtype=jnp.float32)

    # Deterministic parameter init (synthetic; shapes match nn.Conv2d(C, C, 3) / nn.BatchNorm2d(C)).
    w1_oihw = jax.random.normal(ks[1], (C, C, 3, 3), dtype=jnp.float32) * 0.1
    w2_oihw = jax.random.normal(ks[2], (C, C, 3, 3), dtype=jnp.float32) * 0.1

    eps = 1e-5
    gamma1 = 1.0 + 0.1 * jax.random.normal(ks[3], (C,), dtype=jnp.float32)
    beta1 = 0.1 * jax.random.normal(ks[4], (C,), dtype=jnp.float32)
    mean1 = 0.1 * jax.random.normal(ks[5], (C,), dtype=jnp.float32)
    var1 = jnp.abs(1.0 + 0.1 * jax.random.normal(ks[6], (C,), dtype=jnp.float32))
    gamma2 = 1.0 + 0.1 * jax.random.normal(ks[7], (C,), dtype=jnp.float32)
    beta2 = 0.1 * jax.random.normal(ks[8], (C,), dtype=jnp.float32)
    mean2 = jnp.zeros((C,), jnp.float32)
    var2 = jnp.ones((C,), jnp.float32)

    # Fold inference-mode BatchNorm into per-channel scale/bias.
    s1 = gamma1 / jnp.sqrt(var1 + eps)
    b1 = beta1 - mean1 * s1
    s2 = gamma2 / jnp.sqrt(var2 + eps)
    b2 = beta2 - mean2 * s2

    out = t2_forward(x, w1_oihw, w2_oihw, s1, b1, s2, b2)
    out = jax.block_until_ready(out)

    ref = jax.block_until_ready(t2_reference(x, w1_oihw, w2_oihw, s1, b1, s2, b2))
    assert out.shape == (N, C, H, W)
    # Tolerance loosened vs. the f32 reference because matmul inputs are cast to bf16
    # (MXU-native); accumulation and BN/residual math remain f32.
    assert jnp.allclose(out, ref, atol=3e-2, rtol=3e-2), (
        float(jnp.max(jnp.abs(out - ref))))

    print("KERNEL_OK")
</pallas_src>

<mosaic_0001>
module attributes {stable_mosaic.version = 11 : i64} {
  func.func @_t2_kernel(%arg0: i32, %arg1: memref<1x16x16x4xf32, #tpu.memory_space<vmem>>, %arg2: memref<9x4x4xbf16, #tpu.memory_space<vmem>>, %arg3: memref<9x4x4xbf16, #tpu.memory_space<vmem>>, %arg4: memref<1x4xf32, #tpu.memory_space<vmem>>, %arg5: memref<1x4xf32, #tpu.memory_space<vmem>>, %arg6: memref<1x4xf32, #tpu.memory_space<vmem>>, %arg7: memref<1x4xf32, #tpu.memory_space<vmem>>, %arg8: memref<1x256x4xf32, #tpu.memory_space<vmem>>, %arg9: memref<18x18x4xf32, #tpu.memory_space<vmem>>) attributes {dimension_semantics = [#tpu.dimension_semantics<parallel>], iteration_bounds = array<i64: 2>, scalar_prefetch = 0 : i64, scratch_operands = 1 : i64, tpu.core_type = #tpu.core_type<tc>, window_params = [{transform_indices = @transform_0, window_bounds = array<i64: 1, 16, 16, 4>}, {pipeline_mode = #tpu.pipeline_mode<synchronous>, transform_indices = @transform_1, window_bounds = array<i64: 9, 4, 4>}, {pipeline_mode = #tpu.pipeline_mode<synchronous>, transform_indices = @transform_2, window_bounds = array<i64: 9, 4, 4>}, {pipeline_mode = #tpu.pipeline_mode<synchronous>, transform_indices = @transform_3, window_bounds = array<i64: 1, 4>}, {pipeline_mode = #tpu.pipeline_mode<synchronous>, transform_indices = @transform_4, window_bounds = array<i64: 1, 4>}, {pipeline_mode = #tpu.pipeline_mode<synchronous>, transform_indices = @transform_5, window_bounds = array<i64: 1, 4>}, {pipeline_mode = #tpu.pipeline_mode<synchronous>, transform_indices = @transform_6, window_bounds = array<i64: 1, 4>}, {transform_indices = @transform_7, window_bounds = array<i64: 1, 256, 4>}]} {
    %cst = arith.constant 0.000000e+00 : f32
    %0 = vector.broadcast %cst : f32 to vector<1x18x4xf32>
    %c0 = arith.constant 0 : index
    %c0_0 = arith.constant 0 : index
    %c0_1 = arith.constant 0 : index
    %1 = vector.load %arg9[%c0, %c0_0, %c0_1] : memref<18x18x4xf32, #tpu.memory_space<vmem>>, vector<1x18x4xf32>
    tpu.vector_store %arg9[%c0, %c0_0, %c0_1], %0 {strides = array<i32>} : memref<18x18x4xf32, #tpu.memory_space<vmem>>, vector<1x18x4xf32>,
    %c17 = arith.constant 17 : index
    %c0_2 = arith.constant 0 : index
    %c0_3 = arith.constant 0 : index
    %2 = vector.load %arg9[%c17, %c0_2, %c0_3] : memref<18x18x4xf32, #tpu.memory_space<vmem>>, vector<1x18x4xf32>
    tpu.vector_store %arg9[%c17, %c0_2, %c0_3], %0 {strides = array<i32>} : memref<18x18x4xf32, #tpu.memory_space<vmem>>, vector<1x18x4xf32>,
    %cst_4 = arith.constant 0.000000e+00 : f32
    %3 = vector.broadcast %cst_4 : f32 to vector<18x1x4xf32>
    %c0_5 = arith.constant 0 : index
    %c0_6 = arith.constant 0 : index
    %c0_7 = arith.constant 0 : index
    %4 = vector.load %arg9[%c0_5, %c0_6, %c0_7] : memref<18x18x4xf32, #tpu.memory_space<vmem>>, vector<18x1x4xf32>
    tpu.vector_store %arg9[%c0_5, %c0_6, %c0_7], %3 {strides = array<i32>} : memref<18x18x4xf32, #tpu.memory_space<vmem>>, vector<18x1x4xf32>,
    %c0_8 = arith.constant 0 : index
    %c17_9 = arith.constant 17 : index
    %c0_10 = arith.constant 0 : index
    %5 = vector.load %arg9[%c0_8, %c17_9, %c0_10] : memref<18x18x4xf32, #tpu.memory_space<vmem>>, vector<18x1x4xf32>
    tpu.vector_store %arg9[%c0_8, %c17_9, %c0_10], %3 {strides = array<i32>} : memref<18x18x4xf32, #tpu.memory_space<vmem>>, vector<18x1x4xf32>,
    %c0_11 = arith.constant 0 : index
    %c0_12 = arith.constant 0 : index
    %c0_13 = arith.constant 0 : index
    %c0_14 = arith.constant 0 : index
    %6 = vector.load %arg1[%c0_11, %c0_12, %c0_13, %c0_14] : memref<1x16x16x4xf32, #tpu.memory_space<vmem>>, vector<1x16x16x4xf32>
    %7 = vector.shape_cast %6 : vector<1x16x16x4xf32> to vector<16x16x4xf32>
    %c1 = arith.constant 1 : index
    %c1_15 = arith.constant 1 : index
    %c0_16 = arith.constant 0 : index
    %8 = vector.load %arg9[%c1, %c1_15, %c0_16] : memref<18x18x4xf32, #tpu.memory_space<vmem>>, vector<16x16x4xf32>
    tpu.vector_store %arg9[%c1, %c1_15, %c0_16], %7 {strides = array<i32>} : memref<18x18x4xf32, #tpu.memory_space<vmem>>, vector<16x16x4xf32>,
    %c0_17 = arith.constant 0 : index
    %c0_18 = arith.constant 0 : index
    %c0_19 = arith.constant 0 : index
    %9 = vector.load %arg9[%c0_17, %c0_18, %c0_19] : memref<18x18x4xf32, #tpu.memory_space<vmem>>, vector<16x16x4xf32>
    %10 = vector.shape_cast %9 : vector<16x16x4xf32> to vector<256x4xf32>
    %11 = arith.truncf %10 : vector<256x4xf32> to vector<256x4xbf16>
    %c0_20 = arith.constant 0 : index
    %c0_21 = arith.constant 0 : index
    %c0_22 = arith.constant 0 : index
    %12 = vector.load %arg2[%c0_20, %c0_21, %c0_22] : memref<9x4x4xbf16, #tpu.memory_space<vmem>>, vector<1x4x4xbf16>
    %13 = vector.shape_cast %12 : vector<1x4x4xbf16> to vector<4x4xbf16>
    %cst_23 = arith.constant dense<0.000000e+00> : vector<256x4xf32>
    %14 = tpu.matmul %11, %13, %cst_23 {dimension_numbers = #tpu.dot_dimension_numbers<[1], [0], [0], [1], [0, 0, 1, 1], [], []>} : vector<256x4xbf16>, vector<4x4xbf16>, vector<256x4xf32> -> vector<256x4xf32>
    %c0_24 = arith.constant 0 : index
    %c1_25 = arith.constant 1 : index
    %c0_26 = arith.constant 0 : index
    %15 = vector.load %arg9[%c0_24, %c1_25, %c0_26] : memref<18x18x4xf32, #tpu.memory_space<vmem>>, vector<16x16x4xf32>
    %16 = vector.shape_cast %15 : vector<16x16x4xf32> to vector<256x4xf32>
    %17 = arith.truncf %16 : vector<256x4xf32> to vector<256x4xbf16>
    %c1_27 = arith.constant 1 : index
    %c0_28 = arith.constant 0 : index
    %c0_29 = arith.constant 0 : index
    %18 = vector.load %arg2[%c1_27, %c0_28, %c0_29] : memref<9x4x4xbf16, #tpu.memory_space<vmem>>, vector<1x4x4xbf16>
    %19 = vector.shape_cast %18 : vector<1x4x4xbf16> to vector<4x4xbf16>
    %cst_30 = arith.constant dense<0.000000e+00> : vector<256x4xf32>
    %20 = tpu.matmul %17, %19, %cst_30 {dimension_numbers = #tpu.dot_dimension_numbers<[1], [0], [0], [1], [0, 0, 1, 1], [], []>} : vector<256x4xbf16>, vector<4x4xbf16>, vector<256x4xf32> -> vector<256x4xf32>
    %21 = arith.addf %14, %20 : vector<256x4xf32>
    %c0_31 = arith.constant 0 : index
    %c2 = arith.constant 2 : index
    %c0_32 = arith.constant 0 : index
    %22 = vector.load %arg9[%c0_31, %c2, %c0_32] : memref<18x18x4xf32, #tpu.memory_space<vmem>>, vector<16x16x4xf32>
    %23 = vector.shape_cast %22 : vector<16x16x4xf32> to vector<256x4xf32>
    %24 = arith.truncf %23 : vector<256x4xf32> to vector<256x4xbf16>
    %c2_33 = arith.constant 2 : index
    %c0_34 = arith.constant 0 : index
    %c0_35 = arith.constant 0 : index
    %25 = vector.load %arg2[%c2_33, %c0_34, %c0_35] : memref<9x4x4xbf16, #tpu.memory_space<vmem>>, vector<1x4x4xbf16>
    %26 = vector.shape_cast %25 : vector<1x4x4xbf16> to vector<4x4xbf16>
    %cst_36 = arith.constant dense<0.000000e+00> : vector<256x4xf32>
    %27 = tpu.matmul %24, %26, %cst_36 {dimension_numbers = #tpu.dot_dimension_numbers<[1], [0], [0], [1], [0, 0, 1, 1], [], []>} : vector<256x4xbf16>, vector<4x4xbf16>, vector<256x4xf32> -> vector<256x4xf32>
    %28 = arith.addf %21, %27 : vector<256x4xf32>
    %c1_37 = arith.constant 1 : index
    %c0_38 = arith.constant 0 : index
    %c0_39 = arith.constant 0 : index
    %29 = vector.load %arg9[%c1_37, %c0_38, %c0_39] : memref<18x18x4xf32, #tpu.memory_space<vmem>>, vector<16x16x4xf32>
    %30 = vector.shape_cast %29 : vector<16x16x4xf32> to vector<256x4xf32>
    %31 = arith.truncf %30 : vector<256x4xf32> to vector<256x4xbf16>
    %c3 = arith.constant 3 : index
    %c0_40 = arith.constant 0 : index
    %c0_41 = arith.constant 0 : index
    %32 = vector.load %arg2[%c3, %c0_40, %c0_41] : memref<9x4x4xbf16, #tpu.memory_space<vmem>>, vector<1x4x4xbf16>
    %33 = vector.shape_cast %32 : vector<1x4x4xbf16> to vector<4x4xbf16>
    %cst_42 = arith.constant dense<0.000000e+00> : vector<256x4xf32>
    %34 = tpu.matmul %31, %33, %cst_42 {dimension_numbers = #tpu.dot_dimension_numbers<[1], [0], [0], [1], [0, 0, 1, 1], [], []>} : vector<256x4xbf16>, vector<4x4xbf16>, vector<256x4xf32> -> vector<256x4xf32>
    %35 = arith.addf %28, %34 : vector<256x4xf32>
    %c1_43 = arith.constant 1 : index
    %c1_44 = arith.constant 1 : index
    %c0_45 = arith.constant 0 : index
    %36 = vector.load %arg9[%c1_43, %c1_44, %c0_45] : memref<18x18x4xf32, #tpu.memory_space<vmem>>, vector<16x16x4xf32>
    %37 = vector.shape_cast %36 : vector<16x16x4xf32> to vector<256x4xf32>
    %38 = arith.truncf %37 : vector<256x4xf32> to vector<256x4xbf16>
    %c4 = arith.constant 4 : index
    %c0_46 = arith.constant 0 : index
    %c0_47 = arith.constant 0 : index
    %39 = vector.load %arg2[%c4, %c0_46, %c0_47] : memref<9x4x4xbf16, #tpu.memory_space<vmem>>, vector<1x4x4xbf16>
    %40 = vector.shape_cast %39 : vector<1x4x4xbf16> to vector<4x4xbf16>
    %cst_48 = arith.constant dense<0.000000e+00> : vector<256x4xf32>
    %41 = tpu.matmul %38, %40, %cst_48 {dimension_numbers = #tpu.dot_dimension_numbers<[1], [0], [0], [1], [0, 0, 1, 1], [], []>} : vector<256x4xbf16>, vector<4x4xbf16>, vector<256x4xf32> -> vector<256x4xf32>
    %42 = arith.addf %35, %41 : vector<256x4xf32>
    %c1_49 = arith.constant 1 : index
    %c2_50 = arith.constant 2 : index
    %c0_51 = arith.constant 0 : index
    %43 = vector.load %arg9[%c1_49, %c2_50, %c0_51] : memref<18x18x4xf32, #tpu.memory_space<vmem>>, vector<16x16x4xf32>
    %44 = vector.shape_cast %43 : vector<16x16x4xf32> to vector<256x4xf32>
    %45 = arith.truncf %44 : vector<256x4xf32> to vector<256x4xbf16>
    %c5 = arith.constant 5 : index
    %c0_52 = arith.constant 0 : index
    %c0_53 = arith.constant 0 : index
    %46 = vector.load %arg2[%c5, %c0_52, %c0_53] : memref<9x4x4xbf16, #tpu.memory_space<vmem>>, vector<1x4x4xbf16>
    %47 = vector.shape_cast %46 : vector<1x4x4xbf16> to vector<4x4xbf16>
    %cst_54 = arith.constant dense<0.000000e+00> : vector<256x4xf32>
    %48 = tpu.matmul %45, %47, %cst_54 {dimension_numbers = #tpu.dot_dimension_numbers<[1], [0], [0], [1], [0, 0, 1, 1], [], []>} : vector<256x4xbf16>, vector<4x4xbf16>, vector<256x4xf32> -> vector<256x4xf32>
    %49 = arith.addf %42, %48 : vector<256x4xf32>
    %c2_55 = arith.constant 2 : index
    %c0_56 = arith.constant 0 : index
    %c0_57 = arith.constant 0 : index
    %50 = vector.load %arg9[%c2_55, %c0_56, %c0_57] : memref<18x18x4xf32, #tpu.memory_space<vmem>>, vector<16x16x4xf32>
    %51 = vector.shape_cast %50 : vector<16x16x4xf32> to vector<256x4xf32>
    %52 = arith.truncf %51 : vector<256x4xf32> to vector<256x4xbf16>
    %c6 = arith.constant 6 : index
    %c0_58 = arith.constant 0 : index
    %c0_59 = arith.constant 0 : index
    %53 = vector.load %arg2[%c6, %c0_58, %c0_59] : memref<9x4x4xbf16, #tpu.memory_space<vmem>>, vector<1x4x4xbf16>
    %54 = vector.shape_cast %53 : vector<1x4x4xbf16> to vector<4x4xbf16>
    %cst_60 = arith.constant dense<0.000000e+00> : vector<256x4xf32>
    %55 = tpu.matmul %52, %54, %cst_60 {dimension_numbers = #tpu.dot_dimension_numbers<[1], [0], [0], [1], [0, 0, 1, 1], [], []>} : vector<256x4xbf16>, vector<4x4xbf16>, vector<256x4xf32> -> vector<256x4xf32>
    %56 = arith.addf %49, %55 : vector<256x4xf32>
    %c2_61 = arith.constant 2 : index
    %c1_62 = arith.constant 1 : index
    %c0_63 = arith.constant 0 : index
    %57 = vector.load %arg9[%c2_61, %c1_62, %c0_63] : memref<18x18x4xf32, #tpu.memory_space<vmem>>, vector<16x16x4xf32>
    %58 = vector.shape_cast %57 : vector<16x16x4xf32> to vector<256x4xf32>
    %59 = arith.truncf %58 : vector<256x4xf32> to vector<256x4xbf16>
    %c7 = arith.constant 7 : index
    %c0_64 = arith.constant 0 : index
    %c0_65 = arith.constant 0 : index
    %60 = vector.load %arg2[%c7, %c0_64, %c0_65] : memref<9x4x4xbf16, #tpu.memory_space<vmem>>, vector<1x4x4xbf16>
    %61 = vector.shape_cast %60 : vector<1x4x4xbf16> to vector<4x4xbf16>
    %cst_66 = arith.constant dense<0.000000e+00> : vector<256x4xf32>
    %62 = tpu.matmul %59, %61, %cst_66 {dimension_numbers = #tpu.dot_dimension_numbers<[1], [0], [0], [1], [0, 0, 1, 1], [], []>} : vector<256x4xbf16>, vector<4x4xbf16>, vector<256x4xf32> -> vector<256x4xf32>
    %63 = arith.addf %56, %62 : vector<256x4xf32>
    %c2_67 = arith.constant 2 : index
    %c2_68 = arith.constant 2 : index
    %c0_69 = arith.constant 0 : index
    %64 = vector.load %arg9[%c2_67, %c2_68, %c0_69] : memref<18x18x4xf32, #tpu.memory_space<vmem>>, vector<16x16x4xf32>
    %65 = vector.shape_cast %64 : vector<16x16x4xf32> to vector<256x4xf32>
    %66 = arith.truncf %65 : vector<256x4xf32> to vector<256x4xbf16>
    %c8 = arith.constant 8 : index
    %c0_70 = arith.constant 0 : index
    %c0_71 = arith.constant 0 : index
    %67 = vector.load %arg2[%c8, %c0_70, %c0_71] : memref<9x4x4xbf16, #tpu.memory_space<vmem>>, vector<1x4x4xbf16>
    %68 = vector.shape_cast %67 : vector<1x4x4xbf16> to vector<4x4xbf16>
    %cst_72 = arith.constant dense<0.000000e+00> : vector<256x4xf32>
    %69 = tpu.matmul %66, %68, %cst_72 {dimension_numbers = #tpu.dot_dimension_numbers<[1], [0], [0], [1], [0, 0, 1, 1], [], []>} : vector<256x4xbf16>, vector<4x4xbf16>, vector<256x4xf32> -> vector<256x4xf32>
    %70 = arith.addf %63, %69 : vector<256x4xf32>
    %c0_73 = arith.constant 0 : index
    %c0_74 = arith.constant 0 : index
    %71 = vector.load %arg4[%c0_73, %c0_74] : memref<1x4xf32, #tpu.memory_space<vmem>>, vector<1x4xf32>
    %72 = vector.broadcast %71 : vector<1x4xf32> to vector<256x4xf32>
    %73 = arith.mulf %70, %72 : vector<256x4xf32>
    %c0_75 = arith.constant 0 : index
    %c0_76 = arith.constant 0 : index
    %74 = vector.load %arg5[%c0_75, %c0_76] : memref<1x4xf32, #tpu.memory_space<vmem>>, vector<1x4xf32>
    %75 = vector.broadcast %74 : vector<1x4xf32> to vector<256x4xf32>
    %76 = arith.addf %73, %75 : vector<256x4xf32>
    %cst_77 = arith.constant 0.000000e+00 : f32
    %77 = vector.broadcast %cst_77 : f32 to vector<256x4xf32>
    %78 = arith.maximumf %76, %77 : vector<256x4xf32>
    %79 = vector.shape_cast %78 : vector<256x4xf32> to vector<16x16x4xf32>
    %c1_78 = arith.constant 1 : index
    %c1_79 = arith.constant 1 : index
    %c0_80 = arith.constant 0 : index
    %80 = vector.load %arg9[%c1_78, %c1_79, %c0_80] : memref<18x18x4xf32, #tpu.memory_space<vmem>>, vector<16x16x4xf32>
    tpu.vector_store %arg9[%c1_78, %c1_79, %c0_80], %79 {strides = array<i32>} : memref<18x18x4xf32, #tpu.memory_space<vmem>>, vector<16x16x4xf32>,
    %c0_81 = arith.constant 0 : index
    %c0_82 = arith.constant 0 : index
    %c0_83 = arith.constant 0 : index
    %81 = vector.load %arg9[%c0_81, %c0_82, %c0_83] : memref<18x18x4xf32, #tpu.memory_space<vmem>>, vector<16x16x4xf32>
    %82 = vector.shape_cast %81 : vector<16x16x4xf32> to vector<256x4xf32>
    %83 = arith.truncf %82 : vector<256x4xf32> to vector<256x4xbf16>
    %c0_84 = arith.constant 0 : index
    %c0_85 = arith.constant 0 : index
    %c0_86 = arith.constant 0 : index
    %84 = vector.load %arg3[%c0_84, %c0_85, %c0_86] : memref<9x4x4xbf16, #tpu.memory_space<vmem>>, vector<1x4x4xbf16>
    %85 = vector.shape_cast %84 : vector<1x4x4xbf16> to vector<4x4xbf16>
    %cst_87 = arith.constant dense<0.000000e+00> : vector<256x4xf32>
    %86 = tpu.matmul %83, %85, %cst_87 {dimension_numbers = #tpu.dot_dimension_numbers<[1], [0], [0], [1], [0, 0, 1, 1], [], []>} : vector<256x4xbf16>, vector<4x4xbf16>, vector<256x4xf32> -> vector<256x4xf32>
    %c0_88 = arith.constant 0 : index
    %c1_89 = arith.constant 1 : index
    %c0_90 = arith.constant 0 : index
    %87 = vector.load %arg9[%c0_88, %c1_89, %c0_90] : memref<18x18x4xf32, #tpu.memory_space<vmem>>, vector<16x16x4xf32>
    %88 = vector.shape_cast %87 : vector<16x16x4xf32> to vector<256x4xf32>
    %89 = arith.truncf %88 : vector<256x4xf32> to vector<256x4xbf16>
    %c1_91 = arith.constant 1 : index
    %c0_92 = arith.constant 0 : index
    %c0_93 = arith.constant 0 : index
    %90 = vector.load %arg3[%c1_91, %c0_92, %c0_93] : memref<9x4x4xbf16, #tpu.memory_space<vmem>>, vector<1x4x4xbf16>
    %91 = vector.shape_cast %90 : vector<1x4x4xbf16> to vector<4x4xbf16>
    %cst_94 = arith.constant dense<0.000000e+00> : vector<256x4xf32>
    %92 = tpu.matmul %89, %91, %cst_94 {dimension_numbers = #tpu.dot_dimension_numbers<[1], [0], [0], [1], [0, 0, 1, 1], [], []>} : vector<256x4xbf16>, vector<4x4xbf16>, vector<256x4xf32> -> vector<256x4xf32>
    %93 = arith.addf %86, %92 : vector<256x4xf32>
    %c0_95 = arith.constant 0 : index
    %c2_96 = arith.constant 2 : index
    %c0_97 = arith.constant 0 : index
    %94 = vector.load %arg9[%c0_95, %c2_96, %c0_97] : memref<18x18x4xf32, #tpu.memory_space<vmem>>, vector<16x16x4xf32>
    %95 = vector.shape_cast %94 : vector<16x16x4xf32> to vector<256x4xf32>
    %96 = arith.truncf %95 : vector<256x4xf32> to vector<256x4xbf16>
    %c2_98 = arith.constant 2 : index
    %c0_99 = arith.constant 0 : index
    %c0_100 = arith.constant 0 : index
    %97 = vector.load %arg3[%c2_98, %c0_99, %c0_100] : memref<9x4x4xbf16, #tpu.memory_space<vmem>>, vector<1x4x4xbf16>
    %98 = vector.shape_cast %97 : vector<1x4x4xbf16> to vector<4x4xbf16>
    %cst_101 = arith.constant dense<0.000000e+00> : vector<256x4xf32>
    %99 = tpu.matmul %96, %98, %cst_101 {dimension_numbers = #tpu.dot_dimension_numbers<[1], [0], [0], [1], [0, 0, 1, 1], [], []>} : vector<256x4xbf16>, vector<4x4xbf16>, vector<256x4xf32> -> vector<256x4xf32>
    %100 = arith.addf %93, %99 : vector<256x4xf32>
    %c1_102 = arith.constant 1 : index
    %c0_103 = arith.constant 0 : index
    %c0_104 = arith.constant 0 : index
    %101 = vector.load %arg9[%c1_102, %c0_103, %c0_104] : memref<18x18x4xf32, #tpu.memory_space<vmem>>, vector<16x16x4xf32>
    %102 = vector.shape_cast %101 : vector<16x16x4xf32> to vector<256x4xf32>
    %103 = arith.truncf %102 : vector<256x4xf32> to vector<256x4xbf16>
    %c3_105 = arith.constant 3 : index
    %c0_106 = arith.constant 0 : index
    %c0_107 = arith.constant 0 : index
    %104 = vector.load %arg3[%c3_105, %c0_106, %c0_107] : memref<9x4x4xbf16, #tpu.memory_space<vmem>>, vector<1x4x4xbf16>
    %105 = vector.shape_cast %104 : vector<1x4x4xbf16> to vector<4x4xbf16>
    %cst_108 = arith.constant dense<0.000000e+00> : vector<256x4xf32>
    %106 = tpu.matmul %103, %105, %cst_108 {dimension_numbers = #tpu.dot_dimension_numbers<[1], [0], [0], [1], [0, 0, 1, 1], [], []>} : vector<256x4xbf16>, vector<4x4xbf16>, vector<256x4xf32> -> vector<256x4xf32>
    %107 = arith.addf %100, %106 : vector<256x4xf32>
    %c1_109 = arith.constant 1 : index
    %c1_110 = arith.constant 1 : index
    %c0_111 = arith.constant 0 : index
    %108 = vector.load %arg9[%c1_109, %c1_110, %c0_111] : memref<18x18x4xf32, #tpu.memory_space<vmem>>, vector<16x16x4xf32>
    %109 = vector.shape_cast %108 : vector<16x16x4xf32> to vector<256x4xf32>
    %110 = arith.truncf %109 : vector<256x4xf32> to vector<256x4xbf16>
    %c4_112 = arith.constant 4 : index
    %c0_113 = arith.constant 0 : index
    %c0_114 = arith.constant 0 : index
    %111 = vector.load %arg3[%c4_112, %c0_113, %c0_114] : memref<9x4x4xbf16, #tpu.memory_space<vmem>>, vector<1x4x4xbf16>
    %112 = vector.shape_cast %111 : vector<1x4x4xbf16> to vector<4x4xbf16>
    %cst_115 = arith.constant dense<0.000000e+00> : vector<256x4xf32>
    %113 = tpu.matmul %110, %112, %cst_115 {dimension_numbers = #tpu.dot_dimension_numbers<[1], [0], [0], [1], [0, 0, 1, 1], [], []>} : vector<256x4xbf16>, vector<4x4xbf16>, vector<256x4xf32> -> vector<256x4xf32>
    %114 = arith.addf %107, %113 : vector<256x4xf32>
    %c1_116 = arith.constant 1 : index
    %c2_117 = arith.constant 2 : index
    %c0_118 = arith.constant 0 : index
    %115 = vector.load %arg9[%c1_116, %c2_117, %c0_118] : memref<18x18x4xf32, #tpu.memory_space<vmem>>, vector<16x16x4xf32>
    %116 = vector.shape_cast %115 : vector<16x16x4xf32> to vector<256x4xf32>
    %117 = arith.truncf %116 : vector<256x4xf32> to vector<256x4xbf16>
    %c5_119 = arith.constant 5 : index
    %c0_120 = arith.constant 0 : index
    %c0_121 = arith.constant 0 : index
    %118 = vector.load %arg3[%c5_119, %c0_120, %c0_121] : memref<9x4x4xbf16, #tpu.memory_space<vmem>>, vector<1x4x4xbf16>
    %119 = vector.shape_cast %118 : vector<1x4x4xbf16> to vector<4x4xbf16>
    %cst_122 = arith.constant dense<0.000000e+00> : vector<256x4xf32>
    %120 = tpu.matmul %117, %119, %cst_122 {dimension_numbers = #tpu.dot_dimension_numbers<[1], [0], [0], [1], [0, 0, 1, 1], [], []>} : vector<256x4xbf16>, vector<4x4xbf16>, vector<256x4xf32> -> vector<256x4xf32>
    %121 = arith.addf %114, %120 : vector<256x4xf32>
    %c2_123 = arith.constant 2 : index
    %c0_124 = arith.constant 0 : index
    %c0_125 = arith.constant 0 : index
    %122 = vector.load %arg9[%c2_123, %c0_124, %c0_125] : memref<18x18x4xf32, #tpu.memory_space<vmem>>, vector<16x16x4xf32>
    %123 = vector.shape_cast %122 : vector<16x16x4xf32> to vector<256x4xf32>
    %124 = arith.truncf %123 : vector<256x4xf32> to vector<256x4xbf16>
    %c6_126 = arith.constant 6 : index
    %c0_127 = arith.constant 0 : index
    %c0_128 = arith.constant 0 : index
    %125 = vector.load %arg3[%c6_126, %c0_127, %c0_128] : memref<9x4x4xbf16, #tpu.memory_space<vmem>>, vector<1x4x4xbf16>
    %126 = vector.shape_cast %125 : vector<1x4x4xbf16> to vector<4x4xbf16>
    %cst_129 = arith.constant dense<0.000000e+00> : vector<256x4xf32>
    %127 = tpu.matmul %124, %126, %cst_129 {dimension_numbers = #tpu.dot_dimension_numbers<[1], [0], [0], [1], [0, 0, 1, 1], [], []>} : vector<256x4xbf16>, vector<4x4xbf16>, vector<256x4xf32> -> vector<256x4xf32>
    %128 = arith.addf %121, %127 : vector<256x4xf32>
    %c2_130 = arith.constant 2 : index
    %c1_131 = arith.constant 1 : index
    %c0_132 = arith.constant 0 : index
    %129 = vector.load %arg9[%c2_130, %c1_131, %c0_132] : memref<18x18x4xf32, #tpu.memory_space<vmem>>, vector<16x16x4xf32>
    %130 = vector.shape_cast %129 : vector<16x16x4xf32> to vector<256x4xf32>
    %131 = arith.truncf %130 : vector<256x4xf32> to vector<256x4xbf16>
    %c7_133 = arith.constant 7 : index
    %c0_134 = arith.constant 0 : index
    %c0_135 = arith.constant 0 : index
    %132 = vector.load %arg3[%c7_133, %c0_134, %c0_135] : memref<9x4x4xbf16, #tpu.memory_space<vmem>>, vector<1x4x4xbf16>
    %133 = vector.shape_cast %132 : vector<1x4x4xbf16> to vector<4x4xbf16>
    %cst_136 = arith.constant dense<0.000000e+00> : vector<256x4xf32>
    %134 = tpu.matmul %131, %133, %cst_136 {dimension_numbers = #tpu.dot_dimension_numbers<[1], [0], [0], [1], [0, 0, 1, 1], [], []>} : vector<256x4xbf16>, vector<4x4xbf16>, vector<256x4xf32> -> vector<256x4xf32>
    %135 = arith.addf %128, %134 : vector<256x4xf32>
    %c2_137 = arith.constant 2 : index
    %c2_138 = arith.constant 2 : index
    %c0_139 = arith.constant 0 : index
    %136 = vector.load %arg9[%c2_137, %c2_138, %c0_139] : memref<18x18x4xf32, #tpu.memory_space<vmem>>, vector<16x16x4xf32>
    %137 = vector.shape_cast %136 : vector<16x16x4xf32> to vector<256x4xf32>
    %138 = arith.truncf %137 : vector<256x4xf32> to vector<256x4xbf16>
    %c8_140 = arith.constant 8 : index
    %c0_141 = arith.constant 0 : index
    %c0_142 = arith.constant 0 : index
    %139 = vector.load %arg3[%c8_140, %c0_141, %c0_142] : memref<9x4x4xbf16, #tpu.memory_space<vmem>>, vector<1x4x4xbf16>
    %140 = vector.shape_cast %139 : vector<1x4x4xbf16> to vector<4x4xbf16>
    %cst_143 = arith.constant dense<0.000000e+00> : vector<256x4xf32>
    %141 = tpu.matmul %138, %140, %cst_143 {dimension_numbers = #tpu.dot_dimension_numbers<[1], [0], [0], [1], [0, 0, 1, 1], [], []>} : vector<256x4xbf16>, vector<4x4xbf16>, vector<256x4xf32> -> vector<256x4xf32>
    %142 = arith.addf %135, %141 : vector<256x4xf32>
    %c0_144 = arith.constant 0 : index
    %c0_145 = arith.constant 0 : index
    %143 = vector.load %arg6[%c0_144, %c0_145] : memref<1x4xf32, #tpu.memory_space<vmem>>, vector<1x4xf32>
    %144 = vector.broadcast %143 : vector<1x4xf32> to vector<256x4xf32>
    %145 = arith.mulf %142, %144 : vector<256x4xf32>
    %c0_146 = arith.constant 0 : index
    %c0_147 = arith.constant 0 : index
    %146 = vector.load %arg7[%c0_146, %c0_147] : memref<1x4xf32, #tpu.memory_space<vmem>>, vector<1x4xf32>
    %147 = vector.broadcast %146 : vector<1x4xf32> to vector<256x4xf32>
    %148 = arith.addf %145, %147 : vector<256x4xf32>
    %c0_148 = arith.constant 0 : index
    %c0_149 = arith.constant 0 : index
    %c0_150 = arith.constant 0 : index
    %c0_151 = arith.constant 0 : index
    %149 = vector.load %arg1[%c0_148, %c0_149, %c0_150, %c0_151] : memref<1x16x16x4xf32, #tpu.memory_space<vmem>>, vector<1x16x16x4xf32>
    %150 = vector.shape_cast %149 : vector<1x16x16x4xf32> to vector<16x16x4xf32>
    %151 = vector.shape_cast %150 : vector<16x16x4xf32> to vector<256x4xf32>
    %152 = arith.addf %151, %148 : vector<256x4xf32>
    %c0_152 = arith.constant 0 : index
    %c0_153 = arith.constant 0 : index
    %c0_154 = arith.constant 0 : index
    %153 = vector.load %arg8[%c0_152, %c0_153, %c0_154] : memref<1x256x4xf32, #tpu.memory_space<vmem>>, vector<1x256x4xf32>
    %154 = vector.shape_cast %153 : vector<1x256x4xf32> to vector<256x4xf32>
    %155 = vector.shape_cast %152 : vector<256x4xf32> to vector<1x256x4xf32>
    tpu.vector_store %arg8[%c0_152, %c0_153, %c0_154], %155 {strides = array<i32>} : memref<1x256x4xf32, #tpu.memory_space<vmem>>, vector<1x256x4xf32>,
    return
  }
  func.func @transform_0(%arg0: i32) -> (i32, i32, i32, i32) {
    %c0_i32 = arith.constant 0 : i32
    %c0_i32_0 = arith.constant 0 : i32
    %c0_i32_1 = arith.constant 0 : i32
    %c0_i32_2 = arith.constant 0 : i32
    return %arg0, %c0_i32, %c0_i32_0, %c0_i32_1 : i32, i32, i32, i32
  }
  func.func @transform_1(%arg0: i32) -> (i32, i32, i32) {
    %c0_i32 = arith.constant 0 : i32
    %c0_i32_0 = arith.constant 0 : i32
    %c0_i32_1 = arith.constant 0 : i32
    %c0_i32_2 = arith.constant 0 : i32
    return %c0_i32, %c0_i32_0, %c0_i32_1 : i32, i32, i32
  }
  func.func @transform_2(%arg0: i32) -> (i32, i32, i32) {
    %c0_i32 = arith.constant 0 : i32
    %c0_i32_0 = arith.constant 0 : i32
    %c0_i32_1 = arith.constant 0 : i32
    %c0_i32_2 = arith.constant 0 : i32
    return %c0_i32, %c0_i32_0, %c0_i32_1 : i32, i32, i32
  }
  func.func @transform_3(%arg0: i32) -> (i32, i32) {
    %c0_i32 = arith.constant 0 : i32
    %c0_i32_0 = arith.constant 0 : i32
    %c0_i32_1 = arith.constant 0 : i32
    return %c0_i32, %c0_i32_0 : i32, i32
  }
  func.func @transform_4(%arg0: i32) -> (i32, i32) {
    %c0_i32 = arith.constant 0 : i32
    %c0_i32_0 = arith.constant 0 : i32
    %c0_i32_1 = arith.constant 0 : i32
    return %c0_i32, %c0_i32_0 : i32, i32
  }
  func.func @transform_5(%arg0: i32) -> (i32, i32) {
    %c0_i32 = arith.constant 0 : i32
    %c0_i32_0 = arith.constant 0 : i32
    %c0_i32_1 = arith.constant 0 : i32
    return %c0_i32, %c0_i32_0 : i32, i32
  }
  func.func @transform_6(%arg0: i32) -> (i32, i32) {
    %c0_i32 = arith.constant 0 : i32
    %c0_i32_0 = arith.constant 0 : i32
    %c0_i32_1 = arith.constant 0 : i32
    return %c0_i32, %c0_i32_0 : i32, i32
  }
  func.func @transform_7(%arg0: i32) -> (i32, i32, i32) {
    %c0_i32 = arith.constant 0 : i32
    %c0_i32_0 = arith.constant 0 : i32
    %c0_i32_1 = arith.constant 0 : i32
    return %arg0, %c0_i32, %c0_i32_0 : i32, i32, i32
  }
}

</mosaic_0001>

<bundles_post_ra>
// kernel: tpu_custom_call.1
= control target key start
LH: loop header
LB: loop body
LE: loop exit
PB: predicated region body
PF: predicated region fallthrough
CT: control target
= control target key end

     0   :  { %s5001_s24 = smov 0   ;;  %s6804_s0 = inlined_call_operand.vmem [shape: f32[2,16,16,4], index: 0, kind: input, shape index: {}]   ;;  %s6805_s1 = inlined_call_operand.vmem [shape: bf16[9,4,4], index: 1, kind: input, shape index: {}]   ;;  %s6806_s2 = inlined_call_operand.vmem [shape: bf16[9,4,4], index: 2, kind: input, shape index: {}]   ;;  %s6807_s3 = inlined_call_operand.vmem [shape: f32[1,4], index: 3, kind: input, shape index: {}]   ;;  %s6808_s4 = inlined_call_operand.vmem [shape: f32[1,4], index: 4, kind: input, shape index: {}]   ;;  %s6809_s5 = inlined_call_operand.vmem [shape: f32[1,4], index: 5, kind: input, shape index: {}]   ;;  %s6810_s6 = inlined_call_operand.vmem [shape: f32[1,4], index: 6, kind: input, shape index: {}]   ;;  %s6811_s7 = inlined_call_operand.vmem [shape: f32[2,256,4], index: 7, kind: output, shape index: {}]  }
   0x1 LB: > { %s4618_s25 = sadd.s32 4294967295, %s4958_s24   ;;  %p4622_p0 = scmp.ge.s32.totalorder %s4958_s24, 1  ;;  %s4958_s24 = sphi %s5001_s24, %s17_s24  }
   0x2   : > { %p237_p1 = scmp.lt.s32.totalorder %s4958_s24, 3 }
   0x4   : > { %p238_p2 = pnand %p4622_p0, %p237_p1 }
   0x6   : > { %241 = sbr.rel (%p238_p2) target bundleno = 1478 (0x5c6), region = 48 }
   0xb   : > { %v4627_v0 = vld [vmem:[%s6805_s1 + $0x2] sm:$0x3]  ;;  %vm538_vm0 = vcmask 1041408   ;;  %vm280_vm1 = vcmask 31744   ;;  %vm283_vm2 = vcmask 25600   ;;  %v4960_v2 = vmov 0.0  }
   0xc   : > { %v540_v1 = vsel %vm538_vm0, %v4627_v0, 0  ;;  %281 = vst.msk [vmem:[#allocation2] sm:$0xff] %vm280_vm1, %v4960_v2  ;;  %v439_v3 = vld [vmem:[%s6805_s1] sm:$0x3]  ;;  %p269_p3 = scmp.lt.s32.totalorder %s4618_s25, 1  ;;  %vm289_vm3 = vcmask 24576  }
   0xd   : > { %549 = vmatpush.bf16.msra.mxu0 %v540_v1  ;;  %282 = vst.msk [vmem:[#allocation2 + $0x8] sm:$0xff] %vm280_vm1, %v4960_v2  ;;  %4935 = vmatpush.bf16.msra.mxu2 %v540_v1  ;;  %v680_v4 = vsel %vm538_vm0, %v439_v3, 0  ;;  %v4660_v10 = vld [vmem:[%s6805_s1 + $0x4] sm:$0x3]  ;;  %v4677_v11 = vld [vmem:[%s6805_s1 + $0x6] sm:$0x3] }
   0xe   : > { %284 = vst.msk [vmem:[#allocation2 + $0x10] sm:$0x3] %vm283_vm2, %v4960_v2  ;;  %4936 = vmatpush.bf16.msra.mxu3 %v680_v4  ;;  %689 = vmatpush.bf16.msra.mxu1 %v680_v4  ;;  %s6915_s25 = smov (!%p269_p3, %s4618_s25), 1  ;;  %v870_v12 = vsel %vm538_vm0, %v4660_v10, 0  ;;  %v1092_v13 = vsel %vm538_vm0, %v4677_v11, 0 }
   0xf   : > { %288 = vst.msk [vmem:[#allocation2 + $0x1a8] sm:$0x3] %vm283_vm2, %v4960_v2  ;;  %s4933_s30 = sshll.u32 %s6915_s25, 8  ;;  %v4694_v23 = vld [vmem:[%s6805_s1 + $0x8] sm:$0x3] }
  0x10   : > { %286 = vst.msk [vmem:[#allocation2 + $0x198] sm:$0xff] %vm280_vm1, %v4960_v2  ;;  %s5035_s10 = scalar_lea.vmem %s6804_s0, %s4933_s30  ;;  %v1314_v24 = vsel %vm538_vm0, %v4694_v23, 0  ;;  %s6548_s19 = scalar_lea.vmem %s6811_s7, %s4933_s30 }
  0x11   : > { %287 = vst.msk [vmem:[#allocation2 + $0x1a0] sm:$0xff] %vm280_vm1, %v4960_v2  ;;  %v340_v5 = vld [vmem:[%s5035_s10 + $0x70] sm:$0xff]  ;;  %v341_v6 = vld [vmem:[%s5035_s10 + $0x78] sm:$0xff]  ;;  %879 = vmatpush.bf16.msrb.mxu2 %v870_v12  ;;  %1323 = vmatpush.bf16.msrb.mxu0 %v1314_v24  ;;  %v326_v25 = vld [vmem:[%s5035_s10] sm:$0xff] }
  0x12   : > { %298 = vst.msk [vmem:[#allocation2 + $0xc0] sm:$0x1] %vm289_vm3, %v4960_v2  ;;  %1101 = vmatpush.bf16.msrb.mxu3 %v1092_v13  ;;  %v327_v26 = vld [vmem:[%s5035_s10 + $0x8] sm:$0xff]  ;;  %v342_v27 = vld [vmem:[%s5035_s10 + $0x80] sm:$0xff]  ;;  %v328_v29 = vld [vmem:[%s5035_s10 + $0x10] sm:$0xff] }
  0x13   : > { %373 = vst.msk [vmem:[#allocation2 + $0xc1] sm:$0xff] %vm280_vm1, %v340_v5  ;;  %v343_v28 = vld [vmem:[%s5035_s10 + $0x88] sm:$0xff]  ;;  %v329_v30 = vld [vmem:[%s5035_s10 + $0x18] sm:$0xff]  ;;  %v344_v31 = vld [vmem:[%s5035_s10 + $0x90] sm:$0xff] }
  0x14   : > { %v440_v7 = vld [vmem:[#allocation2 + $0x1] sm:$0xff]  ;;  %374 = vst.msk [vmem:[#allocation2 + $0xc9] sm:$0xff] %vm280_vm1, %v341_v6  ;;  %v345_v32 = vld [vmem:[%s5035_s10 + $0x98] sm:$0xff]  ;;  %v332_v49 = vld [vmem:[%s5035_s10 + $0x30] sm:$0xff] }
  0x15   : > { %v441_v8 = vld [vmem:[#allocation2 + $0x9] sm:$0xff]  ;;  %290 = vst.msk [vmem:[#allocation2] sm:$0x1] %vm289_vm3, %v4960_v2  ;;  %v330_v33 = vld [vmem:[%s5035_s10 + $0x20] sm:$0xff]  ;;  %v333_v50 = vld [vmem:[%s5035_s10 + $0x38] sm:$0xff] }
  0x16   : > { %v472_v9 = vpack.c.bf16 %v441_v8, %v440_v7  ;;  %291 = vst.msk [vmem:[#allocation2 + $0x18] sm:$0x1] %vm289_vm3, %v4960_v2  ;;  %v392_v16 = vld [vmem:[#allocation2 + $0x8] sm:$0xff]  ;;  %v346_v37 = vld [vmem:[%s5035_s10 + $0xa0] sm:$0xff]  ;;  %v348_v59 = vld [vmem:[%s5035_s10 + $0xb0] sm:$0xff] }
  0x17   : > { %292 = vst.msk [vmem:[#allocation2 + $0x30] sm:$0x1] %vm289_vm3, %v4960_v2  ;;  %v331_v34 = vld [vmem:[%s5035_s10 + $0x28] sm:$0xff]  ;;  %v349_v60 = vld [vmem:[%s5035_s10 + $0xb8] sm:$0xff]  ;;  %v334_v1 = vld [vmem:[%s5035_s10 + $0x40] sm:$0xff] }
  0x18   : > { %4628 = vmatmul.msk.bf16.vlgmr.msra.gmra.mxu0 %vm280_vm1, %v472_v9  ;;  %293 = vst.msk [vmem:[#allocation2 + $0x48] sm:$0x1] %vm289_vm3, %v4960_v2  ;;  %v347_v40 = vld [vmem:[%s5035_s10 + $0xa8] sm:$0xff]  ;;  %v350_v11 = vld [vmem:[%s5035_s10 + $0xc0] sm:$0xff] }
  0x19   : > { %294 = vst.msk [vmem:[#allocation2 + $0x60] sm:$0x1] %vm289_vm3, %v4960_v2  ;;  %v351_v12 = vld [vmem:[%s5035_s10 + $0xc8] sm:$0xff] }
  0x1a   : > { %v456_v14 = vld [vmem:[#allocation2 + $0xc1] sm:$0xff]  ;;  %295 = vst.msk [vmem:[#allocation2 + $0x78] sm:$0x1] %vm289_vm3, %v4960_v2 }
  0x1b   : > { %v407_v15 = vld [vmem:[#allocation2 + $0xc0] sm:$0xff]  ;;  %v457_v17 = vld [vmem:[#allocation2 + $0xc9] sm:$0xff]  ;;  %296 = vst.msk [vmem:[#allocation2 + $0x90] sm:$0x1] %vm289_vm3, %v4960_v2 }
  0x1c   : > { %v408_v18 = vld [vmem:[#allocation2 + $0xc8] sm:$0xff]  ;;  %v5066_v19 = vpack.c.bf16 %v457_v17, %v456_v14  ;;  %297 = vst.msk [vmem:[#allocation2 + $0xa8] sm:$0x1] %vm289_vm3, %v4960_v2  ;;  %v391_v21 = vld [vmem:[#allocation2] sm:$0xff]  ;;  %v336_v17 = vld [vmem:[%s5035_s10 + $0x50] sm:$0xff] }
  0x1d   : > { %v5068_v20 = vpack.c.bf16 %v408_v18, %v407_v15  ;;  %299 = vst.msk [vmem:[#allocation2 + $0xd8] sm:$0x1] %vm289_vm3, %v4960_v2  ;;  %v423_v22 = vpack.c.bf16 %v392_v16, %v391_v21  ;;  %v337_v18 = vld [vmem:[%s5035_s10 + $0x58] sm:$0xff] }
  0x1e   : > { %4636 = vmatmul.msk.bf16.vlgmr.msra.gmra.mxu2 %vm280_vm1, %v5066_v19  ;;  %300 = vst.msk [vmem:[#allocation2 + $0xf0] sm:$0x1] %vm289_vm3, %v4960_v2 }
  0x1f   : > { %4652 = vmatmul.msk.bf16.vlgmr.msra.gmra.mxu3 %vm280_vm1, %v5068_v20  ;;  %301 = vst.msk [vmem:[#allocation2 + $0x108] sm:$0x1] %vm289_vm3, %v4960_v2  ;;  %4644 = vmatmul.msk.bf16.vlgmr.msra.gmra.mxu1 %vm280_vm1, %v423_v22 }
  0x20   : > { %302 = vst.msk [vmem:[#allocation2 + $0x120] sm:$0x1] %vm289_vm3, %v4960_v2 }
  0x21   : > { %303 = vst.msk [vmem:[#allocation2 + $0x138] sm:$0x1] %vm289_vm3, %v4960_v2 }
  0x22   : > { %304 = vst.msk [vmem:[#allocation2 + $0x150] sm:$0x1] %vm289_vm3, %v4960_v2 }
  0x23   : > { %305 = vst.msk [vmem:[#allocation2 + $0x168] sm:$0x1] %vm289_vm3, %v4960_v2 }
  0x24   : > { %306 = vst.msk [vmem:[#allocation2 + $0x180] sm:$0x1] %vm289_vm3, %v4960_v2 }
  0x25   : > { %307 = vst.msk [vmem:[#allocation2 + $0x198] sm:$0x1] %vm289_vm3, %v4960_v2 }
  0x26   : > { %308 = vst.msk [vmem:[#allocation2 + $0x11] sm:$0x1] %vm289_vm3, %v4960_v2 }
  0x27   : > { %309 = vst.msk [vmem:[#allocation2 + $0x29] sm:$0x1] %vm289_vm3, %v4960_v2 }
  0x28   : > { %310 = vst.msk [vmem:[#allocation2 + $0x41] sm:$0x1] %vm289_vm3, %v4960_v2 }
  0x29   : > { %311 = vst.msk [vmem:[#allocation2 + $0x59] sm:$0x1] %vm289_vm3, %v4960_v2 }
  0x2a   : > { %312 = vst.msk [vmem:[#allocation2 + $0x71] sm:$0x1] %vm289_vm3, %v4960_v2 }
  0x2b   : > { %313 = vst.msk [vmem:[#allocation2 + $0x89] sm:$0x1] %vm289_vm3, %v4960_v2 }
  0x2c   : > { %314 = vst.msk [vmem:[#allocation2 + $0xa1] sm:$0x1] %vm289_vm3, %v4960_v2 }
  0x2d   : > { %315 = vst.msk [vmem:[#allocation2 + $0xb9] sm:$0x1] %vm289_vm3, %v4960_v2 }
  0x2e   : > { %316 = vst.msk [vmem:[#allocation2 + $0xd1] sm:$0x1] %vm289_vm3, %v4960_v2 }
  0x2f   : > { %317 = vst.msk [vmem:[#allocation2 + $0xe9] sm:$0x1] %vm289_vm3, %v4960_v2 }
  0x30   : > { %318 = vst.msk [vmem:[#allocation2 + $0x101] sm:$0x1] %vm289_vm3, %v4960_v2 }
  0x31   : > { %319 = vst.msk [vmem:[#allocation2 + $0x119] sm:$0x1] %vm289_vm3, %v4960_v2 }
  0x32   : > { %320 = vst.msk [vmem:[#allocation2 + $0x131] sm:$0x1] %vm289_vm3, %v4960_v2 }
  0x33   : > { %321 = vst.msk [vmem:[#allocation2 + $0x149] sm:$0x1] %vm289_vm3, %v4960_v2 }
  0x34   : > { %322 = vst.msk [vmem:[#allocation2 + $0x161] sm:$0x1] %vm289_vm3, %v4960_v2 }
  0x35   : > { %323 = vst.msk [vmem:[#allocation2 + $0x179] sm:$0x1] %vm289_vm3, %v4960_v2 }
  0x36   : > { %324 = vst.msk [vmem:[#allocation2 + $0x191] sm:$0x1] %vm289_vm3, %v4960_v2 }
  0x37   : > { %325 = vst.msk [vmem:[#allocation2 + $0x1a9] sm:$0x1] %vm289_vm3, %v4960_v2  ;;  %v335_v2 = vld [vmem:[%s5035_s10 + $0x48] sm:$0xff] }
  0x38   : > { %359 = vst.msk [vmem:[#allocation2 + $0x19] sm:$0xff] %vm280_vm1, %v326_v25 }
  0x39   : > { %360 = vst.msk [vmem:[#allocation2 + $0x21] sm:$0xff] %vm280_vm1, %v327_v26 }
  0x3a   : > { %375 = vst.msk [vmem:[#allocation2 + $0xd9] sm:$0xff] %vm280_vm1, %v342_v27 }
  0x3b   : > { %376 = vst.msk [vmem:[#allocation2 + $0xe1] sm:$0xff] %vm280_vm1, %v343_v28 }
  0x3c   : > { %361 = vst.msk [vmem:[#allocation2 + $0x31] sm:$0xff] %vm280_vm1, %v328_v29  ;;  %v352_v29 = vld [vmem:[%s5035_s10 + $0xd0] sm:$0xff] }
  0x3d   : > { %362 = vst.msk [vmem:[#allocation2 + $0x39] sm:$0xff] %vm280_vm1, %v329_v30  ;;  %v353_v30 = vld [vmem:[%s5035_s10 + $0xd8] sm:$0xff] }
  0x3e   : > { %377 = vst.msk [vmem:[#allocation2 + $0xf1] sm:$0xff] %vm280_vm1, %v344_v31 }
  0x3f   : > { %v442_v35 = vld [vmem:[#allocation2 + $0x19] sm:$0xff]  ;;  %378 = vst.msk [vmem:[#allocation2 + $0xf9] sm:$0xff] %vm280_vm1, %v345_v32 }
  0x40   : > { %v393_v36 = vld [vmem:[#allocation2 + $0x18] sm:$0xff]  ;;  %v443_v38 = vld [vmem:[#allocation2 + $0x21] sm:$0xff]  ;;  %363 = vst.msk [vmem:[#allocation2 + $0x49] sm:$0xff] %vm280_vm1, %v330_v33 }
  0x41   : > { %v394_v39 = vld [vmem:[#allocation2 + $0x20] sm:$0xff]  ;;  %v5156_v41 = vpack.c.bf16 %v443_v38, %v442_v35  ;;  %v409_v43 = vld [vmem:[#allocation2 + $0xd8] sm:$0xff]  ;;  %364 = vst.msk [vmem:[#allocation2 + $0x51] sm:$0xff] %vm280_vm1, %v331_v34 }
  0x42   : > { %v458_v42 = vld [vmem:[#allocation2 + $0xd9] sm:$0xff]  ;;  %v5158_v44 = vpack.c.bf16 %v394_v39, %v393_v36  ;;  %v459_v45 = vld [vmem:[#allocation2 + $0xe1] sm:$0xff]  ;;  %379 = vst.msk [vmem:[#allocation2 + $0x109] sm:$0xff] %vm280_vm1, %v346_v37 }
  0x43   : > { %v410_v46 = vld [vmem:[#allocation2 + $0xe0] sm:$0xff]  ;;  %4629 = vmatmul.msk.bf16.gmra.mxu0 %vm280_vm1, %v5156_v41  ;;  %v5164_v47 = vpack.c.bf16 %v459_v45, %v458_v42  ;;  %380 = vst.msk [vmem:[#allocation2 + $0x111] sm:$0xff] %vm280_vm1, %v347_v40  ;;  %v444_v51 = vld [vmem:[#allocation2 + $0x31] sm:$0xff]  ;;  %v339_v36 = vld [vmem:[%s5035_s10 + $0x68] sm:$0xff] }
  0x44   : > { %v5166_v48 = vpack.c.bf16 %v410_v46, %v409_v43  ;;  %4645 = vmatmul.msk.bf16.gmra.mxu1 %vm280_vm1, %v5158_v44  ;;  %365 = vst.msk [vmem:[#allocation2 + $0x61] sm:$0xff] %vm280_vm1, %v332_v49  ;;  %v445_v52 = vld [vmem:[#allocation2 + $0x39] sm:$0xff]  ;;  %v395_v53 = vld [vmem:[#allocation2 + $0x30] sm:$0xff] }
  0x45   : > { %4637 = vmatmul.msk.bf16.gmra.mxu2 %vm280_vm1, %v5164_v47  ;;  %366 = vst.msk [vmem:[#allocation2 + $0x69] sm:$0xff] %vm280_vm1, %v333_v50  ;;  %v396_v54 = vld [vmem:[#allocation2 + $0x38] sm:$0xff]  ;;  %v411_v57 = vld [vmem:[#allocation2 + $0xf0] sm:$0xff]  ;;  %v5181_v61 = vpack.c.bf16 %v445_v52, %v444_v51  ;;  %v338_v35 = vld [vmem:[%s5035_s10 + $0x60] sm:$0xff] }
  0x46   : > { %4653 = vmatmul.msk.bf16.gmra.mxu3 %vm280_vm1, %v5166_v48  ;;  %v460_v55 = vld [vmem:[#allocation2 + $0xf1] sm:$0xff]  ;;  %v461_v56 = vld [vmem:[#allocation2 + $0xf9] sm:$0xff]  ;;  %v5183_v62 = vpack.c.bf16 %v396_v54, %v395_v53  ;;  %381 = vst.msk [vmem:[#allocation2 + $0x121] sm:$0xff] %vm280_vm1, %v348_v59  ;;  %v355_v50 = vld [vmem:[%s5035_s10 + $0xe8] sm:$0xff] }
  0x47   : > { %v412_v58 = vld [vmem:[#allocation2 + $0xf8] sm:$0xff]  ;;  %382 = vst.msk [vmem:[#allocation2 + $0x129] sm:$0xff] %vm280_vm1, %v349_v60  ;;  %v5187_v63 = vpack.c.bf16 %v461_v56, %v460_v55  ;;  %v446_v3 = vld [vmem:[#allocation2 + $0x49] sm:$0xff]  ;;  %v354_v49 = vld [vmem:[%s5035_s10 + $0xe0] sm:$0xff] }
  0x48   : > { %v5189_v0 = vpack.c.bf16 %v412_v58, %v411_v57  ;;  %367 = vst.msk [vmem:[#allocation2 + $0x79] sm:$0xff] %vm280_vm1, %v334_v1  ;;  %v447_v4 = vld [vmem:[#allocation2 + $0x51] sm:$0xff]  ;;  %v397_v5 = vld [vmem:[#allocation2 + $0x48] sm:$0xff] }
  0x49   : > { %368 = vst.msk [vmem:[#allocation2 + $0x81] sm:$0xff] %vm280_vm1, %v335_v2  ;;  %v398_v6 = vld [vmem:[#allocation2 + $0x50] sm:$0xff]  ;;  %v413_v9 = vld [vmem:[#allocation2 + $0x108] sm:$0xff]  ;;  %v5205_v13 = vpack.c.bf16 %v447_v4, %v446_v3 }
  0x4a   : > { %v462_v7 = vld [vmem:[#allocation2 + $0x109] sm:$0xff]  ;;  %v463_v8 = vld [vmem:[#allocation2 + $0x111] sm:$0xff]  ;;  %v5207_v14 = vpack.c.bf16 %v398_v6, %v397_v5  ;;  %383 = vst.msk [vmem:[#allocation2 + $0x139] sm:$0xff] %vm280_vm1, %v350_v11 }
  0x4b   : > { %v414_v10 = vld [vmem:[#allocation2 + $0x110] sm:$0xff]  ;;  %384 = vst.msk [vmem:[#allocation2 + $0x141] sm:$0xff] %vm280_vm1, %v351_v12  ;;  %v5211_v15 = vpack.c.bf16 %v463_v8, %v462_v7  ;;  %v448_v21 = vld [vmem:[#allocation2 + $0x61] sm:$0xff]  ;;  %v4728_v7 = vld [vmem:[%s6805_s1 + $0xc] sm:$0x3] }
  0x4c   : > { %v5213_v16 = vpack.c.bf16 %v414_v10, %v413_v9  ;;  %369 = vst.msk [vmem:[#allocation2 + $0x91] sm:$0xff] %vm280_vm1, %v336_v17  ;;  %v449_v22 = vld [vmem:[#allocation2 + $0x69] sm:$0xff]  ;;  %v399_v23 = vld [vmem:[#allocation2 + $0x60] sm:$0xff]  ;;  %v1759_v9 = vsel %vm538_vm0, %v4728_v7, 0 }
  0x4d   : > { %370 = vst.msk [vmem:[#allocation2 + $0x99] sm:$0xff] %vm280_vm1, %v337_v18  ;;  %v400_v24 = vld [vmem:[#allocation2 + $0x68] sm:$0xff]  ;;  %v415_v27 = vld [vmem:[#allocation2 + $0x120] sm:$0xff]  ;;  %v5229_v31 = vpack.c.bf16 %v449_v22, %v448_v21  ;;  %1768 = vmatpush.bf16.msra.mxu2 %v1759_v9 }
  0x4e   : > { %v464_v25 = vld [vmem:[#allocation2 + $0x121] sm:$0xff]  ;;  %v465_v26 = vld [vmem:[#allocation2 + $0x129] sm:$0xff]  ;;  %v5231_v32 = vpack.c.bf16 %v400_v24, %v399_v23  ;;  %385 = vst.msk [vmem:[#allocation2 + $0x151] sm:$0xff] %vm280_vm1, %v352_v29 }
  0x4f   : > { %v416_v28 = vld [vmem:[#allocation2 + $0x128] sm:$0xff]  ;;  %386 = vst.msk [vmem:[#allocation2 + $0x159] sm:$0xff] %vm280_vm1, %v353_v30  ;;  %v5235_v33 = vpack.c.bf16 %v465_v26, %v464_v25  ;;  %v450_v37 = vld [vmem:[#allocation2 + $0x79] sm:$0xff] }
  0x50   : > { %v5237_v34 = vpack.c.bf16 %v416_v28, %v415_v27  ;;  %371 = vst.msk [vmem:[#allocation2 + $0xa9] sm:$0xff] %vm280_vm1, %v338_v35  ;;  %v451_v38 = vld [vmem:[#allocation2 + $0x81] sm:$0xff]  ;;  %v401_v39 = vld [vmem:[#allocation2 + $0x78] sm:$0xff]  ;;  %v4745_v8 = vld [vmem:[%s6805_s1 + $0xe] sm:$0x3] }
  0x51   : > { %372 = vst.msk [vmem:[#allocation2 + $0xb1] sm:$0xff] %vm280_vm1, %v339_v36  ;;  %v402_v40 = vld [vmem:[#allocation2 + $0x80] sm:$0xff]  ;;  %v417_v45 = vld [vmem:[#allocation2 + $0x138] sm:$0xff]  ;;  %v5253_v51 = vpack.c.bf16 %v451_v38, %v450_v37  ;;  %v1981_v10 = vsel %vm538_vm0, %v4745_v8, 0  ;;  %v4711_v30 = vld [vmem:[%s6805_s1 + $0xa] sm:$0x3] }
  0x52   : > { %v466_v42 = vld [vmem:[#allocation2 + $0x139] sm:$0xff]  ;;  %v467_v43 = vld [vmem:[#allocation2 + $0x141] sm:$0xff]  ;;  %v5255_v52 = vpack.c.bf16 %v402_v40, %v401_v39  ;;  %387 = vst.msk [vmem:[#allocation2 + $0x169] sm:$0xff] %vm280_vm1, %v354_v49  ;;  %1990 = vmatpush.bf16.msra.mxu3 %v1981_v10  ;;  %v1536_v39 = vsel %vm538_vm0, %v4711_v30, 0 }
  0x53   : > { %4630 = vmatmul.msk.bf16.gmra.mxu0 %vm280_vm1, %v5181_v61  ;;  %v418_v46 = vld [vmem:[#allocation2 + $0x140] sm:$0xff]  ;;  %388 = vst.msk [vmem:[#allocation2 + $0x171] sm:$0xff] %vm280_vm1, %v355_v50  ;;  %v5259_v53 = vpack.c.bf16 %v467_v43, %v466_v42  ;;  %v452_v55 = vld [vmem:[#allocation2 + $0x91] sm:$0xff]  ;;  %1545 = vmatpush.bf16.msrb.mxu1 %v1536_v39 }
  0x54   : > { %4646 = vmatmul.msk.bf16.gmra.mxu1 %vm280_vm1, %v5183_v62  ;;  %v5261_v54 = vpack.c.bf16 %v418_v46, %v417_v45  ;;  %v453_v56 = vld [vmem:[#allocation2 + $0x99] sm:$0xff]  ;;  %v403_v57 = vld [vmem:[#allocation2 + $0x90] sm:$0xff]  ;;  %v1438_v46 = vld [vmem:[#allocation2 + $0x22] sm:$0xff] }
  0x55   : > { %4638 = vmatmul.msk.bf16.gmra.mxu2 %vm280_vm1, %v5187_v63  ;;  %v404_v58 = vld [vmem:[#allocation2 + $0x98] sm:$0xff]  ;;  %v419_v1 = vld [vmem:[#allocation2 + $0x150] sm:$0xff]  ;;  %v5271_v3 = vpack.c.bf16 %v453_v56, %v452_v55  ;;  %v771_v49 = vld [vmem:[#allocation2 + $0x2] sm:$0xff] }
  0x56   : > { %4654 = vmatmul.msk.bf16.gmra.mxu3 %vm280_vm1, %v5189_v0  ;;  %v468_v59 = vld [vmem:[#allocation2 + $0x151] sm:$0xff]  ;;  %v469_v60 = vld [vmem:[#allocation2 + $0x159] sm:$0xff]  ;;  %v5273_v4 = vpack.c.bf16 %v404_v58, %v403_v57 }
  0x57   : > { %v420_v2 = vld [vmem:[#allocation2 + $0x158] sm:$0xff]  ;;  %v5275_v5 = vpack.c.bf16 %v469_v60, %v468_v59  ;;  %v454_v11 = vld [vmem:[#allocation2 + $0xa9] sm:$0xff] }
  0x58   : > { %v5277_v6 = vpack.c.bf16 %v420_v2, %v419_v1  ;;  %v455_v12 = vld [vmem:[#allocation2 + $0xb1] sm:$0xff]  ;;  %v405_v17 = vld [vmem:[#allocation2 + $0xa8] sm:$0xff]  ;;  %v1437_v45 = vld [vmem:[#allocation2 + $0x1a] sm:$0xff] }
  0x59   : > { %v406_v18 = vld [vmem:[#allocation2 + $0xb0] sm:$0xff]  ;;  %v421_v26 = vld [vmem:[#allocation2 + $0x168] sm:$0xff]  ;;  %v5297_v28 = vpack.c.bf16 %v455_v12, %v454_v11  ;;  %v1469_v55 = vpack.c.bf16 %v1438_v46, %v1437_v45  ;;  %v1440_v60 = vld [vmem:[#allocation2 + $0x3a] sm:$0xff] }
  0x5a   : > { %v470_v23 = vld [vmem:[#allocation2 + $0x169] sm:$0xff]  ;;  %v471_v25 = vld [vmem:[#allocation2 + $0x171] sm:$0xff]  ;;  %v5299_v29 = vpack.c.bf16 %v406_v18, %v405_v17 }
  0x5b   : > { %v422_v27 = vld [vmem:[#allocation2 + $0x170] sm:$0xff]  ;;  %v5304_v35 = vpack.c.bf16 %v471_v25, %v470_v23  ;;  %v1443_v46 = vld [vmem:[#allocation2 + $0x62] sm:$0xff] }
  0x5c   : > { %v5306_v36 = vpack.c.bf16 %v422_v27, %v421_v26  ;;  %v4762_v42 = vld [vmem:[%s6805_s1 + $0x10] sm:$0x3]  ;;  %v1439_v59 = vld [vmem:[#allocation2 + $0x32] sm:$0xff] }
  0x5d   : > { %v2203_v43 = vsel %vm538_vm0, %v4762_v42, 0  ;;  %v772_v50 = vld [vmem:[#allocation2 + $0xa] sm:$0xff]  ;;  %v5337_v7 = vpack.c.bf16 %v1440_v60, %v1439_v59 }
  0x5e   : > { %2212 = vmatpush.bf16.msra.mxu0 %v2203_v43  ;;  %v803_v56 = vpack.c.bf16 %v772_v50, %v771_v49  ;;  %v1444_v49 = vld [vmem:[#allocation2 + $0x6a] sm:$0xff] }
  0x63   : > { %4631 = vmatmul.msk.bf16.gmra.mxu0 %vm280_vm1, %v5205_v13 }
  0x64   : > { %4647 = vmatmul.msk.bf16.gmra.mxu1 %vm280_vm1, %v5207_v14 }
  0x65   : > { %4639 = vmatmul.msk.bf16.gmra.mxu2 %vm280_vm1, %v5211_v15 }
  0x66   : > { %4655 = vmatmul.msk.bf16.gmra.mxu3 %vm280_vm1, %v5213_v16 }
  0x73   : > { %4632 = vmatmul.msk.bf16.gmra.mxu0 %vm280_vm1, %v5229_v31 }
  0x74   : > { %4648 = vmatmul.msk.bf16.gmra.mxu1 %vm280_vm1, %v5231_v32 }
  0x75   : > { %4640 = vmatmul.msk.bf16.gmra.mxu2 %vm280_vm1, %v5235_v33 }
  0x76   : > { %4656 = vmatmul.msk.bf16.gmra.mxu3 %vm280_vm1, %v5237_v34 }
  0x83   : > { %4633 = vmatmul.msk.bf16.gmra.mxu0 %vm280_vm1, %v5253_v51 }
  0x84   : > { %4649 = vmatmul.msk.bf16.gmra.mxu1 %vm280_vm1, %v5255_v52 }
  0x85   : > { %4641 = vmatmul.msk.bf16.gmra.mxu2 %vm280_vm1, %v5259_v53 }
  0x86   : > { %4657 = vmatmul.msk.bf16.gmra.mxu3 %vm280_vm1, %v5261_v54 }
  0x93   : > { %4634 = vmatmul.msk.bf16.gmra.mxu0 %vm280_vm1, %v5271_v3 }
  0x94   : > { %4650 = vmatmul.msk.bf16.gmra.mxu1 %vm280_vm1, %v5273_v4 }
  0x95   : > { %4642 = vmatmul.msk.bf16.gmra.mxu2 %vm280_vm1, %v5275_v5  ;;  %v551_v21 = vpop.f32.mrf.mxu0 }
  0x96   : > { %4658 = vmatmul.msk.bf16.gmra.mxu3 %vm280_vm1, %v5277_v6 }
  0x9c   : > { %v691_v22 = vpop.f32.mrf.mxu1 }
  0x9d   : > { %v5295_v24 = vadd.f32 %v691_v22, %v551_v21  ;;  %v5329_v57 = vpop.f32.mrf.mxu0  ;;  %v1441_v21 = vld [vmem:[#allocation2 + $0x4a] sm:$0xff]  ;;  %v1442_v22 = vld [vmem:[#allocation2 + $0x52] sm:$0xff] }
  0x9e   : > { %v5352_v23 = vpack.c.bf16 %v1442_v22, %v1441_v21  ;;  %v1445_v21 = vld [vmem:[#allocation2 + $0x7a] sm:$0xff]  ;;  %v1446_v22 = vld [vmem:[#allocation2 + $0x82] sm:$0xff] }
  0xa1   : > { %v591_v37 = vpop.f32.mrf.mxu2 }
  0xa2   : > { %v731_v38 = vpop.f32.mrf.mxu3 }
  0xa3   : > { %v5309_v40 = vadd.f32 %v731_v38, %v591_v37  ;;  %4635 = vmatmul.msk.bf16.gmra.mxu0 %vm280_vm1, %v5297_v28 }
  0xa4   : > { %4651 = vmatmul.msk.bf16.gmra.mxu1 %vm280_vm1, %v5299_v29  ;;  %v5331_v58 = vpop.f32.mrf.mxu1 }
  0xa5   : > { %4643 = vmatmul.msk.bf16.gmra.mxu2 %vm280_vm1, %v5304_v35 }
  0xa6   : > { %4659 = vmatmul.msk.bf16.gmra.mxu3 %vm280_vm1, %v5306_v36 }
  0xa9   : > { %v5333_v1 = vpop.f32.mrf.mxu2 }
  0xaa   : > { %v5335_v2 = vpop.f32.mrf.mxu3 }
  0xb3   : > { %4695 = vmatmul.msk.bf16.vlgmr.msrb.gmra.mxu0 %vm280_vm1, %v5156_v41 }
  0xb4   : > { %4712 = vmatmul.msk.bf16.vlgmr.msrb.gmra.mxu1 %vm280_vm1, %v1469_v55 }
  0xb5   : > { %4661 = vmatmul.msk.bf16.vlgmr.msrb.gmra.mxu2 %vm280_vm1, %v803_v56 }
  0xb6   : > { %4678 = vmatmul.msk.bf16.vlgmr.msrb.gmra.mxu3 %vm280_vm1, %v5158_v44 }
  0xc0   : > { %v556_v41 = vpop.f32.mrf.mxu0 }
  0xc1   : > { %v696_v8 = vpop.f32.mrf.mxu1 }
  0xc2   : > { %v5339_v9 = vadd.f32 %v696_v8, %v556_v41 }
  0xc3   : > { %4696 = vmatmul.msk.bf16.gmra.mxu0 %vm280_vm1, %v5181_v61 }
  0xc4   : > { %4713 = vmatmul.msk.bf16.gmra.mxu1 %vm280_vm1, %v5337_v7 }
  0xc5   : > { %4662 = vmatmul.msk.bf16.gmra.mxu2 %vm280_vm1, %v1469_v55 }
  0xc6   : > { %4679 = vmatmul.msk.bf16.gmra.mxu3 %vm280_vm1, %v5183_v62 }
  0xc8   : > { %v558_v44 = vpop.f32.mrf.mxu0  ;;  %v596_v10 = vpop.f32.mrf.mxu2 }
  0xc9   : > { %v736_v11 = vpop.f32.mrf.mxu3  ;;  %v698_v12 = vpop.f32.mrf.mxu1 }
  0xca   : > { %v5348_v17 = vadd.f32 %v736_v11, %v596_v10  ;;  %v5350_v18 = vadd.f32 %v698_v12, %v558_v44 }
  0xd0   : > { %v561_v61 = vpop.f32.mrf.mxu0  ;;  %v598_v25 = vpop.f32.mrf.mxu2 }
  0xd1   : > { %v738_v26 = vpop.f32.mrf.mxu3  ;;  %v701_v27 = vpop.f32.mrf.mxu1 }
  0xd2   : > { %v5354_v30 = vadd.f32 %v738_v26, %v598_v25  ;;  %v5356_v37 = vadd.f32 %v701_v27, %v561_v61 }
  0xd3   : > { %4697 = vmatmul.msk.bf16.gmra.mxu0 %vm280_vm1, %v5205_v13  ;;  %v5370_v13 = vpack.c.bf16 %v1444_v49, %v1443_v46 }
  0xd4   : > { %4714 = vmatmul.msk.bf16.gmra.mxu1 %vm280_vm1, %v5352_v23 }
  0xd5   : > { %4663 = vmatmul.msk.bf16.gmra.mxu2 %vm280_vm1, %v5337_v7 }
  0xd6   : > { %4680 = vmatmul.msk.bf16.gmra.mxu3 %vm280_vm1, %v5207_v14 }
  0xd8   : > { %v563_v62 = vpop.f32.mrf.mxu0  ;;  %v601_v38 = vpop.f32.mrf.mxu2 }
  0xd9   : > { %v741_v39 = vpop.f32.mrf.mxu3  ;;  %v703_v42 = vpop.f32.mrf.mxu1 }
  0xda   : > { %v5366_v43 = vadd.f32 %v741_v39, %v601_v38  ;;  %v5368_v45 = vadd.f32 %v703_v42, %v563_v62 }
  0xe0   : > { %v566_v50 = vpop.f32.mrf.mxu0  ;;  %v603_v55 = vpop.f32.mrf.mxu2 }
  0xe1   : > { %v743_v56 = vpop.f32.mrf.mxu3  ;;  %v706_v59 = vpop.f32.mrf.mxu1 }
  0xe2   : > { %v5372_v60 = vadd.f32 %v743_v56, %v603_v55  ;;  %v5374_v41 = vadd.f32 %v706_v59, %v566_v50  ;;  %v1447_v55 = vld [vmem:[#allocation2 + $0x92] sm:$0xff]  ;;  %v1448_v56 = vld [vmem:[#allocation2 + $0x9a] sm:$0xff] }
  0xe3   : > { %4698 = vmatmul.msk.bf16.gmra.mxu0 %vm280_vm1, %v5229_v31  ;;  %v5388_v31 = vpack.c.bf16 %v1446_v22, %v1445_v21 }
  0xe4   : > { %4715 = vmatmul.msk.bf16.gmra.mxu1 %vm280_vm1, %v5370_v13 }
  0xe5   : > { %4664 = vmatmul.msk.bf16.gmra.mxu2 %vm280_vm1, %v5352_v23 }
  0xe6   : > { %4681 = vmatmul.msk.bf16.gmra.mxu3 %vm280_vm1, %v5231_v32 }
  0xe8   : > { %v568_v14 = vpop.f32.mrf.mxu0  ;;  %v606_v8 = vpop.f32.mrf.mxu2 }
  0xe9   : > { %v746_v44 = vpop.f32.mrf.mxu3  ;;  %v708_v10 = vpop.f32.mrf.mxu1 }
  0xea   : > { %v5384_v11 = vadd.f32 %v746_v44, %v606_v8  ;;  %v5386_v12 = vadd.f32 %v708_v10, %v568_v14 }
  0xf0   : > { %v571_v61 = vpop.f32.mrf.mxu0  ;;  %v608_v25 = vpop.f32.mrf.mxu2 }
  0xf1   : > { %v748_v26 = vpop.f32.mrf.mxu3  ;;  %v711_v27 = vpop.f32.mrf.mxu1 }
  0xf2   : > { %v5390_v62 = vadd.f32 %v748_v26, %v608_v25  ;;  %v5392_v38 = vadd.f32 %v711_v27, %v571_v61 }
  0xf3   : > { %4699 = vmatmul.msk.bf16.gmra.mxu0 %vm280_vm1, %v5253_v51  ;;  %v5406_v51 = vpack.c.bf16 %v1448_v56, %v1447_v55 }
  0xf4   : > { %4716 = vmatmul.msk.bf16.gmra.mxu1 %vm280_vm1, %v5388_v31 }
  0xf5   : > { %4665 = vmatmul.msk.bf16.gmra.mxu2 %vm280_vm1, %v5370_v13 }
  0xf6   : > { %4682 = vmatmul.msk.bf16.gmra.mxu3 %vm280_vm1, %v5255_v52 }
  0xf8   : > { %v573_v32 = vpop.f32.mrf.mxu0  ;;  %v611_v39 = vpop.f32.mrf.mxu2 }
  0xf9   : > { %v751_v42 = vpop.f32.mrf.mxu3  ;;  %v713_v46 = vpop.f32.mrf.mxu1 }
  0xfa   : > { %v5402_v49 = vadd.f32 %v751_v42, %v611_v39  ;;  %v5404_v50 = vadd.f32 %v713_v46, %v573_v32  ;;  %v1449_v32 = vld [vmem:[#allocation2 + $0xaa] sm:$0xff]  ;;  %v1450_v39 = vld [vmem:[#allocation2 + $0xb2] sm:$0xff] }
 0x100   : > { %v576_v59 = vpop.f32.mrf.mxu0  ;;  %v613_v14 = vpop.f32.mrf.mxu2 }
 0x101   : > { %v753_v8 = vpop.f32.mrf.mxu3  ;;  %v716_v44 = vpop.f32.mrf.mxu1 }
 0x102   : > { %v5408_v10 = vadd.f32 %v753_v8, %v613_v14  ;;  %v5410_v21 = vadd.f32 %v716_v44, %v576_v59 }
 0x103   : > { %4700 = vmatmul.msk.bf16.gmra.mxu0 %vm280_vm1, %v5271_v3  ;;  %v5424_v3 = vpack.c.bf16 %v1450_v39, %v1449_v32  ;;  %v1452_v32 = vld [vmem:[#allocation2 + $0xca] sm:$0xff] }
 0x104   : > { %6834 = vst [vmem:[#allocation3_spill] sm:$0xff] %v5408_v10  ;;  %4717 = vmatmul.msk.bf16.gmra.mxu1 %vm280_vm1, %v5406_v51 }
 0x105   : > { %4666 = vmatmul.msk.bf16.gmra.mxu2 %vm280_vm1, %v5388_v31  ;;  %6836 = vst [vmem:[#allocation5_spill] sm:$0xff] %v5424_v3 }
 0x106   : > { %4683 = vmatmul.msk.bf16.gmra.mxu3 %vm280_vm1, %v5273_v4 }
 0x108   : > { %v578_v52 = vpop.f32.mrf.mxu0  ;;  %v616_v22 = vpop.f32.mrf.mxu2 }
 0x109   : > { %v756_v61 = vpop.f32.mrf.mxu3  ;;  %v718_v25 = vpop.f32.mrf.mxu1 }
 0x10a   : > { %v5420_v26 = vadd.f32 %v756_v61, %v616_v22  ;;  %v5422_v27 = vadd.f32 %v718_v25, %v578_v52  ;;  %v1451_v25 = vld [vmem:[#allocation2 + $0xc2] sm:$0xff] }
 0x10c   : > { %6835 = vst [vmem:[#allocation4_spill] sm:$0xff] %v5420_v26 }
 0x110   : > { %v581_v42 = vpop.f32.mrf.mxu0  ;;  %v618_v46 = vpop.f32.mrf.mxu2 }
 0x111   : > { %v758_v55 = vpop.f32.mrf.mxu3  ;;  %v721_v56 = vpop.f32.mrf.mxu1 }
 0x112   : > { %v5426_v59 = vadd.f32 %v758_v55, %v618_v46  ;;  %v5428_v14 = vadd.f32 %v721_v56, %v581_v42 }
 0x113   : > { %4701 = vmatmul.msk.bf16.gmra.mxu0 %vm280_vm1, %v5297_v28  ;;  %v5442_v28 = vpack.c.bf16 %v1452_v32, %v1451_v25 }
 0x114   : > { %6837 = vst [vmem:[#allocation6_spill] sm:$0xff] %v5426_v59  ;;  %4718 = vmatmul.msk.bf16.gmra.mxu1 %vm280_vm1, %v5424_v3 }
 0x115   : > { %4667 = vmatmul.msk.bf16.gmra.mxu2 %vm280_vm1, %v5406_v51  ;;  %6839 = vst [vmem:[#allocation8_spill] sm:$0xff] %v5442_v28 }
 0x116   : > { %4684 = vmatmul.msk.bf16.gmra.mxu3 %vm280_vm1, %v5299_v29 }
 0x118   : > { %v583_v4 = vpop.f32.mrf.mxu0  ;;  %v621_v8 = vpop.f32.mrf.mxu2 }
 0x119   : > { %v761_v44 = vpop.f32.mrf.mxu3  ;;  %v723_v52 = vpop.f32.mrf.mxu1 }
 0x11a   : > { %v5438_v22 = vadd.f32 %v761_v44, %v621_v8  ;;  %v5440_v61 = vadd.f32 %v723_v52, %v583_v4  ;;  %v4779_v8 = vld [vmem:[%s6806_s2 + $0x2] sm:$0x3] }
 0x11b   : > { %v2610_v25 = vsel %vm538_vm0, %v4779_v8, 0 }
 0x11c   : > { %6838 = vst [vmem:[#allocation7_spill] sm:$0xff] %v5438_v22  ;;  %2619 = vmatpush.bf16.msra.mxu1 %v2610_v25  ;;  %v1455_v25 = vld [vmem:[#allocation2 + $0xf2] sm:$0xff] }
 0x120   : > { %v586_v39 = vpop.f32.mrf.mxu0  ;;  %v623_v42 = vpop.f32.mrf.mxu2 }
 0x121   : > { %v763_v46 = vpop.f32.mrf.mxu3  ;;  %v726_v55 = vpop.f32.mrf.mxu1 }
 0x122   : > { %v5444_v56 = vadd.f32 %v763_v46, %v623_v42  ;;  %v5446_v59 = vadd.f32 %v726_v55, %v586_v39  ;;  %v1453_v39 = vld [vmem:[#allocation2 + $0xda] sm:$0xff]  ;;  %v1454_v42 = vld [vmem:[#allocation2 + $0xe2] sm:$0xff] }
 0x123   : > { %4702 = vmatmul.msk.bf16.gmra.mxu0 %vm280_vm1, %v5066_v19  ;;  %v5464_v46 = vpack.c.bf16 %v1454_v42, %v1453_v39  ;;  %v1456_v39 = vld [vmem:[#allocation2 + $0xfa] sm:$0xff] }
 0x124   : > { %6840 = vst [vmem:[#allocation9_spill] sm:$0xff] %v5444_v56  ;;  %4719 = vmatmul.msk.bf16.gmra.mxu1 %vm280_vm1, %v5442_v28 }
 0x125   : > { %4668 = vmatmul.msk.bf16.gmra.mxu2 %vm280_vm1, %v5424_v3 }
 0x126   : > { %4685 = vmatmul.msk.bf16.gmra.mxu3 %vm280_vm1, %v5068_v20 }
 0x128   : > { %v588_v29 = vpop.f32.mrf.mxu0  ;;  %v626_v4 = vpop.f32.mrf.mxu2 }
 0x129   : > { %v766_v44 = vpop.f32.mrf.mxu3  ;;  %v728_v52 = vpop.f32.mrf.mxu1 }
 0x12a   : > { %v5460_v19 = vadd.f32 %v766_v44, %v626_v4  ;;  %v5462_v32 = vadd.f32 %v728_v52, %v588_v29 }
 0x12c   : > { %6841 = vst [vmem:[#allocation10_spill] sm:$0xff] %v5460_v19 }
 0x130   : > { %v1325_v20 = vpop.f32.mrf.mxu0  ;;  %v628_v55 = vpop.f32.mrf.mxu2 }
 0x131   : > { %v768_v56 = vpop.f32.mrf.mxu3  ;;  %v1547_v22 = vpop.f32.mrf.mxu1 }
 0x132   : > { %v5466_v26 = vadd.f32 %v768_v56, %v628_v55 }
 0x133   : > { %4703 = vmatmul.msk.bf16.gmra.mxu0 %vm280_vm1, %v5164_v47  ;;  %v694_v47 = vadd.f32 %v5331_v58, %v5329_v57 }
 0x134   : > { %6842 = vst [vmem:[#allocation11_spill] sm:$0xff] %v5466_v26  ;;  %4720 = vmatmul.msk.bf16.gmra.mxu1 %vm280_vm1, %v5464_v46  ;;  %v5481_v26 = vpack.c.bf16 %v1456_v39, %v1455_v25 }
 0x135   : > { %4669 = vmatmul.msk.bf16.gmra.mxu2 %vm280_vm1, %v5442_v28 }
 0x136   : > { %4686 = vmatmul.msk.bf16.gmra.mxu3 %vm280_vm1, %v5166_v48 }
 0x138   : > { %v1327_v29 = vpop.f32.mrf.mxu0  ;;  %v881_v4 = vpop.f32.mrf.mxu2 }
 0x139   : > { %v961_v8 = vadd.f32 %v881_v4, %v5295_v24  ;;  %v1103_v44 = vpop.f32.mrf.mxu3  ;;  %v1549_v52 = vpop.f32.mrf.mxu1 }
 0x13b   : > { %v1183_v56 = vadd.f32 %v1103_v44, %v961_v8  ;;  %v1458_v44 = vld [vmem:[#allocation2 + $0x112] sm:$0xff] }
 0x13d   : > { %v1405_v42 = vadd.f32 %v1325_v20, %v1183_v56 }
 0x13f   : > { %v5479_v55 = vadd.f32 %v1547_v22, %v1405_v42 }
 0x140   : > { %v1330_v19 = vpop.f32.mrf.mxu0  ;;  %v883_v28 = vpop.f32.mrf.mxu2 }
 0x141   : > { %v962_v48 = vadd.f32 %v883_v28, %v694_v47  ;;  %v1105_v3 = vpop.f32.mrf.mxu3  ;;  %v1552_v10 = vpop.f32.mrf.mxu1 }
 0x143   : > { %4704 = vmatmul.msk.bf16.gmra.mxu0 %vm280_vm1, %v5187_v63  ;;  %v1184_v24 = vadd.f32 %v1105_v3, %v962_v48  ;;  %v1457_v3 = vld [vmem:[#allocation2 + $0x10a] sm:$0xff] }
 0x144   : > { %4721 = vmatmul.msk.bf16.gmra.mxu1 %vm280_vm1, %v5481_v26  ;;  %v5496_v39 = vpack.c.bf16 %v1458_v44, %v1457_v3 }
 0x145   : > { %4670 = vmatmul.msk.bf16.gmra.mxu2 %vm280_vm1, %v5464_v46  ;;  %v1406_v57 = vadd.f32 %v1327_v29, %v1184_v24 }
 0x146   : > { %4687 = vmatmul.msk.bf16.gmra.mxu3 %vm280_vm1, %v5189_v0 }
 0x147   : > { %v5491_v58 = vadd.f32 %v1549_v52, %v1406_v57 }
 0x148   : > { %v1332_v22 = vpop.f32.mrf.mxu0  ;;  %v886_v28 = vpop.f32.mrf.mxu2 }
 0x149   : > { %v963_v20 = vadd.f32 %v886_v28, %v5339_v9  ;;  %v1108_v4 = vpop.f32.mrf.mxu3  ;;  %v1554_v8 = vpop.f32.mrf.mxu1 }
 0x14b   : > { %v1185_v63 = vadd.f32 %v1108_v4, %v963_v20  ;;  %v1459_v20 = vld [vmem:[#allocation2 + $0x122] sm:$0xff]  ;;  %v1460_v4 = vld [vmem:[#allocation2 + $0x12a] sm:$0xff] }
 0x14c   : > { %v5512_v44 = vpack.c.bf16 %v1460_v4, %v1459_v20 }
 0x14d   : > { %v1407_v56 = vadd.f32 %v1330_v19, %v1185_v63 }
 0x14f   : > { %v5494_v25 = vadd.f32 %v1552_v10, %v1407_v56 }
 0x150   : > { %v1335_v42 = vpop.f32.mrf.mxu0  ;;  %v888_v47 = vpop.f32.mrf.mxu2 }
 0x151   : > { %v964_v0 = vadd.f32 %v888_v47, %v5350_v18  ;;  %v1110_v29 = vpop.f32.mrf.mxu3  ;;  %v1557_v52 = vpop.f32.mrf.mxu1 }
 0x153   : > { %4705 = vmatmul.msk.bf16.gmra.mxu0 %vm280_vm1, %v5211_v15  ;;  %v1186_v9 = vadd.f32 %v1110_v29, %v964_v0 }
 0x154   : > { %4722 = vmatmul.msk.bf16.gmra.mxu1 %vm280_vm1, %v5496_v39 }
 0x155   : > { %4671 = vmatmul.msk.bf16.gmra.mxu2 %vm280_vm1, %v5481_v26  ;;  %v1408_v10 = vadd.f32 %v1332_v22, %v1186_v9 }
 0x156   : > { %4688 = vmatmul.msk.bf16.gmra.mxu3 %vm280_vm1, %v5213_v16 }
 0x157   : > { %v5507_v19 = vadd.f32 %v1554_v8, %v1408_v10 }
 0x158   : > { %v1337_v48 = vpop.f32.mrf.mxu0  ;;  %v891_v18 = vpop.f32.mrf.mxu2 }
 0x159   : > { %v965_v24 = vadd.f32 %v891_v18, %v5356_v37  ;;  %v1113_v57 = vpop.f32.mrf.mxu3  ;;  %v1559_v28 = vpop.f32.mrf.mxu1  ;;  %v1461_v18 = vld [vmem:[#allocation2 + $0x13a] sm:$0xff] }
 0x15b   : > { %v1187_v15 = vadd.f32 %v1113_v57, %v965_v24  ;;  %v1462_v24 = vld [vmem:[#allocation2 + $0x142] sm:$0xff] }
 0x15c   : > { %v5528_v20 = vpack.c.bf16 %v1462_v24, %v1461_v18 }
 0x15d   : > { %v1409_v63 = vadd.f32 %v1335_v42, %v1187_v15 }
 0x15f   : > { %v5510_v3 = vadd.f32 %v1557_v52, %v1409_v63 }
 0x160   : > { %v1340_v56 = vpop.f32.mrf.mxu0  ;;  %v893_v47 = vpop.f32.mrf.mxu2 }
 0x161   : > { %v966_v16 = vadd.f32 %v893_v47, %v5368_v45  ;;  %v1115_v22 = vpop.f32.mrf.mxu3  ;;  %v1562_v8 = vpop.f32.mrf.mxu1 }
 0x163   : > { %4706 = vmatmul.msk.bf16.gmra.mxu0 %vm280_vm1, %v5235_v33  ;;  %v1188_v37 = vadd.f32 %v1115_v22, %v966_v16  ;;  %v356_v22 = vld [vmem:[%s5035_s10 + $0xf0] sm:$0xff] }
 0x164   : > { %4723 = vmatmul.msk.bf16.gmra.mxu1 %vm280_vm1, %v5512_v44  ;;  %389 = vst.msk [vmem:[#allocation2 + $0x181] sm:$0xff] %vm280_vm1, %v356_v22 }
 0x165   : > { %4672 = vmatmul.msk.bf16.gmra.mxu2 %vm280_vm1, %v5496_v39  ;;  %v1410_v42 = vadd.f32 %v1337_v48, %v1188_v37 }
 0x166   : > { %4689 = vmatmul.msk.bf16.gmra.mxu3 %vm280_vm1, %v5237_v34 }
 0x167   : > { %v5523_v0 = vadd.f32 %v1559_v28, %v1410_v42 }
 0x168   : > { %v1342_v29 = vpop.f32.mrf.mxu0  ;;  %v896_v45 = vpop.f32.mrf.mxu2 }
 0x169   : > { %v967_v52 = vadd.f32 %v896_v45, %v5374_v41  ;;  %v1118_v9 = vpop.f32.mrf.mxu3  ;;  %v1564_v10 = vpop.f32.mrf.mxu1 }
 0x16b   : > { %v1189_v33 = vadd.f32 %v1118_v9, %v967_v52  ;;  %v1463_v52 = vld [vmem:[#allocation2 + $0x152] sm:$0xff]  ;;  %v1464_v9 = vld [vmem:[#allocation2 + $0x15a] sm:$0xff] }
 0x16d   : > { %v1411_v57 = vadd.f32 %v1340_v56, %v1189_v33 }
 0x16f   : > { %v5526_v15 = vadd.f32 %v1562_v8, %v1411_v57  ;;  %v357_v8 = vld [vmem:[%s5035_s10 + $0xf8] sm:$0xff] }
 0x170   : > { %v1345_v34 = vpop.f32.mrf.mxu0  ;;  %v898_v48 = vpop.f32.mrf.mxu2  ;;  %390 = vst.msk [vmem:[#allocation2 + $0x189] sm:$0xff] %vm280_vm1, %v357_v8 }
 0x171   : > { %v968_v28 = vadd.f32 %v898_v48, %v5386_v12  ;;  %v1120_v4 = vpop.f32.mrf.mxu3  ;;  %v1567_v63 = vpop.f32.mrf.mxu1 }
 0x173   : > { %4707 = vmatmul.msk.bf16.gmra.mxu0 %vm280_vm1, %v5259_v53  ;;  %v1190_v41 = vadd.f32 %v1120_v4, %v968_v28 }
 0x174   : > { %4724 = vmatmul.msk.bf16.gmra.mxu1 %vm280_vm1, %v5528_v20 }
 0x175   : > { %4673 = vmatmul.msk.bf16.gmra.mxu2 %vm280_vm1, %v5512_v44  ;;  %v1412_v56 = vadd.f32 %v1342_v29, %v1190_v41 }
 0x176   : > { %4690 = vmatmul.msk.bf16.gmra.mxu3 %vm280_vm1, %v5261_v54 }
 0x177   : > { %v5539_v47 = vadd.f32 %v1564_v10, %v1412_v56  ;;  %v5550_v10 = vpack.c.bf16 %v1464_v9, %v1463_v52  ;;  %v1465_v56 = vld [vmem:[#allocation2 + $0x16a] sm:$0xff] }
 0x178   : > { %v1347_v16 = vpop.f32.mrf.mxu0  ;;  %v901_v12 = vpop.f32.mrf.mxu2 }
 0x179   : > { %v969_v37 = vadd.f32 %v901_v12, %v5392_v38  ;;  %v1123_v53 = vpop.f32.mrf.mxu3  ;;  %v5544_v42 = vpop.f32.mrf.mxu1  ;;  %v1466_v12 = vld [vmem:[#allocation2 + $0x172] sm:$0xff] }
 0x17b   : > { %v1191_v45 = vadd.f32 %v1123_v53, %v969_v37  ;;  %v5568_v37 = vpack.c.bf16 %v1466_v12, %v1465_v56 }
 0x17d   : > { %v1413_v54 = vadd.f32 %v1345_v34, %v1191_v45 }
 0x17f   : > { %v5548_v29 = vadd.f32 %v1567_v63, %v1413_v54 }
 0x180   : > { %v1350_v33 = vpop.f32.mrf.mxu0  ;;  %v903_v18 = vpop.f32.mrf.mxu2 }
 0x181   : > { %v970_v24 = vadd.f32 %v903_v18, %v5404_v50  ;;  %v1125_v38 = vpop.f32.mrf.mxu3  ;;  %v1572_v57 = vpop.f32.mrf.mxu1 }
 0x183   : > { %4708 = vmatmul.msk.bf16.gmra.mxu0 %vm280_vm1, %v5275_v5  ;;  %v1192_v48 = vadd.f32 %v1125_v38, %v970_v24  ;;  %v1245_v38 = vld [vmem:[#allocation2 + $0x181] sm:$0xff] }
 0x184   : > { %4725 = vmatmul.msk.bf16.gmra.mxu1 %vm280_vm1, %v5550_v10 }
 0x185   : > { %4674 = vmatmul.msk.bf16.gmra.mxu2 %vm280_vm1, %v5528_v20  ;;  %v5561_v34 = vadd.f32 %v1347_v16, %v1192_v48  ;;  %v1467_v48 = vld [vmem:[#allocation2 + $0x182] sm:$0xff] }
 0x186   : > { %4691 = vmatmul.msk.bf16.gmra.mxu3 %vm280_vm1, %v5277_v6 }
 0x188   : > { %v1352_v28 = vpop.f32.mrf.mxu0  ;;  %v906_v4 = vpop.f32.mrf.mxu2 }
 0x189   : > { %v971_v50 = vadd.f32 %v906_v4, %v5410_v21  ;;  %v1128_v63 = vpop.f32.mrf.mxu3  ;;  %v5564_v41 = vpop.f32.mrf.mxu1  ;;  %v1468_v4 = vld [vmem:[#allocation2 + $0x18a] sm:$0xff] }
 0x18b   : > { %v1193_v5 = vadd.f32 %v1128_v63, %v971_v50  ;;  %v1023_v63 = vld [vmem:[#allocation2 + $0x180] sm:$0xff] }
 0x18d   : > { %v1415_v22 = vadd.f32 %v1350_v33, %v1193_v5  ;;  %v1024_v5 = vld [vmem:[#allocation2 + $0x188] sm:$0xff] }
 0x18f   : > { %v5566_v8 = vadd.f32 %v1572_v57, %v1415_v22  ;;  %v1246_v57 = vld [vmem:[#allocation2 + $0x189] sm:$0xff] }
 0x190   : > { %v1355_v53 = vpop.f32.mrf.mxu0  ;;  %v908_v45 = vpop.f32.mrf.mxu2 }
 0x191   : > { %v972_v6 = vadd.f32 %v908_v45, %v5422_v27  ;;  %v1130_v16 = vpop.f32.mrf.mxu3  ;;  %v1577_v52 = vpop.f32.mrf.mxu1 }
 0x193   : > { %4709 = vmatmul.msk.bf16.gmra.mxu0 %vm280_vm1, %v5304_v35  ;;  %v1194_v21 = vadd.f32 %v1130_v16, %v972_v6  ;;  %v5591_v6 = vpack.c.bf16 %v1024_v5, %v1023_v63 }
 0x194   : > { %4726 = vmatmul.msk.bf16.gmra.mxu1 %vm280_vm1, %v5568_v37 }
 0x195   : > { %4675 = vmatmul.msk.bf16.gmra.mxu2 %vm280_vm1, %v5550_v10  ;;  %v5579_v9 = vadd.f32 %v1352_v28, %v1194_v21  ;;  %v5588_v28 = vpack.c.bf16 %v1468_v4, %v1467_v48  ;;  %v1661_v48 = vld [vmem:[#allocation2 + $0x38] sm:$0xff] }
 0x196   : > { %4692 = vmatmul.msk.bf16.gmra.mxu3 %vm280_vm1, %v5306_v36  ;;  %v5586_v36 = vpack.c.bf16 %v1246_v57, %v1245_v38  ;;  %v1660_v57 = vld [vmem:[#allocation2 + $0x30] sm:$0xff] }
 0x197   : > { %v1882_v4 = vld [vmem:[#allocation2 + $0x31] sm:$0xff] }
 0x198   : > { %v1357_v54 = vpop.f32.mrf.mxu0  ;;  %v911_v33 = vpop.f32.mrf.mxu2 }
 0x199   : > { %v973_v27 = vadd.f32 %v911_v33, %v5428_v14  ;;  %v1133_v18 = vpop.f32.mrf.mxu3  ;;  %v5582_v24 = vpop.f32.mrf.mxu1 }
 0x19a   : > { %6843 = vst [vmem:[#allocation12_spill] sm:$0xff] %v5582_v24 }
 0x19b   : > { %v1195_v35 = vadd.f32 %v1133_v18, %v973_v27 }
 0x19d   : > { %v1417_v50 = vadd.f32 %v1355_v53, %v1195_v35 }
 0x19f   : > { %v5584_v56 = vadd.f32 %v1577_v52, %v1417_v50  ;;  %v1883_v50 = vld [vmem:[#allocation2 + $0x39] sm:$0xff] }
 0x1a0   : > { %v1360_v12 = vpop.f32.mrf.mxu0  ;;  %v913_v22 = vpop.f32.mrf.mxu2 }
 0x1a1   : > { %v974_v14 = vadd.f32 %v913_v22, %v5440_v61  ;;  %v1135_v45 = vpop.f32.mrf.mxu3  ;;  %v1582_v16 = vpop.f32.mrf.mxu1 }
 0x1a3   : > { %4710 = vmatmul.msk.bf16.gmra.mxu0 %vm280_vm1, %v5586_v36  ;;  %v1196_v53 = vadd.f32 %v1135_v45, %v974_v14  ;;  %v1692_v45 = vpack.c.bf16 %v1661_v48, %v1660_v57  ;;  %v1662_v57 = vld [vmem:[#allocation2 + $0x48] sm:$0xff]  ;;  %v1663_v48 = vld [vmem:[#allocation2 + $0x50] sm:$0xff] }
 0x1a4   : > { %4727 = vmatmul.msk.bf16.gmra.mxu1 %vm280_vm1, %v5588_v28 }
 0x1a5   : > { %4676 = vmatmul.msk.bf16.gmra.mxu2 %vm280_vm1, %v5568_v37  ;;  %v5601_v52 = vadd.f32 %v1357_v54, %v1196_v53  ;;  %v1914_v53 = vpack.c.bf16 %v1883_v50, %v1882_v4  ;;  %v1884_v4 = vld [vmem:[#allocation2 + $0x49] sm:$0xff]  ;;  %v734_v50 = vadd.f32 %v5335_v2, %v5333_v1 }
 0x1a6   : > { %4693 = vmatmul.msk.bf16.gmra.mxu3 %vm280_vm1, %v5591_v6 }
 0x1a8   : > { %v1362_v61 = vpop.f32.mrf.mxu0  ;;  %v916_v21 = vpop.f32.mrf.mxu2 }
 0x1a9   : > { %v975_v33 = vadd.f32 %v916_v21, %v5446_v59  ;;  %v1138_v27 = vpop.f32.mrf.mxu3  ;;  %v5604_v18 = vpop.f32.mrf.mxu1 }
 0x1ab   : > { %v1197_v35 = vadd.f32 %v1138_v27, %v975_v33 }
 0x1ad   : > { %v1419_v38 = vadd.f32 %v1360_v12, %v1197_v35 }
 0x1af   : > { %v5606_v63 = vadd.f32 %v1582_v16, %v1419_v38 }
 0x1b0   : > { %v1365_v5 = vpop.f32.mrf.mxu0  ;;  %v918_v22 = vpop.f32.mrf.mxu2 }
 0x1b1   : > { %v976_v54 = vadd.f32 %v918_v22, %v5462_v32  ;;  %v1140_v14 = vpop.f32.mrf.mxu3  ;;  %v1587_v24 = vpop.f32.mrf.mxu1 }
 0x1b3   : > { %4763 = vmatmul.msk.bf16.vlgmr.msra.gmra.mxu0 %vm280_vm1, %v5337_v7  ;;  %v1198_v59 = vadd.f32 %v1140_v14, %v976_v54  ;;  %v1885_v7 = vld [vmem:[#allocation2 + $0x51] sm:$0xff] }
 0x1b5   : > { %4729 = vmatmul.msk.bf16.vlgmr.msra.gmra.mxu2 %vm280_vm1, %v1692_v45  ;;  %v5613_v12 = vadd.f32 %v1362_v61, %v1198_v59 }
 0x1b6   : > { %4746 = vmatmul.msk.bf16.vlgmr.msra.gmra.mxu3 %vm280_vm1, %v1914_v53  ;;  %v1693_v53 = vpack.c.bf16 %v1663_v48, %v1662_v57  ;;  %v1664_v57 = vld [vmem:[#allocation2 + $0x60] sm:$0xff]  ;;  %v1665_v48 = vld [vmem:[#allocation2 + $0x68] sm:$0xff] }
 0x1b8   : > { %v1367_v16 = vpop.f32.mrf.mxu0  ;;  %v921_v21 = vpop.f32.mrf.mxu2 }
 0x1b9   : > { %v977_v33 = vadd.f32 %v921_v21, %v5309_v40  ;;  %v1143_v27 = vpop.f32.mrf.mxu3  ;;  %v5616_v32 = vpop.f32.mrf.mxu1  ;;  %v1915_v40 = vpack.c.bf16 %v1885_v7, %v1884_v4  ;;  %v1886_v4 = vld [vmem:[#allocation2 + $0x61] sm:$0xff] }
 0x1bb   : > { %v1199_v35 = vadd.f32 %v1143_v27, %v977_v33 }
 0x1bd   : > { %v1421_v38 = vadd.f32 %v1365_v5, %v1199_v35 }
 0x1bf   : > { %v5620_v22 = vadd.f32 %v1587_v24, %v1421_v38 }
 0x1c0   : > { %v1370_v61 = vpop.f32.mrf.mxu0  ;;  %v923_v54 = vpop.f32.mrf.mxu2 }
 0x1c1   : > { %v978_v14 = vadd.f32 %v923_v54, %v734_v50  ;;  %v1145_v45 = vpop.f32.mrf.mxu3  ;;  %v1592_v59 = vpop.f32.mrf.mxu1 }
 0x1c3   : > { %4764 = vmatmul.msk.bf16.gmra.mxu0 %vm280_vm1, %v5352_v23  ;;  %v1200_v5 = vadd.f32 %v1145_v45, %v978_v14  ;;  %v1887_v23 = vld [vmem:[#allocation2 + $0x69] sm:$0xff]  ;;  %v1694_v45 = vpack.c.bf16 %v1665_v48, %v1664_v57  ;;  %v1667_v57 = vld [vmem:[#allocation2 + $0x80] sm:$0xff] }
 0x1c4   : > { %v1888_v48 = vld [vmem:[#allocation2 + $0x79] sm:$0xff] }
 0x1c5   : > { %4730 = vmatmul.msk.bf16.gmra.mxu2 %vm280_vm1, %v1693_v53  ;;  %v5626_v21 = vadd.f32 %v1367_v16, %v1200_v5  ;;  %v1916_v53 = vpack.c.bf16 %v1887_v23, %v1886_v4 }
 0x1c6   : > { %4747 = vmatmul.msk.bf16.gmra.mxu3 %vm280_vm1, %v1915_v40 }
 0x1c8   : > { %v1372_v1 = vpop.f32.mrf.mxu0  ;;  %v926_v2 = vpop.f32.mrf.mxu2 }
 0x1c9   : > { %v979_v24 = vadd.f32 %v926_v2, %v5348_v17  ;;  %v1148_v33 = vpop.f32.mrf.mxu3  ;;  %v5629_v27 = vpop.f32.mrf.mxu1 }
 0x1cb   : > { %v1201_v35 = vadd.f32 %v1148_v33, %v979_v24 }
 0x1cd   : > { %v1423_v38 = vadd.f32 %v1370_v61, %v1201_v35 }
 0x1cf   : > { %v5631_v7 = vadd.f32 %v1592_v59, %v1423_v38  ;;  %v1666_v38 = vld [vmem:[#allocation2 + $0x78] sm:$0xff] }
 0x1d0   : > { %v1375_v50 = vpop.f32.mrf.mxu0  ;;  %v928_v54 = vpop.f32.mrf.mxu2 }
 0x1d1   : > { %v980_v16 = vadd.f32 %v928_v54, %v5354_v30  ;;  %v1150_v14 = vpop.f32.mrf.mxu3  ;;  %v1597_v40 = vpop.f32.mrf.mxu1 }
 0x1d3   : > { %4765 = vmatmul.msk.bf16.gmra.mxu0 %vm280_vm1, %v5370_v13  ;;  %v1202_v17 = vadd.f32 %v1150_v14, %v980_v16  ;;  %v1889_v13 = vld [vmem:[#allocation2 + $0x81] sm:$0xff]  ;;  %v1695_v14 = vpack.c.bf16 %v1667_v57, %v1666_v38  ;;  %v1669_v38 = vld [vmem:[#allocation2 + $0x98] sm:$0xff] }
 0x1d4   : > { %v1890_v57 = vld [vmem:[#allocation2 + $0x91] sm:$0xff] }
 0x1d5   : > { %4731 = vmatmul.msk.bf16.gmra.mxu2 %vm280_vm1, %v1694_v45  ;;  %v5638_v61 = vadd.f32 %v1372_v1, %v1202_v17  ;;  %v1917_v45 = vpack.c.bf16 %v1889_v13, %v1888_v48 }
 0x1d6   : > { %4748 = vmatmul.msk.bf16.gmra.mxu3 %vm280_vm1, %v1916_v53 }
 0x1d8   : > { %v1377_v59 = vpop.f32.mrf.mxu0  ;;  %v931_v5 = vpop.f32.mrf.mxu2 }
 0x1d9   : > { %v981_v2 = vadd.f32 %v931_v5, %v5366_v43  ;;  %v1153_v24 = vpop.f32.mrf.mxu3  ;;  %v5641_v30 = vpop.f32.mrf.mxu1 }
 0x1db   : > { %v1203_v33 = vadd.f32 %v1153_v24, %v981_v2 }
 0x1dd   : > { %v1425_v35 = vadd.f32 %v1375_v50, %v1203_v33 }
 0x1df   : > { %v5643_v4 = vadd.f32 %v1597_v40, %v1425_v35  ;;  %v1668_v35 = vld [vmem:[#allocation2 + $0x90] sm:$0xff] }
 0x1e0   : > { %v1380_v23 = vpop.f32.mrf.mxu0  ;;  %v933_v54 = vpop.f32.mrf.mxu2 }
 0x1e1   : > { %v982_v1 = vadd.f32 %v933_v54, %v5372_v60  ;;  %v1155_v16 = vpop.f32.mrf.mxu3  ;;  %v1602_v53 = vpop.f32.mrf.mxu1 }
 0x1e3   : > { %4766 = vmatmul.msk.bf16.gmra.mxu0 %vm280_vm1, %v5388_v31  ;;  %v1204_v43 = vadd.f32 %v1155_v16, %v982_v1  ;;  %v1891_v31 = vld [vmem:[#allocation2 + $0x99] sm:$0xff]  ;;  %v1696_v16 = vpack.c.bf16 %v1669_v38, %v1668_v35  ;;  %v1671_v35 = vld [vmem:[#allocation2 + $0xb0] sm:$0xff] }
 0x1e4   : > { %v1892_v38 = vld [vmem:[#allocation2 + $0xa9] sm:$0xff] }
 0x1e5   : > { %4732 = vmatmul.msk.bf16.gmra.mxu2 %vm280_vm1, %v1695_v14  ;;  %v5650_v50 = vadd.f32 %v1377_v59, %v1204_v43  ;;  %v1918_v14 = vpack.c.bf16 %v1891_v31, %v1890_v57 }
 0x1e6   : > { %4749 = vmatmul.msk.bf16.gmra.mxu3 %vm280_vm1, %v1917_v45 }
 0x1e8   : > { %v1382_v40 = vpop.f32.mrf.mxu0  ;;  %v936_v17 = vpop.f32.mrf.mxu2 }
 0x1e9   : > { %v983_v5 = vadd.f32 %v936_v17, %v5384_v11  ;;  %v1158_v2 = vpop.f32.mrf.mxu3  ;;  %v5653_v60 = vpop.f32.mrf.mxu1 }
 0x1ea   : > { %6844 = vst [vmem:[#allocation13_spill] sm:$0xff] %v5653_v60 }
 0x1eb   : > { %v1205_v24 = vadd.f32 %v1158_v2, %v983_v5 }
 0x1ed   : > { %v1427_v33 = vadd.f32 %v1380_v23, %v1205_v24 }
 0x1ef   : > { %v5655_v48 = vadd.f32 %v1602_v53, %v1427_v33  ;;  %v1670_v33 = vld [vmem:[#allocation2 + $0xa8] sm:$0xff] }
 0x1f0   : > { %v1385_v13 = vpop.f32.mrf.mxu0  ;;  %v938_v54 = vpop.f32.mrf.mxu2 }
 0x1f1   : > { %v984_v59 = vadd.f32 %v938_v54, %v5390_v62  ;;  %v1160_v1 = vpop.f32.mrf.mxu3  ;;  %v1607_v45 = vpop.f32.mrf.mxu1 }
 0x1f3   : > { %4767 = vmatmul.msk.bf16.gmra.mxu0 %vm280_vm1, %v5406_v51  ;;  %v1206_v11 = vadd.f32 %v1160_v1, %v984_v59  ;;  %v1893_v51 = vld [vmem:[#allocation2 + $0xb1] sm:$0xff] }
 0x1f4   : > { %v6847_v59 = vld [vmem:[#allocation3_spill] sm:$0xff] }
 0x1f5   : > { %4733 = vmatmul.msk.bf16.gmra.mxu2 %vm280_vm1, %v1696_v16  ;;  %v5662_v23 = vadd.f32 %v1382_v40, %v1206_v11  ;;  %v1697_v16 = vpack.c.bf16 %v1671_v35, %v1670_v33  ;;  %v6848_v11 = vld [vmem:[#allocation5_spill] sm:$0xff] }
 0x1f6   : > { %4750 = vmatmul.msk.bf16.gmra.mxu3 %vm280_vm1, %v1918_v14  ;;  %v1919_v14 = vpack.c.bf16 %v1893_v51, %v1892_v38  ;;  %v1672_v33 = vld [vmem:[#allocation2 + $0xc0] sm:$0xff]  ;;  %v1673_v38 = vld [vmem:[#allocation2 + $0xc8] sm:$0xff] }
 0x1f7   : > { %v1894_v51 = vld [vmem:[#allocation2 + $0xc1] sm:$0xff] }
 0x1f8   : > { %v1387_v53 = vpop.f32.mrf.mxu0  ;;  %v941_v43 = vpop.f32.mrf.mxu2 }
 0x1f9   : > { %v985_v17 = vadd.f32 %v941_v43, %v5402_v49  ;;  %v1163_v5 = vpop.f32.mrf.mxu3  ;;  %v5665_v62 = vpop.f32.mrf.mxu1 }
 0x1fa   : > { %6845 = vst [vmem:[#allocation14_spill] sm:$0xff] %v5665_v62  ;;  %v1698_v62 = vpack.c.bf16 %v1673_v38, %v1672_v33  ;;  %v1674_v33 = vld [vmem:[#allocation2 + $0xd8] sm:$0xff]  ;;  %v1675_v38 = vld [vmem:[#allocation2 + $0xe0] sm:$0xff] }
 0x1fb   : > { %v1207_v2 = vadd.f32 %v1163_v5, %v985_v17  ;;  %v6850_v5 = vld [vmem:[#allocation4_spill] sm:$0xff] }
 0x1fd   : > { %v1429_v24 = vadd.f32 %v1385_v13, %v1207_v2 }
 0x1ff   : > { %v5667_v57 = vadd.f32 %v1607_v45, %v1429_v24 }
 0x200   : > { %v1390_v31 = vpop.f32.mrf.mxu0  ;;  %v943_v54 = vpop.f32.mrf.mxu2 }
 0x201   : > { %6846 = vst [vmem:[#allocation15_spill] sm:$0xff] %v5667_v57  ;;  %v986_v40 = vadd.f32 %v943_v54, %v6847_v59  ;;  %v1165_v1 = vpop.f32.mrf.mxu3  ;;  %v1612_v43 = vpop.f32.mrf.mxu1  ;;  %v6854_v57 = vld [vmem:[#allocation8_spill] sm:$0xff] }
 0x203   : > { %4768 = vmatmul.msk.bf16.gmra.mxu0 %vm280_vm1, %v6848_v11  ;;  %v1208_v49 = vadd.f32 %v1165_v1, %v986_v40  ;;  %v1895_v40 = vld [vmem:[#allocation2 + $0xc9] sm:$0xff] }
 0x205   : > { %4734 = vmatmul.msk.bf16.gmra.mxu2 %vm280_vm1, %v1697_v16  ;;  %v5674_v13 = vadd.f32 %v1387_v53, %v1208_v49 }
 0x206   : > { %4751 = vmatmul.msk.bf16.gmra.mxu3 %vm280_vm1, %v1919_v14  ;;  %v6853_v14 = vld [vmem:[#allocation6_spill] sm:$0xff] }
 0x207   : > { %6849 = vst [vmem:[#allocation3_spill] sm:$0xff] %v5674_v13  ;;  %v1920_v13 = vpack.c.bf16 %v1895_v40, %v1894_v51  ;;  %v1896_v51 = vld [vmem:[#allocation2 + $0xd9] sm:$0xff]  ;;  %v1897_v40 = vld [vmem:[#allocation2 + $0xe1] sm:$0xff] }
 0x208   : > { %v1392_v45 = vpop.f32.mrf.mxu0  ;;  %v946_v17 = vpop.f32.mrf.mxu2 }
 0x209   : > { %v987_v2 = vadd.f32 %v946_v17, %v6850_v5  ;;  %v1168_v24 = vpop.f32.mrf.mxu3  ;;  %v5677_v35 = vpop.f32.mrf.mxu1 }
 0x20a   : > { %6851 = vst [vmem:[#allocation5_spill] sm:$0xff] %v5677_v35 }
 0x20b   : > { %v1209_v54 = vadd.f32 %v1168_v24, %v987_v2  ;;  %v6856_v24 = vld [vmem:[#allocation7_spill] sm:$0xff] }
 0x20d   : > { %v1431_v59 = vadd.f32 %v1390_v31, %v1209_v54 }
 0x20f   : > { %v5679_v1 = vadd.f32 %v1612_v43, %v1431_v59 }
 0x210   : > { %v1395_v16 = vpop.f32.mrf.mxu0  ;;  %v948_v11 = vpop.f32.mrf.mxu2 }
 0x211   : > { %6852 = vst [vmem:[#allocation4_spill] sm:$0xff] %v5679_v1  ;;  %v988_v53 = vadd.f32 %v948_v11, %v6853_v14  ;;  %v1170_v49 = vpop.f32.mrf.mxu3  ;;  %v1617_v5 = vpop.f32.mrf.mxu1  ;;  %v1921_v1 = vpack.c.bf16 %v1897_v40, %v1896_v51  ;;  %v4829_v51 = vld [vmem:[%s6806_s2 + $0x6] sm:$0x3]  ;;  %v4846_v40 = vld [vmem:[%s6806_s2 + $0x8] sm:$0x3] }
 0x213   : > { %4769 = vmatmul.msk.bf16.gmra.mxu0 %vm280_vm1, %v6854_v57  ;;  %v1210_v17 = vadd.f32 %v1170_v49, %v988_v53  ;;  %v2511_v49 = vld [vmem:[#allocation2 + $0x1] sm:$0xff] }
 0x215   : > { %4735 = vmatmul.msk.bf16.gmra.mxu2 %vm280_vm1, %v1698_v62  ;;  %v5686_v31 = vadd.f32 %v1392_v45, %v1210_v17  ;;  %v6857_v45 = vld [vmem:[#allocation9_spill] sm:$0xff] }
 0x216   : > { %4752 = vmatmul.msk.bf16.gmra.mxu3 %vm280_vm1, %v1920_v13  ;;  %v2512_v13 = vld [vmem:[#allocation2 + $0x9] sm:$0xff] }
 0x217   : > { %6855 = vst [vmem:[#allocation6_spill] sm:$0xff] %v5686_v31  ;;  %v1699_v31 = vpack.c.bf16 %v1675_v38, %v1674_v33  ;;  %v2543_v60 = vpack.c.bf16 %v2512_v13, %v2511_v49  ;;  %v1676_v38 = vld [vmem:[#allocation2 + $0xf0] sm:$0xff]  ;;  %v1899_v13 = vld [vmem:[#allocation2 + $0xf9] sm:$0xff] }
 0x218   : > { %v1397_v43 = vpop.f32.mrf.mxu0  ;;  %v951_v2 = vpop.f32.mrf.mxu2  ;;  %v1898_v49 = vld [vmem:[#allocation2 + $0xf1] sm:$0xff] }
 0x219   : > { %v989_v54 = vadd.f32 %v951_v2, %v6856_v24  ;;  %v1173_v59 = vpop.f32.mrf.mxu3  ;;  %v5692_v2 = vpop.f32.mrf.mxu1  ;;  %4780 = vmatmul.msk.bf16.vlgmr.msra.gmra.mxu1 %vm280_vm1, %v2543_v60  ;;  %v2510_v24 = vld [vmem:[%s6806_s2] sm:$0x3] }
 0x21b   : > { %v1211_v11 = vadd.f32 %v1173_v59, %v989_v54  ;;  %v4812_v54 = vld [vmem:[%s6806_s2 + $0x4] sm:$0x3]  ;;  %v2750_v59 = vsel %vm538_vm0, %v2510_v24, 0 }
 0x21c   : > { %2759 = vmatpush.bf16.msrb.mxu2 %v2750_v59 }
 0x21d   : > { %v1433_v14 = vadd.f32 %v1395_v16, %v1211_v11 }
 0x21f   : > { %v5689_v57 = vadd.f32 %v1617_v5, %v1433_v14 }
 0x220   : > { %v1400_v53 = vpop.f32.mrf.mxu0  ;;  %v953_v62 = vpop.f32.mrf.mxu2 }
 0x221   : > { %v990_v17 = vadd.f32 %v953_v62, %v6857_v45  ;;  %v1175_v35 = vpop.f32.mrf.mxu3  ;;  %v1622_v14 = vpop.f32.mrf.mxu1  ;;  %v1677_v62 = vld [vmem:[#allocation2 + $0xf8] sm:$0xff]  ;;  %v3162_v45 = vsel %vm538_vm0, %v4829_v51, 0 }
 0x222   : > { %3171 = vmatpush.bf16.msrb.mxu0 %v3162_v45  ;;  %v1901_v45 = vld [vmem:[#allocation2 + $0x111] sm:$0xff] }
 0x223   : > { %4770 = vmatmul.msk.bf16.gmra.mxu0 %vm280_vm1, %v5464_v46  ;;  %v1212_v16 = vadd.f32 %v1175_v35, %v990_v17  ;;  %v2940_v46 = vsel %vm538_vm0, %v4812_v54, 0  ;;  %v3384_v17 = vsel %vm538_vm0, %v4846_v40, 0  ;;  %v6859_v54 = vld [vmem:[#allocation11_spill] sm:$0xff] }
 0x224   : > { %2949 = vmatpush.bf16.msrb.mxu3 %v2940_v46  ;;  %3393 = vmatpush.bf16.msrb.mxu1 %v3384_v17 }
 0x225   : > { %4736 = vmatmul.msk.bf16.gmra.mxu2 %vm280_vm1, %v1699_v31  ;;  %v5699_v5 = vadd.f32 %v1397_v43, %v1212_v16  ;;  %v6858_v31 = vld [vmem:[#allocation10_spill] sm:$0xff] }
 0x226   : > { %4753 = vmatmul.msk.bf16.gmra.mxu3 %vm280_vm1, %v1921_v1 }
 0x228   : > { %v1402_v60 = vpop.f32.mrf.mxu0  ;;  %v956_v35 = vpop.f32.mrf.mxu2 }
 0x229   : > { %v991_v1 = vadd.f32 %v956_v35, %v6858_v31  ;;  %v1178_v43 = vpop.f32.mrf.mxu3  ;;  %v1700_v35 = vpack.c.bf16 %v1677_v62, %v1676_v38  ;;  %v1922_v31 = vpack.c.bf16 %v1899_v13, %v1898_v49  ;;  %v5731_v38 = vld [vmem:[%s6807_s3] ss:$0 sm:$0xff]  ;;  %v1678_v49 = vld [vmem:[#allocation2 + $0x108] sm:$0xff] }
 0x22a   : > { %v1900_v13 = vld [vmem:[#allocation2 + $0x109] sm:$0xff] }
 0x22b   : > { %v1213_v11 = vadd.f32 %v1178_v43, %v991_v1 }
 0x22d   : > { %v1435_v33 = vadd.f32 %v1400_v53, %v1213_v11 }
 0x22f   : > { %v5718_v16 = vadd.f32 %v1622_v14, %v1435_v33 }
 0x230   : > { %v2214_v53 = vpop.f32.mrf.mxu0  ;;  %v958_v24 = vpop.f32.mrf.mxu2 }
 0x231   : > { %v992_v59 = vadd.f32 %v958_v24, %v6859_v54  ;;  %v1180_v46 = vpop.f32.mrf.mxu3 }
 0x233   : > { %4771 = vmatmul.msk.bf16.gmra.mxu0 %vm280_vm1, %v5481_v26  ;;  %v1214_v1 = vadd.f32 %v1180_v46, %v992_v59  ;;  %v5736_v26 = vld [vmem:[%s6808_s4] ss:$0 sm:$0xff] }
 0x235   : > { %4737 = vmatmul.msk.bf16.gmra.mxu2 %vm280_vm1, %v1700_v35  ;;  %v5725_v43 = vadd.f32 %v1402_v60, %v1214_v1  ;;  %v1679_v60 = vld [vmem:[#allocation2 + $0x110] sm:$0xff] }
 0x236   : > { %4754 = vmatmul.msk.bf16.gmra.mxu3 %vm280_vm1, %v1922_v31  ;;  %v1701_v35 = vpack.c.bf16 %v1679_v60, %v1678_v49 }
 0x238   : > { %v2216_v11 = vpop.f32.mrf.mxu0  ;;  %v1770_v14 = vpop.f32.mrf.mxu2 }
 0x239   : > { %v1850_v33 = vadd.f32 %v1770_v14, %v5479_v55  ;;  %v1992_v51 = vpop.f32.mrf.mxu3 }
 0x23b   : > { %v2072_v40 = vadd.f32 %v1992_v51, %v1850_v33 }
 0x23d   : > { %v2294_v62 = vadd.f32 %v2214_v53, %v2072_v40  ;;  %v1923_v53 = vpack.c.bf16 %v1901_v45, %v1900_v13  ;;  %v1680_v45 = vld [vmem:[#allocation2 + $0x120] sm:$0xff] }
 0x23f   : > { %v2330_v17 = vmul.f32 %v5731_v38, %v2294_v62 }
 0x240   : > { %v2219_v55 = vpop.f32.mrf.mxu0  ;;  %v1772_v24 = vpop.f32.mrf.mxu2 }
 0x241   : > { %v2366_v54 = vadd.f32 %v5736_v26, %v2330_v17  ;;  %v1851_v59 = vadd.f32 %v1772_v24, %v5491_v58  ;;  %v1994_v46 = vpop.f32.mrf.mxu3  ;;  %v1902_v17 = vld [vmem:[#allocation2 + $0x121] sm:$0xff]  ;;  %v1903_v24 = vld [vmem:[#allocation2 + $0x129] sm:$0xff] }
 0x243   : > { %v2398_v31 = vmax.f32 %v2366_v54, 0.0  ;;  %4772 = vmatmul.msk.bf16.gmra.mxu0 %vm280_vm1, %v5496_v39  ;;  %v2073_v1 = vadd.f32 %v1994_v46, %v1851_v59 }
 0x245   : > { %2430 = vst.msk [vmem:[#allocation2 + $0x19] sm:$0xff] %vm280_vm1, %v2398_v31  ;;  %v2295_v14 = vadd.f32 %v2216_v11, %v2073_v1  ;;  %4738 = vmatmul.msk.bf16.gmra.mxu2 %vm280_vm1, %v1701_v35  ;;  %v1681_v11 = vld [vmem:[#allocation2 + $0x128] sm:$0xff]  ;;  %v1924_v1 = vpack.c.bf16 %v1903_v24, %v1902_v17  ;;  %v1682_v17 = vld [vmem:[#allocation2 + $0x138] sm:$0xff]  ;;  %v1683_v24 = vld [vmem:[#allocation2 + $0x140] sm:$0xff] }
 0x246   : > { %4755 = vmatmul.msk.bf16.gmra.mxu3 %vm280_vm1, %v1923_v53 }
 0x247   : > { %v2331_v33 = vmul.f32 %v5731_v38, %v2295_v14 }
 0x248   : > { %v2221_v51 = vpop.f32.mrf.mxu0  ;;  %v1775_v40 = vpop.f32.mrf.mxu2 }
 0x249   : > { %v2367_v58 = vadd.f32 %v5736_v26, %v2331_v33  ;;  %v1852_v62 = vadd.f32 %v1775_v40, %v5494_v25  ;;  %v1997_v49 = vpop.f32.mrf.mxu3  ;;  %v1702_v25 = vpack.c.bf16 %v1681_v11, %v1680_v45 }
 0x24b   : > { %v2399_v60 = vmax.f32 %v2367_v58, 0.0  ;;  %v2074_v13 = vadd.f32 %v1997_v49, %v1852_v62 }
 0x24c   : > { %v2513_v33 = vld [vmem:[#allocation2 + $0x19] sm:$0xff] }
 0x24d   : > { %2431 = vst.msk [vmem:[#allocation2 + $0x21] sm:$0xff] %vm280_vm1, %v2399_v60  ;;  %v2296_v39 = vadd.f32 %v2219_v55, %v2074_v13 }
 0x24f   : > { %v2332_v54 = vmul.f32 %v5731_v38, %v2296_v39 }
 0x250   : > { %v2224_v59 = vpop.f32.mrf.mxu0  ;;  %v1777_v46 = vpop.f32.mrf.mxu2 }
 0x251   : > { %v2368_v35 = vadd.f32 %v5736_v26, %v2332_v54  ;;  %v1853_v53 = vadd.f32 %v1777_v46, %v5507_v19  ;;  %v1999_v31 = vpop.f32.mrf.mxu3  ;;  %v1904_v54 = vld [vmem:[#allocation2 + $0x139] sm:$0xff]  ;;  %v1905_v46 = vld [vmem:[#allocation2 + $0x141] sm:$0xff] }
 0x253   : > { %v2400_v14 = vmax.f32 %v2368_v35, 0.0  ;;  %4773 = vmatmul.msk.bf16.gmra.mxu0 %vm280_vm1, %v5512_v44  ;;  %v2075_v55 = vadd.f32 %v1999_v31, %v1853_v53 }
 0x254   : > { %v2514_v40 = vld [vmem:[#allocation2 + $0x21] sm:$0xff] }
 0x255   : > { %2432 = vst.msk [vmem:[#allocation2 + $0x31] sm:$0xff] %vm280_vm1, %v2400_v14  ;;  %v2297_v58 = vadd.f32 %v2221_v51, %v2075_v55  ;;  %4739 = vmatmul.msk.bf16.gmra.mxu2 %vm280_vm1, %v1702_v25  ;;  %v2544_v62 = vpack.c.bf16 %v2514_v40, %v2513_v33  ;;  %v1925_v55 = vpack.c.bf16 %v1905_v46, %v1904_v54  ;;  %v1907_v54 = vld [vmem:[#allocation2 + $0x159] sm:$0xff] }
 0x256   : > { %4756 = vmatmul.msk.bf16.gmra.mxu3 %vm280_vm1, %v1924_v1 }
 0x257   : > { %v2333_v19 = vmul.f32 %v5731_v38, %v2297_v58  ;;  %4781 = vmatmul.msk.bf16.gmra.mxu1 %vm280_vm1, %v2544_v62 }
 0x258   : > { %v2226_v49 = vpop.f32.mrf.mxu0  ;;  %v1780_v60 = vpop.f32.mrf.mxu2 }
 0x259   : > { %v2369_v13 = vadd.f32 %v5736_v26, %v2333_v19  ;;  %v1854_v44 = vadd.f32 %v1780_v60, %v5510_v3  ;;  %v2002_v39 = vpop.f32.mrf.mxu3  ;;  %v1703_v3 = vpack.c.bf16 %v1683_v24, %v1682_v17  ;;  %v1685_v17 = vld [vmem:[#allocation2 + $0x158] sm:$0xff] }
 0x25a   : > { %v1906_v24 = vld [vmem:[#allocation2 + $0x151] sm:$0xff] }
 0x25b   : > { %v2401_v45 = vmax.f32 %v2369_v13, 0.0  ;;  %v2076_v11 = vadd.f32 %v2002_v39, %v1854_v44 }
 0x25c   : > { %v2515_v40 = vld [vmem:[#allocation2 + $0x31] sm:$0xff] }
 0x25d   : > { %2433 = vst.msk [vmem:[#allocation2 + $0x39] sm:$0xff] %vm280_vm1, %v2401_v45  ;;  %v2298_v51 = vadd.f32 %v2224_v59, %v2076_v11 }
 0x25f   : > { %v2334_v35 = vmul.f32 %v5731_v38, %v2298_v51  ;;  %v1684_v51 = vld [vmem:[#allocation2 + $0x150] sm:$0xff] }
 0x260   : > { %v2229_v53 = vpop.f32.mrf.mxu0  ;;  %v1782_v31 = vpop.f32.mrf.mxu2 }
 0x261   : > { %v2370_v25 = vadd.f32 %v5736_v26, %v2334_v35  ;;  %v1855_v1 = vadd.f32 %v1782_v31, %v5523_v0  ;;  %v2004_v14 = vpop.f32.mrf.mxu3 }
 0x263   : > { %v2402_v33 = vmax.f32 %v2370_v25, 0.0  ;;  %4774 = vmatmul.msk.bf16.gmra.mxu0 %vm280_vm1, %v5528_v20  ;;  %v2077_v59 = vadd.f32 %v2004_v14, %v1855_v1 }
 0x264   : > { %v2516_v58 = vld [vmem:[#allocation2 + $0x39] sm:$0xff] }
 0x265   : > { %2434 = vst.msk [vmem:[#allocation2 + $0x49] sm:$0xff] %vm280_vm1, %v2402_v33  ;;  %v2299_v62 = vadd.f32 %v2226_v49, %v2077_v59  ;;  %4740 = vmatmul.msk.bf16.gmra.mxu2 %vm280_vm1, %v1703_v3  ;;  %v2545_v19 = vpack.c.bf16 %v2516_v58, %v2515_v40  ;;  %v1926_v3 = vpack.c.bf16 %v1907_v54, %v1906_v24 }
 0x266   : > { %4757 = vmatmul.msk.bf16.gmra.mxu3 %vm280_vm1, %v1925_v55 }
 0x267   : > { %v2335_v0 = vmul.f32 %v5731_v38, %v2299_v62  ;;  %4782 = vmatmul.msk.bf16.gmra.mxu1 %vm280_vm1, %v2545_v19 }
 0x268   : > { %v2231_v60 = vpop.f32.mrf.mxu0  ;;  %v1785_v13 = vpop.f32.mrf.mxu2 }
 0x269   : > { %v2371_v44 = vadd.f32 %v5736_v26, %v2335_v0  ;;  %v1856_v20 = vadd.f32 %v1785_v13, %v5526_v15  ;;  %v2007_v39 = vpop.f32.mrf.mxu3  ;;  %v1704_v15 = vpack.c.bf16 %v1685_v17, %v1684_v51  ;;  %v1636_v51 = vadd.f32 %v5544_v42, %v5561_v34 }
 0x26b   : > { %v2403_v45 = vmax.f32 %v2371_v44, 0.0  ;;  %v2078_v11 = vadd.f32 %v2007_v39, %v1856_v20  ;;  %v1686_v39 = vld [vmem:[#allocation2 + $0x168] sm:$0xff] }
 0x26c   : > { %v2517_v33 = vld [vmem:[#allocation2 + $0x49] sm:$0xff] }
 0x26d   : > { %2435 = vst.msk [vmem:[#allocation2 + $0x51] sm:$0xff] %vm280_vm1, %v2403_v45  ;;  %v2300_v49 = vadd.f32 %v2229_v53, %v2078_v11  ;;  %v1687_v45 = vld [vmem:[#allocation2 + $0x170] sm:$0xff] }
 0x26e   : > { %v1908_v11 = vld [vmem:[#allocation2 + $0x169] sm:$0xff] }
 0x26f   : > { %v2336_v46 = vmul.f32 %v5731_v38, %v2300_v49  ;;  %v1909_v49 = vld [vmem:[#allocation2 + $0x171] sm:$0xff] }
 0x270   : > { %v2234_v35 = vpop.f32.mrf.mxu0  ;;  %v1787_v31 = vpop.f32.mrf.mxu2 }
 0x271   : > { %v2372_v25 = vadd.f32 %v5736_v26, %v2336_v46  ;;  %v1857_v1 = vadd.f32 %v1787_v31, %v5539_v47  ;;  %v2009_v14 = vpop.f32.mrf.mxu3 }
 0x273   : > { %v2404_v55 = vmax.f32 %v2372_v25, 0.0  ;;  %4775 = vmatmul.msk.bf16.gmra.mxu0 %vm280_vm1, %v5550_v10  ;;  %v2079_v53 = vadd.f32 %v2009_v14, %v1857_v1  ;;  %v1705_v25 = vpack.c.bf16 %v1687_v45, %v1686_v39  ;;  %v1927_v1 = vpack.c.bf16 %v1909_v49, %v1908_v11 }
 0x274   : > { %v2518_v59 = vld [vmem:[#allocation2 + $0x51] sm:$0xff] }
 0x275   : > { %2436 = vst.msk [vmem:[#allocation2 + $0x61] sm:$0xff] %vm280_vm1, %v2404_v55  ;;  %v2301_v40 = vadd.f32 %v2231_v60, %v2079_v53  ;;  %4741 = vmatmul.msk.bf16.gmra.mxu2 %vm280_vm1, %v1704_v15  ;;  %v2546_v58 = vpack.c.bf16 %v2518_v59, %v2517_v33 }
 0x276   : > { %4758 = vmatmul.msk.bf16.gmra.mxu3 %vm280_vm1, %v1926_v3 }
 0x277   : > { %v2337_v47 = vmul.f32 %v5731_v38, %v2301_v40  ;;  %4783 = vmatmul.msk.bf16.gmra.mxu1 %vm280_vm1, %v2546_v58 }
 0x278   : > { %v2236_v62 = vpop.f32.mrf.mxu0  ;;  %v1790_v19 = vpop.f32.mrf.mxu2 }
 0x279   : > { %v2373_v0 = vadd.f32 %v5736_v26, %v2337_v47  ;;  %v1858_v10 = vadd.f32 %v1790_v19, %v5548_v29  ;;  %v2012_v13 = vpop.f32.mrf.mxu3  ;;  %v1638_v19 = vadd.f32 %v5564_v41, %v5579_v9 }
 0x27b   : > { %v2405_v44 = vmax.f32 %v2373_v0, 0.0  ;;  %v2080_v20 = vadd.f32 %v2012_v13, %v1858_v10 }
 0x27c   : > { %v2519_v15 = vld [vmem:[#allocation2 + $0x61] sm:$0xff] }
 0x27d   : > { %2437 = vst.msk [vmem:[#allocation2 + $0x69] sm:$0xff] %vm280_vm1, %v2405_v44  ;;  %v2302_v60 = vadd.f32 %v2234_v35, %v2080_v20 }
 0x27f   : > { %v2338_v17 = vmul.f32 %v5731_v38, %v2302_v60 }
 0x280   : > { %v2239_v24 = vpop.f32.mrf.mxu0  ;;  %v1792_v54 = vpop.f32.mrf.mxu2 }
 0x281   : > { %v2374_v46 = vadd.f32 %v5736_v26, %v2338_v17  ;;  %v1859_v29 = vadd.f32 %v1792_v54, %v1636_v51  ;;  %v2014_v31 = vpop.f32.mrf.mxu3 }
 0x283   : > { %v2406_v14 = vmax.f32 %v2374_v46, 0.0  ;;  %4776 = vmatmul.msk.bf16.gmra.mxu0 %vm280_vm1, %v5568_v37  ;;  %v2081_v35 = vadd.f32 %v2014_v31, %v1859_v29  ;;  %v2134_v31 = vld [vmem:[#allocation2 + $0x19a] sm:$0xff] }
 0x284   : > { %v2520_v3 = vld [vmem:[#allocation2 + $0x69] sm:$0xff] }
 0x285   : > { %2438 = vst.msk [vmem:[#allocation2 + $0x79] sm:$0xff] %vm280_vm1, %v2406_v14  ;;  %v2303_v42 = vadd.f32 %v2236_v62, %v2081_v35  ;;  %4742 = vmatmul.msk.bf16.gmra.mxu2 %vm280_vm1, %v1705_v25  ;;  %v2547_v34 = vpack.c.bf16 %v2520_v3, %v2519_v15  ;;  %v2135_v25 = vld [vmem:[#allocation2 + $0x1a2] sm:$0xff]  ;;  %v1912_v14 = vld [vmem:[#allocation2 + $0x199] sm:$0xff] }
 0x286   : > { %4759 = vmatmul.msk.bf16.gmra.mxu3 %vm280_vm1, %v1927_v1  ;;  %v1691_v1 = vld [vmem:[#allocation2 + $0x1a0] sm:$0xff]  ;;  %v6860_v15 = vld [vmem:[#allocation12_spill] sm:$0xff] }
 0x287   : > { %v2339_v55 = vmul.f32 %v5731_v38, %v2303_v42  ;;  %4784 = vmatmul.msk.bf16.gmra.mxu1 %vm280_vm1, %v2547_v34  ;;  %v1913_v35 = vld [vmem:[#allocation2 + $0x1a1] sm:$0xff]  ;;  %v1640_v3 = vadd.f32 %v6860_v15, %v5601_v52  ;;  %v2151_v34 = vpack.c.bf16 %v2135_v25, %v2134_v31 }
 0x288   : > { %v2241_v53 = vpop.f32.mrf.mxu0  ;;  %v1795_v33 = vpop.f32.mrf.mxu2 }
 0x289   : > { %v2375_v59 = vadd.f32 %v5736_v26, %v2339_v55  ;;  %v1860_v37 = vadd.f32 %v1795_v33, %v5566_v8  ;;  %v2017_v40 = vpop.f32.mrf.mxu3 }
 0x28b   : > { %v2407_v58 = vmax.f32 %v2375_v59, 0.0  ;;  %v2082_v47 = vadd.f32 %v2017_v40, %v1860_v37  ;;  %v1929_v40 = vpack.c.bf16 %v1913_v35, %v1912_v14 }
 0x28c   : > { %v2521_v45 = vld [vmem:[#allocation2 + $0x79] sm:$0xff] }
 0x28d   : > { %2439 = vst.msk [vmem:[#allocation2 + $0x81] sm:$0xff] %vm280_vm1, %v2407_v58  ;;  %v2304_v62 = vadd.f32 %v2239_v24, %v2082_v47 }
 0x28f   : > { %v2340_v0 = vmul.f32 %v5731_v38, %v2304_v62 }
 0x290   : > { %v2244_v10 = vpop.f32.mrf.mxu0  ;;  %v1797_v13 = vpop.f32.mrf.mxu2 }
 0x291   : > { %v2376_v44 = vadd.f32 %v5736_v26, %v2340_v0  ;;  %v1861_v20 = vadd.f32 %v1797_v13, %v1638_v19  ;;  %v2019_v60 = vpop.f32.mrf.mxu3 }
 0x293   : > { %v2408_v39 = vmax.f32 %v2376_v44, 0.0  ;;  %4777 = vmatmul.msk.bf16.gmra.mxu0 %vm280_vm1, %v5588_v28  ;;  %v2083_v8 = vadd.f32 %v2019_v60, %v1861_v20 }
 0x294   : > { %v2522_v11 = vld [vmem:[#allocation2 + $0x81] sm:$0xff] }
 0x295   : > { %2440 = vst.msk [vmem:[#allocation2 + $0x91] sm:$0xff] %vm280_vm1, %v2408_v39  ;;  %v2305_v49 = vadd.f32 %v2241_v53, %v2083_v8  ;;  %4743 = vmatmul.msk.bf16.gmra.mxu2 %vm280_vm1, %v5591_v6  ;;  %v2548_v41 = vpack.c.bf16 %v2522_v11, %v2521_v45 }
 0x296   : > { %4760 = vmatmul.msk.bf16.gmra.mxu3 %vm280_vm1, %v5586_v36  ;;  %v1690_v36 = vld [vmem:[#allocation2 + $0x198] sm:$0xff] }
 0x297   : > { %v2341_v9 = vmul.f32 %v5731_v38, %v2305_v49  ;;  %4785 = vmatmul.msk.bf16.gmra.mxu1 %vm280_vm1, %v2548_v41  ;;  %v1707_v37 = vpack.c.bf16 %v1691_v1, %v1690_v36  ;;  %v3064_v49 = vld [vmem:[#allocation2 + $0x20] sm:$0xff] }
 0x298   : > { %v2246_v51 = vpop.f32.mrf.mxu0  ;;  %v1800_v17 = vpop.f32.mrf.mxu2  ;;  %v2462_v41 = vld [vmem:[#allocation2] sm:$0xff] }
 0x299   : > { %v2377_v28 = vadd.f32 %v5736_v26, %v2341_v9  ;;  %v1862_v24 = vadd.f32 %v1800_v17, %v5584_v56  ;;  %v2022_v54 = vpop.f32.mrf.mxu3  ;;  %v2463_v9 = vld [vmem:[#allocation2 + $0x8] sm:$0xff] }
 0x29a   : > { %v2842_v17 = vld [vmem:[#allocation2 + $0xa] sm:$0xff]  ;;  %v2494_v36 = vpack.c.bf16 %v2463_v9, %v2462_v41 }
 0x29b   : > { %v2409_v46 = vmax.f32 %v2377_v28, 0.0  ;;  %v2084_v29 = vadd.f32 %v2022_v54, %v1862_v24  ;;  %v1642_v28 = vadd.f32 %v5604_v18, %v5613_v12  ;;  %v3063_v54 = vld [vmem:[#allocation2 + $0x18] sm:$0xff] }
 0x29c   : > { %v2523_v62 = vld [vmem:[#allocation2 + $0x91] sm:$0xff] }
 0x29d   : > { %2441 = vst.msk [vmem:[#allocation2 + $0x99] sm:$0xff] %vm280_vm1, %v2409_v46  ;;  %v2306_v6 = vadd.f32 %v2244_v10, %v2084_v29  ;;  %v3095_v29 = vpack.c.bf16 %v3064_v49, %v3063_v54 }
 0x29f   : > { %v2342_v42 = vmul.f32 %v5731_v38, %v2306_v6 }
 0x2a0   : > { %v2249_v55 = vpop.f32.mrf.mxu0  ;;  %v1802_v56 = vpop.f32.mrf.mxu2 }
 0x2a1   : > { %v2378_v53 = vadd.f32 %v5736_v26, %v2342_v42  ;;  %v1863_v33 = vadd.f32 %v1802_v56, %v1640_v3  ;;  %v2024_v59 = vpop.f32.mrf.mxu3 }
 0x2a3   : > { %v2410_v58 = vmax.f32 %v2378_v53, 0.0  ;;  %4778 = vmatmul.msk.bf16.gmra.mxu0 %vm280_vm1, %v2151_v34  ;;  %v2085_v47 = vadd.f32 %v2024_v59, %v1863_v33  ;;  %v5847_v59 = vpop.f32.mrf.mxu1 }
 0x2a4   : > { %v2524_v19 = vld [vmem:[#allocation2 + $0x99] sm:$0xff] }
 0x2a5   : > { %2442 = vst.msk [vmem:[#allocation2 + $0xa9] sm:$0xff] %vm280_vm1, %v2410_v58  ;;  %v2307_v52 = vadd.f32 %v2246_v51, %v2085_v47  ;;  %4744 = vmatmul.msk.bf16.gmra.mxu2 %vm280_vm1, %v1707_v37  ;;  %v2549_v0 = vpack.c.bf16 %v2524_v19, %v2523_v62  ;;  %v2841_v51 = vld [vmem:[#allocation2 + $0x2] sm:$0xff]  ;;  %v3066_v47 = vld [vmem:[#allocation2 + $0x38] sm:$0xff]  ;;  %v1644_v62 = vadd.f32 %v5616_v32, %v5626_v21 }
 0x2a6   : > { %4761 = vmatmul.msk.bf16.gmra.mxu3 %vm280_vm1, %v1929_v40  ;;  %v2873_v1 = vpack.c.bf16 %v2842_v17, %v2841_v51 }
 0x2a7   : > { %v2343_v10 = vmul.f32 %v5731_v38, %v2307_v52  ;;  %4786 = vmatmul.msk.bf16.gmra.mxu1 %vm280_vm1, %v2549_v0  ;;  %v3065_v0 = vld [vmem:[#allocation2 + $0x30] sm:$0xff] }
 0x2a8   : > { %v2251_v13 = vpop.f32.mrf.mxu0  ;;  %v1805_v44 = vpop.f32.mrf.mxu2 }
 0x2a9   : > { %v2379_v20 = vadd.f32 %v5736_v26, %v2343_v10  ;;  %v1864_v60 = vadd.f32 %v1805_v44, %v5606_v63  ;;  %v2027_v39 = vpop.f32.mrf.mxu3  ;;  %v2844_v44 = vld [vmem:[#allocation2 + $0x22] sm:$0xff] }
 0x2ab   : > { %v2411_v8 = vmax.f32 %v2379_v20, 0.0  ;;  %v2086_v45 = vadd.f32 %v2027_v39, %v1864_v60  ;;  %v3096_v20 = vpack.c.bf16 %v3066_v47, %v3065_v0 }
 0x2ac   : > { %v2525_v15 = vld [vmem:[#allocation2 + $0xa9] sm:$0xff] }
 0x2ad   : > { %2443 = vst.msk [vmem:[#allocation2 + $0xb1] sm:$0xff] %vm280_vm1, %v2411_v8  ;;  %v2308_v11 = vadd.f32 %v2249_v55, %v2086_v45  ;;  %v5854_v8 = vpop.f32.mrf.mxu1 }
 0x2af   : > { %v2344_v24 = vmul.f32 %v5731_v38, %v2308_v11 }
 0x2b0   : > { %v2254_v46 = vpop.f32.mrf.mxu0  ;;  %v1807_v63 = vpop.f32.mrf.mxu2 }
 0x2b1   : > { %v2380_v31 = vadd.f32 %v5736_v26, %v2344_v24  ;;  %v1865_v25 = vadd.f32 %v1807_v63, %v1642_v28  ;;  %v2029_v6 = vpop.f32.mrf.mxu3 }
 0x2b3   : > { %v2412_v14 = vmax.f32 %v2380_v31, 0.0  ;;  %4830 = vmatmul.msk.bf16.vlgmr.msrb.gmra.mxu0 %vm280_vm1, %v3095_v29  ;;  %v2087_v35 = vadd.f32 %v2029_v6, %v1865_v25  ;;  %v3068_v6 = vld [vmem:[#allocation2 + $0x50] sm:$0xff] }
 0x2b4   : > { %v2526_v3 = vld [vmem:[#allocation2 + $0xb1] sm:$0xff] }
 0x2b5   : > { %2444 = vst.msk [vmem:[#allocation2 + $0xc1] sm:$0xff] %vm280_vm1, %v2412_v14  ;;  %v2309_v18 = vadd.f32 %v2251_v13, %v2087_v35  ;;  %4796 = vmatmul.msk.bf16.vlgmr.msrb.gmra.mxu2 %vm280_vm1, %v2494_v36  ;;  %v5840_v12 = vpack.c.bf16 %v2526_v3, %v2525_v15  ;;  %v2843_v13 = vld [vmem:[#allocation2 + $0x1a] sm:$0xff]  ;;  %v1646_v36 = vadd.f32 %v5629_v27, %v5638_v61  ;;  %v3067_v35 = vld [vmem:[#allocation2 + $0x48] sm:$0xff]  ;;  %v2845_v3 = vld [vmem:[#allocation2 + $0x32] sm:$0xff] }
 0x2b6   : > { %4813 = vmatmul.msk.bf16.vlgmr.msrb.gmra.mxu3 %vm280_vm1, %v2873_v1  ;;  %v5857_v49 = vpack.c.bf16 %v2844_v44, %v2843_v13 }
 0x2b7   : > { %v2345_v42 = vmul.f32 %v5731_v38, %v2309_v18  ;;  %4787 = vmatmul.msk.bf16.gmra.mxu1 %vm280_vm1, %v5840_v12  ;;  %v2846_v18 = vld [vmem:[#allocation2 + $0x3a] sm:$0xff] }
 0x2b8   : > { %v2256_v34 = vpop.f32.mrf.mxu0  ;;  %v1810_v55 = vpop.f32.mrf.mxu2 }
 0x2b9   : > { %v2381_v56 = vadd.f32 %v5736_v26, %v2345_v42  ;;  %v1866_v53 = vadd.f32 %v1810_v55, %v5620_v22  ;;  %v2032_v33 = vpop.f32.mrf.mxu3  ;;  %v3097_v42 = vpack.c.bf16 %v3068_v6, %v3067_v35 }
 0x2bb   : > { %v2413_v37 = vmax.f32 %v2381_v56, 0.0  ;;  %v2088_v40 = vadd.f32 %v2032_v33, %v1866_v53  ;;  %v5878_v33 = vpack.c.bf16 %v2846_v18, %v2845_v3 }
 0x2bc   : > { %v2527_v32 = vld [vmem:[#allocation2 + $0xc1] sm:$0xff] }
 0x2bd   : > { %2445 = vst.msk [vmem:[#allocation2 + $0xc9] sm:$0xff] %vm280_vm1, %v2413_v37  ;;  %v2310_v58 = vadd.f32 %v2254_v46, %v2088_v40 }
 0x2bf   : > { %v2346_v19 = vmul.f32 %v5731_v38, %v2310_v58 }
 0x2c0   : > { %v2259_v52 = vpop.f32.mrf.mxu0  ;;  %v1812_v10 = vpop.f32.mrf.mxu2 }
 0x2c1   : > { %v2382_v22 = vadd.f32 %v5736_v26, %v2346_v19  ;;  %v1867_v60 = vadd.f32 %v1812_v10, %v1644_v62  ;;  %v2034_v39 = vpop.f32.mrf.mxu3 }
 0x2c3   : > { %v2414_v45 = vmax.f32 %v2382_v22, 0.0  ;;  %4831 = vmatmul.msk.bf16.gmra.mxu0 %vm280_vm1, %v3096_v20  ;;  %v2089_v11 = vadd.f32 %v2034_v39, %v1867_v60  ;;  %v3070_v60 = vld [vmem:[#allocation2 + $0x68] sm:$0xff]  ;;  %v1648_v39 = vadd.f32 %v5641_v30, %v5650_v50 }
 0x2c4   : > { %v2528_v21 = vld [vmem:[#allocation2 + $0xc9] sm:$0xff] }
 0x2c5   : > { %2446 = vst.msk [vmem:[#allocation2 + $0xd9] sm:$0xff] %vm280_vm1, %v2414_v45  ;;  %v2311_v41 = vadd.f32 %v2256_v34, %v2089_v11  ;;  %4797 = vmatmul.msk.bf16.gmra.mxu2 %vm280_vm1, %v3095_v29  ;;  %v5863_v9 = vpack.c.bf16 %v2528_v21, %v2527_v32  ;;  %v5870_v29 = vpop.f32.mrf.mxu1  ;;  %v3069_v32 = vld [vmem:[#allocation2 + $0x60] sm:$0xff] }
 0x2c6   : > { %4814 = vmatmul.msk.bf16.gmra.mxu3 %vm280_vm1, %v5857_v49 }
 0x2c7   : > { %v2347_v51 = vmul.f32 %v5731_v38, %v2311_v41  ;;  %4788 = vmatmul.msk.bf16.gmra.mxu1 %vm280_vm1, %v5863_v9  ;;  %v2847_v41 = vld [vmem:[#allocation2 + $0x4a] sm:$0xff] }
 0x2c8   : > { %v2261_v17 = vpop.f32.mrf.mxu0  ;;  %v1815_v28 = vpop.f32.mrf.mxu2 }
 0x2c9   : > { %v2383_v24 = vadd.f32 %v5736_v26, %v2347_v51  ;;  %v1868_v54 = vadd.f32 %v1815_v28, %v5631_v7  ;;  %v2037_v46 = vpop.f32.mrf.mxu3  ;;  %v2848_v51 = vld [vmem:[#allocation2 + $0x52] sm:$0xff] }
 0x2cb   : > { %v2415_v63 = vmax.f32 %v2383_v24, 0.0  ;;  %v2090_v31 = vadd.f32 %v2037_v46, %v1868_v54 }
 0x2cc   : > { %v2529_v27 = vld [vmem:[#allocation2 + $0xd9] sm:$0xff] }
 0x2cd   : > { %2447 = vst.msk [vmem:[#allocation2 + $0xe1] sm:$0xff] %vm280_vm1, %v2415_v63  ;;  %v2312_v25 = vadd.f32 %v2259_v52, %v2090_v31  ;;  %v5904_v63 = vpack.c.bf16 %v2848_v51, %v2847_v41 }
 0x2cf   : > { %v2348_v1 = vmul.f32 %v5731_v38, %v2312_v25 }
 0x2d0   : > { %v2264_v14 = vpop.f32.mrf.mxu0  ;;  %v1817_v15 = vpop.f32.mrf.mxu2 }
 0x2d1   : > { %v2384_v7 = vadd.f32 %v5736_v26, %v2348_v1  ;;  %v1869_v34 = vadd.f32 %v1817_v15, %v1646_v36  ;;  %v2039_v55 = vpop.f32.mrf.mxu3 }
 0x2d3   : > { %v2416_v56 = vmax.f32 %v2384_v7, 0.0  ;;  %4832 = vmatmul.msk.bf16.gmra.mxu0 %vm280_vm1, %v3097_v42  ;;  %v2091_v53 = vadd.f32 %v2039_v55, %v1869_v34  ;;  %v3072_v55 = vld [vmem:[#allocation2 + $0x80] sm:$0xff] }
 0x2d4   : > { %v5880_v37 = vpop.f32.mrf.mxu1  ;;  %v2530_v61 = vld [vmem:[#allocation2 + $0xe1] sm:$0xff] }
 0x2d5   : > { %2448 = vst.msk [vmem:[#allocation2 + $0xf1] sm:$0xff] %vm280_vm1, %v2416_v56  ;;  %v2313_v40 = vadd.f32 %v2261_v17, %v2091_v53  ;;  %4798 = vmatmul.msk.bf16.gmra.mxu2 %vm280_vm1, %v3096_v20  ;;  %v5886_v58 = vpack.c.bf16 %v2530_v61, %v2529_v27  ;;  %v5900_v17 = vpack.c.bf16 %v3070_v60, %v3069_v32  ;;  %v6861_v56 = vld [vmem:[#allocation13_spill] sm:$0xff] }
 0x2d6   : > { %4815 = vmatmul.msk.bf16.gmra.mxu3 %vm280_vm1, %v5878_v33  ;;  %v1650_v53 = vadd.f32 %v6861_v56, %v5662_v23 }
 0x2d7   : > { %v2349_v47 = vmul.f32 %v5731_v38, %v2313_v40  ;;  %4789 = vmatmul.msk.bf16.gmra.mxu1 %vm280_vm1, %v5886_v58  ;;  %v3071_v40 = vld [vmem:[#allocation2 + $0x78] sm:$0xff] }
 0x2d8   : > { %v2266_v62 = vpop.f32.mrf.mxu0  ;;  %v1820_v19 = vpop.f32.mrf.mxu2 }
 0x2d9   : > { %v2385_v52 = vadd.f32 %v5736_v26, %v2349_v47  ;;  %v1870_v0 = vadd.f32 %v1820_v19, %v5643_v4  ;;  %v2042_v10 = vpop.f32.mrf.mxu3  ;;  %v2850_v19 = vld [vmem:[#allocation2 + $0x6a] sm:$0xff] }
 0x2db   : > { %v2417_v13 = vmax.f32 %v2385_v52, 0.0  ;;  %v2092_v44 = vadd.f32 %v2042_v10, %v1870_v0  ;;  %v5926_v52 = vpack.c.bf16 %v3072_v55, %v3071_v40 }
 0x2dc   : > { %v5893_v22 = vpop.f32.mrf.mxu1  ;;  %v2531_v50 = vld [vmem:[#allocation2 + $0xf1] sm:$0xff] }
 0x2dd   : > { %2449 = vst.msk [vmem:[#allocation2 + $0xf9] sm:$0xff] %vm280_vm1, %v2417_v13  ;;  %v2314_v20 = vadd.f32 %v2264_v14, %v2092_v44 }
 0x2df   : > { %v2350_v45 = vmul.f32 %v5731_v38, %v2314_v20 }
 0x2e0   : > { %v2269_v11 = vpop.f32.mrf.mxu0  ;;  %v1822_v21 = vpop.f32.mrf.mxu2 }
 0x2e1   : > { %v2386_v4 = vadd.f32 %v5736_v26, %v2350_v45  ;;  %v1871_v28 = vadd.f32 %v1822_v21, %v1648_v39  ;;  %v2044_v24 = vpop.f32.mrf.mxu3 }
 0x2e3   : > { %v2418_v54 = vmax.f32 %v2386_v4, 0.0  ;;  %4833 = vmatmul.msk.bf16.gmra.mxu0 %vm280_vm1, %v5900_v17  ;;  %v2093_v46 = vadd.f32 %v2044_v24, %v1871_v28  ;;  %v6862_v4 = vld [vmem:[#allocation15_spill] sm:$0xff] }
 0x2e4   : > { %v5906_v30 = vpop.f32.mrf.mxu1  ;;  %v2532_v31 = vld [vmem:[#allocation2 + $0xf9] sm:$0xff] }
 0x2e5   : > { %2450 = vst.msk [vmem:[#allocation2 + $0x109] sm:$0xff] %vm280_vm1, %v2418_v54  ;;  %v2315_v25 = vadd.f32 %v2266_v62, %v2093_v46  ;;  %4799 = vmatmul.msk.bf16.gmra.mxu2 %vm280_vm1, %v3097_v42  ;;  %v5912_v6 = vpack.c.bf16 %v2532_v31, %v2531_v50  ;;  %v2849_v62 = vld [vmem:[#allocation2 + $0x62] sm:$0xff] }
 0x2e6   : > { %4816 = vmatmul.msk.bf16.gmra.mxu3 %vm280_vm1, %v5904_v63  ;;  %v5930_v20 = vpack.c.bf16 %v2850_v19, %v2849_v62 }
 0x2e7   : > { %v2351_v36 = vmul.f32 %v5731_v38, %v2315_v25  ;;  %4790 = vmatmul.msk.bf16.gmra.mxu1 %vm280_vm1, %v5912_v6  ;;  %v3074_v25 = vld [vmem:[#allocation2 + $0x98] sm:$0xff] }
 0x2e8   : > { %v2271_v1 = vpop.f32.mrf.mxu0  ;;  %v1825_v14 = vpop.f32.mrf.mxu2 }
 0x2e9   : > { %v2387_v35 = vadd.f32 %v5736_v26, %v2351_v36  ;;  %v1872_v15 = vadd.f32 %v1825_v14, %v5655_v48  ;;  %v2047_v3 = vpop.f32.mrf.mxu3  ;;  %v6863_v36 = vld [vmem:[#allocation3_spill] sm:$0xff] }
 0x2eb   : > { %v2419_v18 = vmax.f32 %v2387_v35, 0.0  ;;  %v2094_v7 = vadd.f32 %v2047_v3, %v1872_v15  ;;  %v3073_v3 = vld [vmem:[#allocation2 + $0x90] sm:$0xff] }
 0x2ec   : > { %v5919_v42 = vpop.f32.mrf.mxu1  ;;  %v2533_v60 = vld [vmem:[#allocation2 + $0x109] sm:$0xff]  ;;  %v5953_v56 = vpack.c.bf16 %v3074_v25, %v3073_v3  ;;  %v2854_v3 = vld [vmem:[#allocation2 + $0x9a] sm:$0xff] }
 0x2ed   : > { %2451 = vst.msk [vmem:[#allocation2 + $0x111] sm:$0xff] %vm280_vm1, %v2419_v18  ;;  %v2316_v34 = vadd.f32 %v2269_v11, %v2094_v7  ;;  %v2851_v7 = vld [vmem:[#allocation2 + $0x7a] sm:$0xff] }
 0x2ef   : > { %v2352_v27 = vmul.f32 %v5731_v38, %v2316_v34  ;;  %v2852_v34 = vld [vmem:[#allocation2 + $0x82] sm:$0xff] }
 0x2f0   : > { %v2274_v61 = vpop.f32.mrf.mxu0  ;;  %v1827_v47 = vpop.f32.mrf.mxu2 }
 0x2f1   : > { %v2388_v48 = vadd.f32 %v5736_v26, %v2352_v27  ;;  %v1873_v0 = vadd.f32 %v1827_v47, %v1650_v53  ;;  %v2049_v10 = vpop.f32.mrf.mxu3  ;;  %v5957_v47 = vpack.c.bf16 %v2852_v34, %v2851_v7 }
 0x2f3   : > { %v2420_v13 = vmax.f32 %v2388_v48, 0.0  ;;  %4834 = vmatmul.msk.bf16.gmra.mxu0 %vm280_vm1, %v5926_v52  ;;  %v2095_v44 = vadd.f32 %v2049_v10, %v1873_v0 }
 0x2f4   : > { %v5932_v23 = vpop.f32.mrf.mxu1  ;;  %v2534_v39 = vld [vmem:[#allocation2 + $0x111] sm:$0xff] }
 0x2f5   : > { %2452 = vst.msk [vmem:[#allocation2 + $0x121] sm:$0xff] %vm280_vm1, %v2420_v13  ;;  %v2317_v45 = vadd.f32 %v2271_v1, %v2095_v44  ;;  %4800 = vmatmul.msk.bf16.gmra.mxu2 %vm280_vm1, %v5900_v17  ;;  %v5939_v11 = vpack.c.bf16 %v2534_v39, %v2533_v60  ;;  %v6864_v1 = vld [vmem:[#allocation14_spill] sm:$0xff] }
 0x2f6   : > { %4817 = vmatmul.msk.bf16.gmra.mxu3 %vm280_vm1, %v5930_v20  ;;  %v1652_v14 = vadd.f32 %v6864_v1, %v6863_v36  ;;  %v3075_v1 = vld [vmem:[#allocation2 + $0xa8] sm:$0xff] }
 0x2f7   : > { %v2353_v32 = vmul.f32 %v5731_v38, %v2317_v45  ;;  %4791 = vmatmul.msk.bf16.gmra.mxu1 %vm280_vm1, %v5939_v11  ;;  %v6865_v45 = vld [vmem:[#allocation4_spill] sm:$0xff] }
 0x2f8   : > { %v2276_v21 = vpop.f32.mrf.mxu0  ;;  %v1830_v41 = vpop.f32.mrf.mxu2 }
 0x2f9   : > { %v2389_v51 = vadd.f32 %v5736_v26, %v2353_v32  ;;  %v1874_v28 = vadd.f32 %v1830_v41, %v6862_v4  ;;  %v2052_v24 = vpop.f32.mrf.mxu3 }
 0x2fb   : > { %v2421_v54 = vmax.f32 %v2389_v51, 0.0  ;;  %v2096_v46 = vadd.f32 %v2052_v24, %v1874_v28  ;;  %v3076_v24 = vld [vmem:[#allocation2 + $0xb0] sm:$0xff] }
 0x2fc   : > { %v5946_v50 = vpop.f32.mrf.mxu1  ;;  %v2535_v19 = vld [vmem:[#allocation2 + $0x121] sm:$0xff]  ;;  %v5980_v7 = vpack.c.bf16 %v3076_v24, %v3075_v1  ;;  %v4863_v24 = vld [vmem:[%s6806_s2 + $0xa] sm:$0x3] }
 0x2fd   : > { %2453 = vst.msk [vmem:[#allocation2 + $0x129] sm:$0xff] %vm280_vm1, %v2421_v54  ;;  %v2318_v31 = vadd.f32 %v2274_v61, %v2096_v46  ;;  %v6866_v54 = vld [vmem:[#allocation6_spill] sm:$0xff]  ;;  %v6867_v46 = vld [vmem:[#allocation5_spill] sm:$0xff] }
 0x2ff   : > { %v2354_v35 = vmul.f32 %v5731_v38, %v2318_v31  ;;  %v1654_v31 = vadd.f32 %v6867_v46, %v6866_v54  ;;  %v3078_v54 = vld [vmem:[#allocation2 + $0xc8] sm:$0xff]  ;;  %v3606_v46 = vsel %vm538_vm0, %v4863_v24, 0 }
 0x300   : > { %v2279_v15 = vpop.f32.mrf.mxu0  ;;  %v1832_v18 = vpop.f32.mrf.mxu2  ;;  %3615 = vmatpush.bf16.msra.mxu2 %v3606_v46 }
 0x301   : > { %v2390_v55 = vadd.f32 %v5736_v26, %v2354_v35  ;;  %v1875_v53 = vadd.f32 %v1832_v18, %v1652_v14  ;;  %v2054_v27 = vpop.f32.mrf.mxu3  ;;  %v2853_v35 = vld [vmem:[#allocation2 + $0x92] sm:$0xff] }
 0x303   : > { %v2422_v40 = vmax.f32 %v2390_v55, 0.0  ;;  %4835 = vmatmul.msk.bf16.gmra.mxu0 %vm280_vm1, %v5953_v56  ;;  %v2097_v61 = vadd.f32 %v2054_v27, %v1875_v53  ;;  %v5984_v27 = vpack.c.bf16 %v2854_v3, %v2853_v35  ;;  %v2856_v3 = vld [vmem:[#allocation2 + $0xb2] sm:$0xff] }
 0x304   : > { %v5959_v62 = vpop.f32.mrf.mxu1  ;;  %v2536_v48 = vld [vmem:[#allocation2 + $0x129] sm:$0xff] }
 0x305   : > { %2454 = vst.msk [vmem:[#allocation2 + $0x139] sm:$0xff] %vm280_vm1, %v2422_v40  ;;  %v2319_v0 = vadd.f32 %v2276_v21, %v2097_v61  ;;  %4801 = vmatmul.msk.bf16.gmra.mxu2 %vm280_vm1, %v5926_v52  ;;  %v5966_v10 = vpack.c.bf16 %v2536_v48, %v2535_v19 }
 0x306   : > { %4818 = vmatmul.msk.bf16.gmra.mxu3 %vm280_vm1, %v5957_v47 }
 0x307   : > { %v2355_v13 = vmul.f32 %v5731_v38, %v2319_v0  ;;  %4792 = vmatmul.msk.bf16.gmra.mxu1 %vm280_vm1, %v5966_v10 }
 0x308   : > { %v2281_v44 = vpop.f32.mrf.mxu0  ;;  %v1835_v60 = vpop.f32.mrf.mxu2 }
 0x309   : > { %v2391_v39 = vadd.f32 %v5736_v26, %v2355_v13  ;;  %v1876_v32 = vadd.f32 %v1835_v60, %v6865_v45  ;;  %v2057_v21 = vpop.f32.mrf.mxu3 }
 0x30b   : > { %v2423_v41 = vmax.f32 %v2391_v39, 0.0  ;;  %v2098_v51 = vadd.f32 %v2057_v21, %v1876_v32 }
 0x30c   : > { %v5973_v4 = vpop.f32.mrf.mxu1  ;;  %v2537_v61 = vld [vmem:[#allocation2 + $0x139] sm:$0xff] }
 0x30d   : > { %2455 = vst.msk [vmem:[#allocation2 + $0x141] sm:$0xff] %vm280_vm1, %v2423_v41  ;;  %v2320_v28 = vadd.f32 %v2279_v15, %v2098_v51 }
 0x30f   : > { %v2356_v25 = vmul.f32 %v5731_v38, %v2320_v28 }
 0x310   : > { %v2284_v36 = vpop.f32.mrf.mxu0  ;;  %v1837_v14 = vpop.f32.mrf.mxu2 }
 0x311   : > { %v2392_v18 = vadd.f32 %v5736_v26, %v2356_v25  ;;  %v1877_v34 = vadd.f32 %v1837_v14, %v1654_v31  ;;  %v2059_v55 = vpop.f32.mrf.mxu3  ;;  %v1656_v31 = vadd.f32 %v5692_v2, %v5699_v5  ;;  %v2855_v25 = vld [vmem:[#allocation2 + $0xaa] sm:$0xff]  ;;  %v3077_v14 = vld [vmem:[#allocation2 + $0xc0] sm:$0xff] }
 0x313   : > { %v2424_v53 = vmax.f32 %v2392_v18, 0.0  ;;  %4836 = vmatmul.msk.bf16.gmra.mxu0 %vm280_vm1, %v5980_v7  ;;  %v2099_v15 = vadd.f32 %v2059_v55, %v1877_v34  ;;  %v6014_v34 = vpack.c.bf16 %v3078_v54, %v3077_v14 }
 0x314   : > { %v5986_v40 = vpop.f32.mrf.mxu1  ;;  %v2538_v19 = vld [vmem:[#allocation2 + $0x141] sm:$0xff] }
 0x315   : > { %2456 = vst.msk [vmem:[#allocation2 + $0x151] sm:$0xff] %vm280_vm1, %v2424_v53  ;;  %v2321_v48 = vadd.f32 %v2281_v44, %v2099_v15  ;;  %4802 = vmatmul.msk.bf16.gmra.mxu2 %vm280_vm1, %v5953_v56  ;;  %v5993_v0 = vpack.c.bf16 %v2538_v19, %v2537_v61  ;;  %v6019_v15 = vpack.c.bf16 %v2856_v3, %v2855_v25  ;;  %v3080_v3 = vld [vmem:[#allocation2 + $0xe0] sm:$0xff] }
 0x316   : > { %4819 = vmatmul.msk.bf16.gmra.mxu3 %vm280_vm1, %v5984_v27  ;;  %6868 = vst [vmem:[#allocation8_spill] sm:$0xff] %v6014_v34 }
 0x317   : > { %v2357_v13 = vmul.f32 %v5731_v38, %v2321_v48  ;;  %4793 = vmatmul.msk.bf16.gmra.mxu1 %vm280_vm1, %v5993_v0  ;;  %6869 = vst [vmem:[#allocation7_spill] sm:$0xff] %v6019_v15 }
 0x318   : > { %v2286_v60 = vpop.f32.mrf.mxu0  ;;  %v1840_v39 = vpop.f32.mrf.mxu2 }
 0x319   : > { %v2393_v45 = vadd.f32 %v5736_v26, %v2357_v13  ;;  %v1878_v32 = vadd.f32 %v1840_v39, %v5689_v57  ;;  %v2062_v44 = vpop.f32.mrf.mxu3  ;;  %v4950_v39 = vld [vmem:[%s6807_s3] ss:$0 sm:$0xff] }
 0x31b   : > { %v2425_v21 = vmax.f32 %v2393_v45, 0.0  ;;  %v2100_v41 = vadd.f32 %v2062_v44, %v1878_v32 }
 0x31c   : > { %v6000_v51 = vpop.f32.mrf.mxu1  ;;  %v2539_v19 = vld [vmem:[#allocation2 + $0x151] sm:$0xff] }
 0x31d   : > { %2457 = vst.msk [vmem:[#allocation2 + $0x159] sm:$0xff] %vm280_vm1, %v2425_v21  ;;  %v2322_v28 = vadd.f32 %v2284_v36, %v2100_v41  ;;  %v4880_v36 = vld [vmem:[%s6806_s2 + $0xc] sm:$0x3]  ;;  %v4914_v21 = vld [vmem:[%s6806_s2 + $0x10] sm:$0x3] }
 0x31e   : > { %v3828_v2 = vsel %vm538_vm0, %v4880_v36, 0  ;;  %v4951_v41 = vld [vmem:[%s6808_s4] ss:$0 sm:$0xff]  ;;  %v1658_v36 = vadd.f32 %v5847_v59, %v5725_v43 }
 0x31f   : > { %v2358_v57 = vmul.f32 %v5731_v38, %v2322_v28  ;;  %3837 = vmatpush.bf16.msra.mxu3 %v3828_v2  ;;  %v2857_v2 = vld [vmem:[#allocation2 + $0xc2] sm:$0xff] }
 0x320   : > { %v2289_v1 = vpop.f32.mrf.mxu0  ;;  %v1842_v35 = vpop.f32.mrf.mxu2 }
 0x321   : > { %v2394_v18 = vadd.f32 %v5736_v26, %v2358_v57  ;;  %v1879_v55 = vadd.f32 %v1842_v35, %v1656_v31  ;;  %v2064_v53 = vpop.f32.mrf.mxu3  ;;  %v4272_v31 = vsel %vm538_vm0, %v4914_v21, 0 }
 0x322   : > { %4281 = vmatpush.bf16.msra.mxu1 %v4272_v31 }
 0x323   : > { %v2426_v5 = vmax.f32 %v2394_v18, 0.0  ;;  %4837 = vmatmul.msk.bf16.gmra.mxu0 %vm280_vm1, %v6014_v34  ;;  %v2101_v38 = vadd.f32 %v2064_v53, %v1879_v55  ;;  %v3079_v55 = vld [vmem:[#allocation2 + $0xd8] sm:$0xff] }
 0x324   : > { %v6021_v61 = vpop.f32.mrf.mxu1  ;;  %v2540_v48 = vld [vmem:[#allocation2 + $0x159] sm:$0xff] }
 0x325   : > { %2458 = vst.msk [vmem:[#allocation2 + $0x169] sm:$0xff] %vm280_vm1, %v2426_v5  ;;  %v2323_v26 = vadd.f32 %v2286_v60, %v2101_v38  ;;  %4803 = vmatmul.msk.bf16.gmra.mxu2 %vm280_vm1, %v5980_v7  ;;  %v6028_v13 = vpack.c.bf16 %v2540_v48, %v2539_v19  ;;  %v4897_v60 = vld [vmem:[%s6806_s2 + $0xe] sm:$0x3]  ;;  %v6052_v19 = vpack.c.bf16 %v3080_v3, %v3079_v55 }
 0x326   : > { %4820 = vmatmul.msk.bf16.gmra.mxu3 %vm280_vm1, %v6019_v15  ;;  %v4050_v46 = vsel %vm538_vm0, %v4897_v60, 0  ;;  %v2858_v5 = vld [vmem:[#allocation2 + $0xca] sm:$0xff] }
 0x327   : > { %6870 = vst [vmem:[#allocation9_spill] sm:$0xff] %v6028_v13  ;;  %v2359_v45 = vmul.f32 %v4950_v39, %v2323_v26  ;;  %4794 = vmatmul.msk.bf16.gmra.mxu1 %vm280_vm1, %v6028_v13  ;;  %4059 = vmatpush.bf16.msra.mxu0 %v4050_v46  ;;  %v3294_v13 = vld [vmem:[#allocation2 + $0x81] sm:$0xff] }
 0x328   : > { %v2291_v32 = vpop.f32.mrf.mxu0  ;;  %v1845_v44 = vpop.f32.mrf.mxu2  ;;  %6871 = vst [vmem:[#allocation10_spill] sm:$0xff] %v6052_v19 }
 0x329   : > { %v2395_v28 = vadd.f32 %v4951_v41, %v2359_v45  ;;  %v1880_v24 = vadd.f32 %v1845_v44, %v5718_v16  ;;  %v2067_v54 = vpop.f32.mrf.mxu3  ;;  %v6056_v44 = vpack.c.bf16 %v2858_v5, %v2857_v2  ;;  %v2859_v2 = vld [vmem:[#allocation2 + $0xda] sm:$0xff]  ;;  %v2860_v5 = vld [vmem:[#allocation2 + $0xe2] sm:$0xff] }
 0x32b   : > { %v2427_v57 = vmax.f32 %v2395_v28, 0.0  ;;  %v2102_v25 = vadd.f32 %v2067_v54, %v1880_v24  ;;  %6872 = vst [vmem:[#allocation11_spill] sm:$0xff] %v6056_v44 }
 0x32c   : > { %v6047_v14 = vpop.f32.mrf.mxu1  ;;  %v2541_v43 = vld [vmem:[#allocation2 + $0x169] sm:$0xff] }
 0x32d   : > { %2459 = vst.msk [vmem:[#allocation2 + $0x171] sm:$0xff] %vm280_vm1, %v2427_v57  ;;  %v2324_v35 = vadd.f32 %v2289_v1, %v2102_v25 }
 0x32f   : > { %v2360_v18 = vmul.f32 %v4950_v39, %v2324_v35 }
 0x330   : > { %v3173_v16 = vpop.f32.mrf.mxu0  ;;  %v1847_v53 = vpop.f32.mrf.mxu2 }
 0x331   : > { %v2396_v38 = vadd.f32 %v4951_v41, %v2360_v18  ;;  %v1881_v48 = vadd.f32 %v1847_v53, %v1658_v36  ;;  %v2069_v26 = vpop.f32.mrf.mxu3  ;;  %v3082_v18 = vld [vmem:[#allocation2 + $0xf8] sm:$0xff] }
 0x333   : > { %v2428_v45 = vmax.f32 %v2396_v38, 0.0  ;;  %4838 = vmatmul.msk.bf16.gmra.mxu0 %vm280_vm1, %v6052_v19  ;;  %v2103_v1 = vadd.f32 %v2069_v26, %v1881_v48  ;;  %v3286_v48 = vld [vmem:[#allocation2 + $0x21] sm:$0xff] }
 0x334   : > { %v6058_v60 = vpop.f32.mrf.mxu1  ;;  %v2542_v59 = vld [vmem:[#allocation2 + $0x171] sm:$0xff] }
 0x335   : > { %2460 = vst.msk [vmem:[#allocation2 + $0x181] sm:$0xff] %vm280_vm1, %v2428_v45  ;;  %v2325_v21 = vadd.f32 %v2291_v32, %v2103_v1  ;;  %4804 = vmatmul.msk.bf16.gmra.mxu2 %vm280_vm1, %v6014_v34  ;;  %v6065_v28 = vpack.c.bf16 %v2542_v59, %v2541_v43  ;;  %v6080_v45 = vpack.c.bf16 %v2860_v5, %v2859_v2  ;;  %v3285_v1 = vld [vmem:[#allocation2 + $0x19] sm:$0xff] }
 0x336   : > { %4821 = vmatmul.msk.bf16.gmra.mxu3 %vm280_vm1, %v6056_v44  ;;  %v3317_v43 = vpack.c.bf16 %v3286_v48, %v3285_v1  ;;  %v2862_v2 = vld [vmem:[#allocation2 + $0xfa] sm:$0xff] }
 0x337   : > { %6873 = vst [vmem:[#allocation12_spill] sm:$0xff] %v6065_v28  ;;  %v2361_v24 = vmul.f32 %v4950_v39, %v2325_v21  ;;  %4795 = vmatmul.msk.bf16.gmra.mxu1 %vm280_vm1, %v6065_v28  ;;  %v3081_v39 = vld [vmem:[#allocation2 + $0xf0] sm:$0xff] }
 0x338   : > { %v3175_v54 = vpop.f32.mrf.mxu0  ;;  %v2761_v46 = vpop.f32.mrf.mxu2  ;;  %v6075_v38 = vpack.c.bf16 %v3082_v18, %v3081_v39  ;;  %6875 = vst [vmem:[#allocation15_spill] sm:$0xff] %v6080_v45  ;;  %v3083_v18 = vld [vmem:[#allocation2 + $0x108] sm:$0xff] }
 0x339   : > { %v2397_v31 = vadd.f32 %v4951_v41, %v2361_v24  ;;  %v2762_v57 = vadd.f32 %v2761_v46, %v5854_v8  ;;  %v2951_v25 = vpop.f32.mrf.mxu3  ;;  %v3292_v28 = vld [vmem:[#allocation2 + $0x69] sm:$0xff] }
 0x33a   : > { %6874 = vst [vmem:[#allocation13_spill] sm:$0xff] %v6075_v38 }
 0x33b   : > { %v2429_v35 = vmax.f32 %v2397_v31, 0.0  ;;  %v3031_v32 = vadd.f32 %v2951_v25, %v2762_v57 }
 0x33c   : > { %v6070_v3 = vpop.f32.mrf.mxu1 }
 0x33d   : > { %2461 = vst.msk [vmem:[#allocation2 + $0x189] sm:$0xff] %vm280_vm1, %v2429_v35  ;;  %v6073_v36 = vadd.f32 %v3173_v16, %v3031_v32  ;;  %v3084_v35 = vld [vmem:[#allocation2 + $0x110] sm:$0xff] }
 0x340   : > { %v3178_v55 = vpop.f32.mrf.mxu0  ;;  %v2763_v53 = vpop.f32.mrf.mxu2 }
 0x341   : > { %v2764_v41 = vadd.f32 %v2763_v53, %v5870_v29  ;;  %v2953_v8 = vpop.f32.mrf.mxu3  ;;  %v2861_v53 = vld [vmem:[#allocation2 + $0xf2] sm:$0xff] }
 0x342   : > { %v6101_v48 = vpack.c.bf16 %v2862_v2, %v2861_v53  ;;  %v3085_v2 = vld [vmem:[#allocation2 + $0x120] sm:$0xff] }
 0x343   : > { %4839 = vmatmul.msk.bf16.gmra.mxu0 %vm280_vm1, %v6075_v38  ;;  %v3032_v26 = vadd.f32 %v2953_v8, %v2764_v41  ;;  %v3288_v8 = vld [vmem:[#allocation2 + $0x39] sm:$0xff] }
 0x344   : > { %v6082_v16 = vpop.f32.mrf.mxu1  ;;  %6877 = vst [vmem:[#allocation14_spill] sm:$0xff] %v6101_v48 }
 0x345   : > { %4805 = vmatmul.msk.bf16.gmra.mxu2 %vm280_vm1, %v6052_v19  ;;  %v6088_v59 = vadd.f32 %v3175_v54, %v3032_v26  ;;  %v6096_v54 = vpack.c.bf16 %v3084_v35, %v3083_v18  ;;  %v3287_v26 = vld [vmem:[#allocation2 + $0x31] sm:$0xff] }
 0x346   : > { %4822 = vmatmul.msk.bf16.gmra.mxu3 %vm280_vm1, %v6080_v45  ;;  %v6109_v1 = vpack.c.bf16 %v3288_v8, %v3287_v26 }
 0x347   : > { %4847 = vmatmul.msk.bf16.vlgmr.msrb.gmra.mxu1 %vm280_vm1, %v3317_v43  ;;  %6876 = vst [vmem:[#allocation3_spill] sm:$0xff] %v6096_v54 }
 0x348   : > { %v3180_v29 = vpop.f32.mrf.mxu0  ;;  %v2766_v21 = vpop.f32.mrf.mxu2 }
 0x349   : > { %v2767_v24 = vadd.f32 %v2766_v21, %v5880_v37  ;;  %v2956_v46 = vpop.f32.mrf.mxu3 }
 0x34b   : > { %v3033_v31 = vadd.f32 %v2956_v46, %v2767_v24 }
 0x34c   : > { %v6092_v57 = vpop.f32.mrf.mxu1 }
 0x34d   : > { %v6094_v25 = vadd.f32 %v3178_v55, %v3033_v31 }
 0x350   : > { %v3183_v32 = vpop.f32.mrf.mxu0  ;;  %v2768_v39 = vpop.f32.mrf.mxu2 }
 0x351   : > { %v2769_v5 = vadd.f32 %v2768_v39, %v5893_v22  ;;  %v2958_v41 = vpop.f32.mrf.mxu3  ;;  %v3086_v39 = vld [vmem:[#allocation2 + $0x128] sm:$0xff] }
 0x352   : > { %v6120_v8 = vpack.c.bf16 %v3086_v39, %v3085_v2 }
 0x353   : > { %4840 = vmatmul.msk.bf16.gmra.mxu0 %vm280_vm1, %v6096_v54  ;;  %v3034_v37 = vadd.f32 %v2958_v41, %v2769_v5  ;;  %v2863_v41 = vld [vmem:[#allocation2 + $0x10a] sm:$0xff] }
 0x354   : > { %v6103_v55 = vpop.f32.mrf.mxu1  ;;  %6878 = vst [vmem:[#allocation4_spill] sm:$0xff] %v6120_v8 }
 0x355   : > { %4806 = vmatmul.msk.bf16.gmra.mxu2 %vm280_vm1, %v6075_v38  ;;  %v6111_v22 = vadd.f32 %v3180_v29, %v3034_v37  ;;  %v2864_v29 = vld [vmem:[#allocation2 + $0x112] sm:$0xff] }
 0x356   : > { %4823 = vmatmul.msk.bf16.gmra.mxu3 %vm280_vm1, %v6101_v48  ;;  %v3290_v48 = vld [vmem:[#allocation2 + $0x51] sm:$0xff] }
 0x357   : > { %4848 = vmatmul.msk.bf16.gmra.mxu1 %vm280_vm1, %v6109_v1 }
 0x358   : > { %v3185_v43 = vpop.f32.mrf.mxu0  ;;  %v2771_v21 = vpop.f32.mrf.mxu2 }
 0x359   : > { %v2772_v24 = vadd.f32 %v2771_v21, %v5906_v30  ;;  %v2961_v46 = vpop.f32.mrf.mxu3  ;;  %v6125_v21 = vpack.c.bf16 %v2864_v29, %v2863_v41 }
 0x35b   : > { %v3035_v31 = vadd.f32 %v2961_v46, %v2772_v24  ;;  %6879 = vst [vmem:[#allocation6_spill] sm:$0xff] %v6125_v21  ;;  %v3289_v24 = vld [vmem:[#allocation2 + $0x49] sm:$0xff] }
 0x35c   : > { %v6116_v35 = vpop.f32.mrf.mxu1  ;;  %v6133_v46 = vpack.c.bf16 %v3290_v48, %v3289_v24  ;;  %v2865_v24 = vld [vmem:[#allocation2 + $0x122] sm:$0xff] }
 0x35d   : > { %v6118_v18 = vadd.f32 %v3183_v32, %v3035_v31 }
 0x360   : > { %v3188_v53 = vpop.f32.mrf.mxu0  ;;  %v2773_v5 = vpop.f32.mrf.mxu2 }
 0x361   : > { %v2774_v37 = vadd.f32 %v2773_v5, %v5919_v42  ;;  %v2963_v26 = vpop.f32.mrf.mxu3 }
 0x363   : > { %4841 = vmatmul.msk.bf16.gmra.mxu0 %vm280_vm1, %v6120_v8  ;;  %v3036_v30 = vadd.f32 %v2963_v26, %v2774_v37  ;;  %v3088_v26 = vld [vmem:[#allocation2 + $0x140] sm:$0xff] }
 0x364   : > { %v6127_v32 = vpop.f32.mrf.mxu1 }
 0x365   : > { %4807 = vmatmul.msk.bf16.gmra.mxu2 %vm280_vm1, %v6096_v54  ;;  %v6135_v42 = vadd.f32 %v3185_v43, %v3036_v30  ;;  %v2866_v43 = vld [vmem:[#allocation2 + $0x12a] sm:$0xff] }
 0x366   : > { %4824 = vmatmul.msk.bf16.gmra.mxu3 %vm280_vm1, %v6125_v21  ;;  %v3087_v21 = vld [vmem:[#allocation2 + $0x138] sm:$0xff] }
 0x367   : > { %4849 = vmatmul.msk.bf16.gmra.mxu1 %vm280_vm1, %v6133_v46  ;;  %v6144_v30 = vpack.c.bf16 %v3088_v26, %v3087_v21 }
 0x368   : > { %v3190_v31 = vpop.f32.mrf.mxu0  ;;  %v2776_v39 = vpop.f32.mrf.mxu2 }
 0x369   : > { %v2777_v2 = vadd.f32 %v2776_v39, %v5932_v23  ;;  %v2966_v5 = vpop.f32.mrf.mxu3  ;;  %6880 = vst [vmem:[#allocation5_spill] sm:$0xff] %v6144_v30  ;;  %v6149_v39 = vpack.c.bf16 %v2866_v43, %v2865_v24  ;;  %v3090_v43 = vld [vmem:[#allocation2 + $0x158] sm:$0xff] }
 0x36b   : > { %v3037_v41 = vadd.f32 %v2966_v5, %v2777_v2  ;;  %6881 = vst [vmem:[#allocation16_spill] sm:$0xff] %v6149_v39  ;;  %v3291_v2 = vld [vmem:[#allocation2 + $0x61] sm:$0xff] }
 0x36c   : > { %v6140_v29 = vpop.f32.mrf.mxu1  ;;  %v6157_v21 = vpack.c.bf16 %v3292_v28, %v3291_v2  ;;  %v2867_v2 = vld [vmem:[#allocation2 + $0x13a] sm:$0xff] }
 0x36d   : > { %v6142_v37 = vadd.f32 %v3188_v53, %v3037_v41 }
 0x370   : > { %v3193_v54 = vpop.f32.mrf.mxu0  ;;  %v2778_v48 = vpop.f32.mrf.mxu2 }
 0x371   : > { %v2779_v38 = vadd.f32 %v2778_v48, %v5946_v50  ;;  %v2968_v45 = vpop.f32.mrf.mxu3 }
 0x373   : > { %4842 = vmatmul.msk.bf16.gmra.mxu0 %vm280_vm1, %v6144_v30  ;;  %v3038_v23 = vadd.f32 %v2968_v45, %v2779_v38 }
 0x374   : > { %v6151_v53 = vpop.f32.mrf.mxu1 }
 0x375   : > { %4808 = vmatmul.msk.bf16.gmra.mxu2 %vm280_vm1, %v6120_v8  ;;  %v6159_v50 = vadd.f32 %v3190_v31, %v3038_v23  ;;  %v2868_v31 = vld [vmem:[#allocation2 + $0x142] sm:$0xff] }
 0x376   : > { %4825 = vmatmul.msk.bf16.gmra.mxu3 %vm280_vm1, %v6149_v39  ;;  %v3089_v39 = vld [vmem:[#allocation2 + $0x150] sm:$0xff] }
 0x377   : > { %4850 = vmatmul.msk.bf16.gmra.mxu1 %vm280_vm1, %v6157_v21  ;;  %v6168_v23 = vpack.c.bf16 %v3090_v43, %v3089_v39 }
 0x378   : > { %v3195_v5 = vpop.f32.mrf.mxu0  ;;  %v2781_v38 = vpop.f32.mrf.mxu2 }
 0x379   : > { %v2782_v45 = vadd.f32 %v2781_v38, %v5959_v62  ;;  %v2971_v41 = vpop.f32.mrf.mxu3  ;;  %6882 = vst [vmem:[#allocation17_spill] sm:$0xff] %v6168_v23  ;;  %v6173_v38 = vpack.c.bf16 %v2868_v31, %v2867_v2  ;;  %v3092_v31 = vld [vmem:[#allocation2 + $0x170] sm:$0xff] }
 0x37b   : > { %v3039_v26 = vadd.f32 %v2971_v41, %v2782_v45  ;;  %6883 = vst [vmem:[#allocation18_spill] sm:$0xff] %v6173_v38  ;;  %v3293_v45 = vld [vmem:[#allocation2 + $0x79] sm:$0xff] }
 0x37c   : > { %v6164_v48 = vpop.f32.mrf.mxu1  ;;  %v6181_v39 = vpack.c.bf16 %v3294_v13, %v3293_v45  ;;  %v2869_v45 = vld [vmem:[#allocation2 + $0x152] sm:$0xff] }
 0x37d   : > { %v6166_v24 = vadd.f32 %v3193_v54, %v3039_v26 }
 0x380   : > { %v3198_v8 = vpop.f32.mrf.mxu0  ;;  %v2783_v28 = vpop.f32.mrf.mxu2 }
 0x381   : > { %v2784_v19 = vadd.f32 %v2783_v28, %v5973_v4  ;;  %v2973_v44 = vpop.f32.mrf.mxu3 }
 0x383   : > { %4843 = vmatmul.msk.bf16.gmra.mxu0 %vm280_vm1, %v6168_v23  ;;  %v3040_v62 = vadd.f32 %v2973_v44, %v2784_v19 }
 0x384   : > { %v6175_v54 = vpop.f32.mrf.mxu1 }
 0x385   : > { %4809 = vmatmul.msk.bf16.gmra.mxu2 %vm280_vm1, %v6144_v30  ;;  %v6183_v4 = vadd.f32 %v3195_v5, %v3040_v62  ;;  %v2870_v5 = vld [vmem:[#allocation2 + $0x15a] sm:$0xff] }
 0x386   : > { %4826 = vmatmul.msk.bf16.gmra.mxu3 %vm280_vm1, %v6173_v38  ;;  %v3091_v38 = vld [vmem:[#allocation2 + $0x168] sm:$0xff] }
 0x387   : > { %6884 = vst [vmem:[#allocation19_spill] sm:$0xff] %v6183_v4  ;;  %4851 = vmatmul.msk.bf16.gmra.mxu1 %vm280_vm1, %v6181_v39  ;;  %v6192_v62 = vpack.c.bf16 %v3092_v31, %v3091_v38  ;;  %v3296_v4 = vld [vmem:[#allocation2 + $0x99] sm:$0xff] }
 0x388   : > { %v3200_v41 = vpop.f32.mrf.mxu0  ;;  %v2786_v19 = vpop.f32.mrf.mxu2 }
 0x389   : > { %v2787_v44 = vadd.f32 %v2786_v19, %v5986_v40  ;;  %v2976_v26 = vpop.f32.mrf.mxu3  ;;  %6886 = vst [vmem:[#allocation21_spill] sm:$0xff] %v6192_v62  ;;  %v6197_v19 = vpack.c.bf16 %v2870_v5, %v2869_v45  ;;  %v3094_v5 = vld [vmem:[#allocation2 + $0x188] sm:$0xff] }
 0x38b   : > { %v3041_v43 = vadd.f32 %v2976_v26, %v2787_v44  ;;  %6887 = vst [vmem:[#allocation22_spill] sm:$0xff] %v6197_v19  ;;  %v3295_v44 = vld [vmem:[#allocation2 + $0x91] sm:$0xff] }
 0x38c   : > { %v6188_v28 = vpop.f32.mrf.mxu1  ;;  %v6205_v38 = vpack.c.bf16 %v3296_v4, %v3295_v44  ;;  %v2871_v44 = vld [vmem:[#allocation2 + $0x16a] sm:$0xff] }
 0x38d   : > { %v6190_v2 = vadd.f32 %v3198_v8, %v3041_v43 }
 0x38f   : > { %6885 = vst [vmem:[#allocation20_spill] sm:$0xff] %v6190_v2 }
 0x390   : > { %v3203_v30 = vpop.f32.mrf.mxu0  ;;  %v2788_v13 = vpop.f32.mrf.mxu2 }
 0x391   : > { %v2789_v34 = vadd.f32 %v2788_v13, %v6000_v51  ;;  %v2978_v15 = vpop.f32.mrf.mxu3 }
 0x393   : > { %4844 = vmatmul.msk.bf16.gmra.mxu0 %vm280_vm1, %v6192_v62  ;;  %v3042_v40 = vadd.f32 %v2978_v15, %v2789_v34 }
 0x394   : > { %v6199_v8 = vpop.f32.mrf.mxu1 }
 0x395   : > { %4810 = vmatmul.msk.bf16.gmra.mxu2 %vm280_vm1, %v6168_v23  ;;  %v6207_v51 = vadd.f32 %v3200_v41, %v3042_v40  ;;  %v2872_v41 = vld [vmem:[#allocation2 + $0x172] sm:$0xff] }
 0x396   : > { %4827 = vmatmul.msk.bf16.gmra.mxu3 %vm280_vm1, %v6197_v19  ;;  %v3093_v19 = vld [vmem:[#allocation2 + $0x180] sm:$0xff] }
 0x397   : > { %6888 = vst [vmem:[#allocation23_spill] sm:$0xff] %v6207_v51  ;;  %4852 = vmatmul.msk.bf16.gmra.mxu1 %vm280_vm1, %v6205_v38  ;;  %v6216_v40 = vpack.c.bf16 %v3094_v5, %v3093_v19 }
 0x398   : > { %v3205_v26 = vpop.f32.mrf.mxu0  ;;  %v2791_v34 = vpop.f32.mrf.mxu2 }
 0x399   : > { %v2792_v15 = vadd.f32 %v2791_v34, %v6021_v61  ;;  %v2981_v43 = vpop.f32.mrf.mxu3  ;;  %6889 = vst [vmem:[#allocation24_spill] sm:$0xff] %v6216_v40  ;;  %v6221_v34 = vpack.c.bf16 %v2872_v41, %v2871_v44  ;;  %v3730_v41 = vld [vmem:[#allocation2 + $0x38] sm:$0xff] }
 0x39b   : > { %v3043_v31 = vadd.f32 %v2981_v43, %v2792_v15  ;;  %6890 = vst [vmem:[#allocation25_spill] sm:$0xff] %v6221_v34 }
 0x39c   : > { %v6212_v13 = vpop.f32.mrf.mxu1 }
 0x39d   : > { %v6214_v45 = vadd.f32 %v3203_v30, %v3043_v31 }
 0x3a0   : > { %v3208_v23 = vpop.f32.mrf.mxu0  ;;  %v2793_v4 = vpop.f32.mrf.mxu2 }
 0x3a1   : > { %v2794_v51 = vadd.f32 %v2793_v4, %v6047_v14  ;;  %v2983_v2 = vpop.f32.mrf.mxu3 }
 0x3a3   : > { %4845 = vmatmul.msk.bf16.gmra.mxu0 %vm280_vm1, %v6216_v40  ;;  %v3044_v61 = vadd.f32 %v2983_v2, %v2794_v51 }
 0x3a4   : > { %v6223_v15 = vpop.f32.mrf.mxu1 }
 0x3a5   : > { %4811 = vmatmul.msk.bf16.gmra.mxu2 %vm280_vm1, %v6192_v62  ;;  %v6229_v30 = vadd.f32 %v3205_v26, %v3044_v61  ;;  %v3729_v61 = vld [vmem:[#allocation2 + $0x30] sm:$0xff] }
 0x3a6   : > { %4828 = vmatmul.msk.bf16.gmra.mxu3 %vm280_vm1, %v6221_v34  ;;  %v3761_v34 = vpack.c.bf16 %v3730_v41, %v3729_v61  ;;  %v3731_v41 = vld [vmem:[#allocation2 + $0x48] sm:$0xff] }
 0x3a7   : > { %4853 = vmatmul.msk.bf16.gmra.mxu1 %vm280_vm1, %v5840_v12 }
 0x3a8   : > { %v3210_v14 = vpop.f32.mrf.mxu0  ;;  %v2796_v19 = vpop.f32.mrf.mxu2 }
 0x3a9   : > { %v2797_v43 = vadd.f32 %v2796_v19, %v6058_v60  ;;  %v2986_v2 = vpop.f32.mrf.mxu3 }
 0x3ab   : > { %v3045_v51 = vadd.f32 %v2986_v2, %v2797_v43 }
 0x3ac   : > { %v6234_v31 = vpop.f32.mrf.mxu1 }
 0x3ad   : > { %v6236_v5 = vadd.f32 %v3208_v23, %v3045_v51 }
 0x3b0   : > { %v3213_v4 = vpop.f32.mrf.mxu0  ;;  %v2798_v44 = vpop.f32.mrf.mxu2 }
 0x3b1   : > { %v2799_v40 = vadd.f32 %v2798_v44, %v6070_v3  ;;  %v2988_v26 = vpop.f32.mrf.mxu3 }
 0x3b3   : > { %4898 = vmatmul.msk.bf16.vlgmr.msra.gmra.mxu0 %vm280_vm1, %v6109_v1  ;;  %v3046_v12 = vadd.f32 %v2988_v26, %v2799_v40 }
 0x3b4   : > { %v6241_v62 = vpop.f32.mrf.mxu1 }
 0x3b5   : > { %4864 = vmatmul.msk.bf16.vlgmr.msra.gmra.mxu2 %vm280_vm1, %v5857_v49  ;;  %v6246_v60 = vadd.f32 %v3210_v14, %v3046_v12  ;;  %v3732_v49 = vld [vmem:[#allocation2 + $0x50] sm:$0xff] }
 0x3b6   : > { %4881 = vmatmul.msk.bf16.vlgmr.msra.gmra.mxu3 %vm280_vm1, %v3761_v34  ;;  %v3762_v26 = vpack.c.bf16 %v3732_v49, %v3731_v41 }
 0x3b7   : > { %4854 = vmatmul.msk.bf16.gmra.mxu1 %vm280_vm1, %v5863_v9 }
 0x3b8   : > { %v3215_v3 = vpop.f32.mrf.mxu0  ;;  %v2801_v23 = vpop.f32.mrf.mxu2 }
 0x3b9   : > { %v2802_v19 = vadd.f32 %v2801_v23, %v6082_v16  ;;  %v2991_v43 = vpop.f32.mrf.mxu3 }
 0x3bb   : > { %v3047_v1 = vadd.f32 %v2991_v43, %v2802_v19 }
 0x3bc   : > { %v6251_v40 = vpop.f32.mrf.mxu1 }
 0x3bd   : > { %v6253_v2 = vadd.f32 %v3213_v4, %v3047_v1 }
 0x3c0   : > { %v3218_v51 = vpop.f32.mrf.mxu0  ;;  %v2803_v44 = vpop.f32.mrf.mxu2 }
 0x3c1   : > { %v2804_v34 = vadd.f32 %v2803_v44, %v6092_v57  ;;  %v2993_v14 = vpop.f32.mrf.mxu3 }
 0x3c3   : > { %4899 = vmatmul.msk.bf16.gmra.mxu0 %vm280_vm1, %v6133_v46  ;;  %v3048_v9 = vadd.f32 %v2993_v14, %v2804_v34 }
 0x3c4   : > { %v3395_v61 = vpop.f32.mrf.mxu1 }
 0x3c5   : > { %v6259_v16 = vadd.f32 %v3395_v61, %v6073_v36  ;;  %4865 = vmatmul.msk.bf16.gmra.mxu2 %vm280_vm1, %v5878_v33  ;;  %v6264_v4 = vadd.f32 %v3215_v3, %v3048_v9 }
 0x3c6   : > { %4882 = vmatmul.msk.bf16.gmra.mxu3 %vm280_vm1, %v3762_v26 }
 0x3c7   : > { %4855 = vmatmul.msk.bf16.gmra.mxu1 %vm280_vm1, %v5886_v58 }
 0x3c8   : > { %v3220_v57 = vpop.f32.mrf.mxu0  ;;  %v2806_v12 = vpop.f32.mrf.mxu2 }
 0x3c9   : > { %v2807_v46 = vadd.f32 %v2806_v12, %v6103_v55  ;;  %v2996_v23 = vpop.f32.mrf.mxu3 }
 0x3cb   : > { %v3049_v19 = vadd.f32 %v2996_v23, %v2807_v46 }
 0x3cc   : > { %v3397_v43 = vpop.f32.mrf.mxu1 }
 0x3cd   : > { %v6270_v36 = vadd.f32 %v3397_v43, %v6088_v59  ;;  %v6272_v1 = vadd.f32 %v3218_v51, %v3049_v19 }
 0x3d0   : > { %v3223_v33 = vpop.f32.mrf.mxu0  ;;  %v2808_v44 = vpop.f32.mrf.mxu2 }
 0x3d1   : > { %v2809_v3 = vadd.f32 %v2808_v44, %v6116_v35  ;;  %v2998_v49 = vpop.f32.mrf.mxu3 }
 0x3d3   : > { %4900 = vmatmul.msk.bf16.gmra.mxu0 %vm280_vm1, %v6157_v21  ;;  %v3050_v58 = vadd.f32 %v2998_v49, %v2809_v3 }
 0x3d4   : > { %v3400_v34 = vpop.f32.mrf.mxu1 }
 0x3d5   : > { %v6278_v55 = vadd.f32 %v3400_v34, %v6094_v25  ;;  %4866 = vmatmul.msk.bf16.gmra.mxu2 %vm280_vm1, %v5904_v63  ;;  %v6284_v59 = vadd.f32 %v3220_v57, %v3050_v58 }
 0x3d6   : > { %4883 = vmatmul.msk.bf16.gmra.mxu3 %vm280_vm1, %v5900_v17 }
 0x3d7   : > { %4856 = vmatmul.msk.bf16.gmra.mxu1 %vm280_vm1, %v5912_v6 }
 0x3d8   : > { %v3225_v35 = vpop.f32.mrf.mxu0  ;;  %v2811_v51 = vpop.f32.mrf.mxu2 }
 0x3d9   : > { %v2812_v21 = vadd.f32 %v2811_v51, %v6127_v32  ;;  %v3001_v14 = vpop.f32.mrf.mxu3 }
 0x3db   : > { %v3051_v41 = vadd.f32 %v3001_v14, %v2812_v21 }
 0x3dc   : > { %v3402_v9 = vpop.f32.mrf.mxu1 }
 0x3dd   : > { %v6290_v25 = vadd.f32 %v3402_v9, %v6111_v22  ;;  %v6292_v26 = vadd.f32 %v3223_v33, %v3051_v41 }
 0x3e0   : > { %v3228_v63 = vpop.f32.mrf.mxu0  ;;  %v2813_v61 = vpop.f32.mrf.mxu2 }
 0x3e1   : > { %v2814_v17 = vadd.f32 %v2813_v61, %v6140_v29  ;;  %v3003_v57 = vpop.f32.mrf.mxu3 }
 0x3e3   : > { %4901 = vmatmul.msk.bf16.gmra.mxu0 %vm280_vm1, %v6181_v39  ;;  %v3052_v6 = vadd.f32 %v3003_v57, %v2814_v17 }
 0x3e4   : > { %v3405_v12 = vpop.f32.mrf.mxu1 }
 0x3e5   : > { %v6298_v32 = vadd.f32 %v3405_v12, %v6118_v18  ;;  %4867 = vmatmul.msk.bf16.gmra.mxu2 %vm280_vm1, %v5930_v20  ;;  %v6304_v22 = vadd.f32 %v3225_v35, %v3052_v6 }
 0x3e6   : > { %4884 = vmatmul.msk.bf16.gmra.mxu3 %vm280_vm1, %v5926_v52 }
 0x3e7   : > { %4857 = vmatmul.msk.bf16.gmra.mxu1 %vm280_vm1, %v5939_v11 }
 0x3e8   : > { %v3230_v29 = vpop.f32.mrf.mxu0  ;;  %v2816_v46 = vpop.f32.mrf.mxu2 }
 0x3e9   : > { %v2817_v39 = vadd.f32 %v2816_v46, %v6151_v53  ;;  %v3006_v23 = vpop.f32.mrf.mxu3 }
 0x3eb   : > { %v3053_v19 = vadd.f32 %v3006_v23, %v2817_v39 }
 0x3ec   : > { %v3407_v43 = vpop.f32.mrf.mxu1 }
 0x3ed   : > { %v6310_v18 = vadd.f32 %v3407_v43, %v6135_v42  ;;  %v6312_v33 = vadd.f32 %v3228_v63, %v3053_v19 }
 0x3f0   : > { %v3233_v20 = vpop.f32.mrf.mxu0  ;;  %v2818_v44 = vpop.f32.mrf.mxu2 }
 0x3f1   : > { %v2819_v52 = vadd.f32 %v2818_v44, %v6164_v48  ;;  %v3008_v3 = vpop.f32.mrf.mxu3 }
 0x3f3   : > { %4902 = vmatmul.msk.bf16.gmra.mxu0 %vm280_vm1, %v6205_v38  ;;  %v3054_v11 = vadd.f32 %v3008_v3, %v2819_v52  ;;  %v6892_v3 = vld [vmem:[#allocation20_spill] sm:$0xff] }
 0x3f4   : > { %v3410_v49 = vpop.f32.mrf.mxu1 }
 0x3f5   : > { %v6318_v53 = vadd.f32 %v3410_v49, %v6142_v37  ;;  %4868 = vmatmul.msk.bf16.gmra.mxu2 %vm280_vm1, %v5957_v47  ;;  %v6324_v42 = vadd.f32 %v3230_v29, %v3054_v11  ;;  %v3962_v47 = vld [vmem:[#allocation2 + $0xb1] sm:$0xff] }
 0x3f6   : > { %4885 = vmatmul.msk.bf16.gmra.mxu3 %vm280_vm1, %v5953_v56  ;;  %v3961_v56 = vld [vmem:[#allocation2 + $0xa9] sm:$0xff] }
 0x3f7   : > { %4858 = vmatmul.msk.bf16.gmra.mxu1 %vm280_vm1, %v5966_v10  ;;  %v3988_v9 = vpack.c.bf16 %v3962_v47, %v3961_v56  ;;  %v6893_v49 = vld [vmem:[#allocation7_spill] sm:$0xff] }
 0x3f8   : > { %v3235_v48 = vpop.f32.mrf.mxu0  ;;  %v2821_v58 = vpop.f32.mrf.mxu2  ;;  %v6896_v56 = vld [vmem:[#allocation23_spill] sm:$0xff] }
 0x3f9   : > { %v2822_v38 = vadd.f32 %v2821_v58, %v6175_v54  ;;  %v3011_v34 = vpop.f32.mrf.mxu3 }
 0x3fb   : > { %v3055_v35 = vadd.f32 %v3011_v34, %v2822_v38  ;;  %v6895_v38 = vld [vmem:[#allocation9_spill] sm:$0xff] }
 0x3fc   : > { %v3412_v51 = vpop.f32.mrf.mxu1 }
 0x3fd   : > { %v6330_v37 = vadd.f32 %v3412_v51, %v6159_v50  ;;  %v6332_v21 = vadd.f32 %v3233_v20, %v3055_v35 }
 0x400   : > { %v3238_v14 = vpop.f32.mrf.mxu0  ;;  %v2823_v41 = vpop.f32.mrf.mxu2 }
 0x401   : > { %v2824_v63 = vadd.f32 %v2823_v41, %v6188_v28  ;;  %v3013_v10 = vpop.f32.mrf.mxu3 }
 0x403   : > { %4903 = vmatmul.msk.bf16.gmra.mxu0 %vm280_vm1, %v3988_v9  ;;  %v3056_v61 = vadd.f32 %v3013_v10, %v2824_v63  ;;  %v3966_v63 = vld [vmem:[#allocation2 + $0xe1] sm:$0xff] }
 0x404   : > { %v3415_v54 = vpop.f32.mrf.mxu1 }
 0x405   : > { %v6337_v17 = vadd.f32 %v3415_v54, %v6166_v24  ;;  %4869 = vmatmul.msk.bf16.gmra.mxu2 %vm280_vm1, %v5984_v27  ;;  %v6343_v50 = vadd.f32 %v3235_v48, %v3056_v61  ;;  %v6891_v24 = vld [vmem:[#allocation19_spill] sm:$0xff]  ;;  %v6894_v48 = vld [vmem:[#allocation8_spill] sm:$0xff] }
 0x406   : > { %4886 = vmatmul.msk.bf16.gmra.mxu3 %vm280_vm1, %v5980_v7  ;;  %v3964_v27 = vld [vmem:[#allocation2 + $0xc9] sm:$0xff]  ;;  %v3963_v7 = vld [vmem:[#allocation2 + $0xc1] sm:$0xff]  ;;  %v3965_v61 = vld [vmem:[#allocation2 + $0xd9] sm:$0xff] }
 0x407   : > { %4859 = vmatmul.msk.bf16.gmra.mxu1 %vm280_vm1, %v5993_v0  ;;  %v3989_v20 = vpack.c.bf16 %v3964_v27, %v3963_v7 }
 0x408   : > { %v3240_v28 = vpop.f32.mrf.mxu0  ;;  %v2826_v57 = vpop.f32.mrf.mxu2 }
 0x409   : > { %v2827_v6 = vadd.f32 %v2826_v57, %v6199_v8  ;;  %v3016_v12 = vpop.f32.mrf.mxu3 }
 0x40b   : > { %v3057_v29 = vadd.f32 %v3016_v12, %v2827_v6 }
 0x40c   : > { %v3417_v46 = vpop.f32.mrf.mxu1 }
 0x40d   : > { %v6349_v39 = vadd.f32 %v3417_v46, %v6891_v24  ;;  %v6351_v23 = vadd.f32 %v3238_v14, %v3057_v29  ;;  %v6897_v46 = vld [vmem:[#allocation11_spill] sm:$0xff]  ;;  %v6898_v24 = vld [vmem:[#allocation10_spill] sm:$0xff] }
 0x410   : > { %v3243_v19 = vpop.f32.mrf.mxu0  ;;  %v2828_v43 = vpop.f32.mrf.mxu2 }
 0x411   : > { %v2829_v44 = vadd.f32 %v2828_v43, %v6212_v13  ;;  %v3018_v0 = vpop.f32.mrf.mxu3 }
 0x413   : > { %4904 = vmatmul.msk.bf16.gmra.mxu0 %vm280_vm1, %v3989_v20  ;;  %v3058_v52 = vadd.f32 %v3018_v0, %v2829_v44 }
 0x414   : > { %v3420_v8 = vpop.f32.mrf.mxu1 }
 0x415   : > { %v6356_v11 = vadd.f32 %v3420_v8, %v6892_v3  ;;  %4870 = vmatmul.msk.bf16.gmra.mxu2 %vm280_vm1, %v6893_v49  ;;  %v6362_v58 = vadd.f32 %v3240_v28, %v3058_v52  ;;  %v3990_v28 = vpack.c.bf16 %v3966_v63, %v3965_v61  ;;  %v3968_v8 = vld [vmem:[#allocation2 + $0xf9] sm:$0xff]  ;;  %v3967_v49 = vld [vmem:[#allocation2 + $0xf1] sm:$0xff] }
 0x416   : > { %4887 = vmatmul.msk.bf16.gmra.mxu3 %vm280_vm1, %v6894_v48 }
 0x417   : > { %4860 = vmatmul.msk.bf16.gmra.mxu1 %vm280_vm1, %v6895_v38  ;;  %v3991_v38 = vpack.c.bf16 %v3968_v8, %v3967_v49 }
 0x418   : > { %v3245_v13 = vpop.f32.mrf.mxu0  ;;  %v2831_v34 = vpop.f32.mrf.mxu2 }
 0x419   : > { %v2832_v35 = vadd.f32 %v2831_v34, %v6223_v15  ;;  %v3021_v51 = vpop.f32.mrf.mxu3 }
 0x41b   : > { %v3059_v47 = vadd.f32 %v3021_v51, %v2832_v35  ;;  %v3316_v35 = vld [vmem:[#allocation2 + $0x189] sm:$0xff] }
 0x41c   : > { %v3422_v14 = vpop.f32.mrf.mxu1 }
 0x41d   : > { %v6368_v41 = vadd.f32 %v3422_v14, %v6896_v56  ;;  %v6370_v9 = vadd.f32 %v3243_v19, %v3059_v47  ;;  %v6899_v19 = vld [vmem:[#allocation12_spill] sm:$0xff]  ;;  %v3315_v47 = vld [vmem:[#allocation2 + $0x181] sm:$0xff] }
 0x41e   : > { %v6901_v56 = vld [vmem:[#allocation13_spill] sm:$0xff]  ;;  %v6400_v63 = vpack.c.bf16 %v3316_v35, %v3315_v47  ;;  %v3972_v47 = vld [vmem:[#allocation2 + $0x129] sm:$0xff] }
 0x420   : > { %v3248_v10 = vpop.f32.mrf.mxu0  ;;  %v2833_v54 = vpop.f32.mrf.mxu2 }
 0x421   : > { %v2834_v57 = vadd.f32 %v2833_v54, %v6234_v31  ;;  %v3023_v6 = vpop.f32.mrf.mxu3 }
 0x423   : > { %4905 = vmatmul.msk.bf16.gmra.mxu0 %vm280_vm1, %v3990_v28  ;;  %v3060_v12 = vadd.f32 %v3023_v6, %v2834_v57 }
 0x424   : > { %v3425_v15 = vpop.f32.mrf.mxu1 }
 0x425   : > { %v6375_v29 = vadd.f32 %v3425_v15, %v6214_v45  ;;  %4871 = vmatmul.msk.bf16.gmra.mxu2 %vm280_vm1, %v6897_v46  ;;  %v6381_v27 = vadd.f32 %v3245_v13, %v3060_v12  ;;  %v3970_v15 = vld [vmem:[#allocation2 + $0x111] sm:$0xff]  ;;  %v3969_v46 = vld [vmem:[#allocation2 + $0x109] sm:$0xff] }
 0x426   : > { %4888 = vmatmul.msk.bf16.gmra.mxu3 %vm280_vm1, %v6898_v24 }
 0x427   : > { %4861 = vmatmul.msk.bf16.gmra.mxu1 %vm280_vm1, %v6899_v19  ;;  %v3992_v19 = vpack.c.bf16 %v3970_v15, %v3969_v46  ;;  %v6905_v46 = vld [vmem:[#allocation4_spill] sm:$0xff] }
 0x428   : > { %v3250_v31 = vpop.f32.mrf.mxu0  ;;  %v2836_v7 = vpop.f32.mrf.mxu2 }
 0x429   : > { %v2837_v43 = vadd.f32 %v2836_v7, %v6241_v62  ;;  %v3026_v20 = vpop.f32.mrf.mxu3 }
 0x42b   : > { %v3061_v44 = vadd.f32 %v3026_v20, %v2837_v43  ;;  %v4173_v20 = vld [vmem:[#allocation2 + $0x32] sm:$0xff] }
 0x42c   : > { %v3427_v0 = vpop.f32.mrf.mxu1 }
 0x42d   : > { %v6387_v45 = vadd.f32 %v3427_v0, %v6229_v30  ;;  %v6389_v52 = vadd.f32 %v3248_v10, %v3061_v44  ;;  %v6900_v30 = vld [vmem:[#allocation15_spill] sm:$0xff]  ;;  %v4174_v44 = vld [vmem:[#allocation2 + $0x3a] sm:$0xff] }
 0x42e   : > { %v4205_v49 = vpack.c.bf16 %v4174_v44, %v4173_v20 }
 0x430   : > { %v4061_v3 = vpop.f32.mrf.mxu0  ;;  %v2838_v48 = vpop.f32.mrf.mxu2 }
 0x431   : > { %v2839_v13 = vadd.f32 %v2838_v48, %v6251_v40  ;;  %v3028_v34 = vpop.f32.mrf.mxu3 }
 0x433   : > { %4906 = vmatmul.msk.bf16.gmra.mxu0 %vm280_vm1, %v3991_v38  ;;  %v3062_v62 = vadd.f32 %v3028_v34, %v2839_v13 }
 0x434   : > { %v3430_v51 = vpop.f32.mrf.mxu1 }
 0x435   : > { %v6394_v14 = vadd.f32 %v3430_v51, %v6236_v5  ;;  %4872 = vmatmul.msk.bf16.gmra.mxu2 %vm280_vm1, %v6900_v30  ;;  %v6402_v10 = vadd.f32 %v3250_v31, %v3062_v62  ;;  %v3971_v30 = vld [vmem:[#allocation2 + $0x121] sm:$0xff] }
 0x436   : > { %4889 = vmatmul.msk.bf16.gmra.mxu3 %vm280_vm1, %v6901_v56 }
 0x437   : > { %4862 = vmatmul.msk.bf16.gmra.mxu1 %vm280_vm1, %v6400_v63 }
 0x438   : > { %v4063_v40 = vpop.f32.mrf.mxu0  ;;  %v3617_v61 = vpop.f32.mrf.mxu2 }
 0x439   : > { %v3697_v54 = vadd.f32 %v3617_v61, %v6259_v16  ;;  %v3839_v28 = vpop.f32.mrf.mxu3  ;;  %v3993_v61 = vpack.c.bf16 %v3972_v47, %v3971_v30  ;;  %v6907_v30 = vld [vmem:[#allocation5_spill] sm:$0xff] }
 0x43b   : > { %v3919_v5 = vadd.f32 %v3839_v28, %v3697_v54  ;;  %v4175_v28 = vld [vmem:[#allocation2 + $0x4a] sm:$0xff] }
 0x43c   : > { %v3432_v57 = vpop.f32.mrf.mxu1 }
 0x43d   : > { %v6408_v6 = vadd.f32 %v3432_v57, %v6246_v60  ;;  %v6410_v12 = vadd.f32 %v4061_v3, %v3919_v5  ;;  %v6902_v60 = vld [vmem:[#allocation14_spill] sm:$0xff]  ;;  %v6903_v3 = vld [vmem:[#allocation3_spill] sm:$0xff] }
 0x43e   : > { %v4176_v5 = vld [vmem:[#allocation2 + $0x52] sm:$0xff] }
 0x440   : > { %v3619_v24 = vpop.f32.mrf.mxu2  ;;  %v4066_v43 = vpop.f32.mrf.mxu0 }
 0x441   : > { %v3698_v31 = vadd.f32 %v3619_v24, %v6270_v36  ;;  %v3841_v7 = vpop.f32.mrf.mxu3  ;;  %v4206_v24 = vpack.c.bf16 %v4176_v5, %v4175_v28 }
 0x443   : > { %4907 = vmatmul.msk.bf16.gmra.mxu0 %vm280_vm1, %v3992_v19  ;;  %v3920_v16 = vadd.f32 %v3841_v7, %v3698_v31 }
 0x444   : > { %v3435_v0 = vpop.f32.mrf.mxu1 }
 0x445   : > { %v6415_v8 = vadd.f32 %v3435_v0, %v6253_v2  ;;  %4873 = vmatmul.msk.bf16.gmra.mxu2 %vm280_vm1, %v6902_v60  ;;  %v6421_v48 = vadd.f32 %v4063_v40, %v3920_v16  ;;  %v3974_v0 = vld [vmem:[#allocation2 + $0x141] sm:$0xff] }
 0x446   : > { %4890 = vmatmul.msk.bf16.gmra.mxu3 %vm280_vm1, %v6903_v3  ;;  %v3973_v3 = vld [vmem:[#allocation2 + $0x139] sm:$0xff] }
 0x447   : > { %4915 = vmatmul.msk.bf16.vlgmr.msra.gmra.mxu1 %vm280_vm1, %v4205_v49 }
 0x448   : > { %v3622_v36 = vpop.f32.mrf.mxu2  ;;  %v4068_v35 = vpop.f32.mrf.mxu0 }
 0x449   : > { %v3699_v38 = vadd.f32 %v3622_v36, %v6278_v55  ;;  %v3844_v13 = vpop.f32.mrf.mxu3  ;;  %v3994_v36 = vpack.c.bf16 %v3974_v0, %v3973_v3  ;;  %v6909_v3 = vld [vmem:[#allocation17_spill] sm:$0xff] }
 0x44b   : > { %v3921_v34 = vadd.f32 %v3844_v13, %v3699_v38 }
 0x44c   : > { %v3437_v62 = vpop.f32.mrf.mxu1 }
 0x44d   : > { %v6426_v2 = vadd.f32 %v3437_v62, %v6264_v4  ;;  %v6428_v51 = vadd.f32 %v4066_v43, %v3921_v34  ;;  %v6904_v4 = vld [vmem:[#allocation6_spill] sm:$0xff] }
 0x44e   : > { %v4177_v34 = vld [vmem:[#allocation2 + $0x62] sm:$0xff] }
 0x450   : > { %v3624_v56 = vpop.f32.mrf.mxu2 }
 0x451   : > { %v3700_v40 = vadd.f32 %v3624_v56, %v6290_v25  ;;  %v3846_v54 = vpop.f32.mrf.mxu3  ;;  %v4071_v25 = vpop.f32.mrf.mxu0 }
 0x453   : > { %4908 = vmatmul.msk.bf16.gmra.mxu0 %vm280_vm1, %v3993_v61  ;;  %v3922_v55 = vadd.f32 %v3846_v54, %v3700_v40 }
 0x454   : > { %v3440_v57 = vpop.f32.mrf.mxu1 }
 0x455   : > { %v6433_v15 = vadd.f32 %v3440_v57, %v6272_v1  ;;  %4874 = vmatmul.msk.bf16.gmra.mxu2 %vm280_vm1, %v6904_v4  ;;  %v6439_v19 = vadd.f32 %v4068_v35, %v3922_v55  ;;  %v4178_v35 = vld [vmem:[#allocation2 + $0x6a] sm:$0xff]  ;;  %v3976_v4 = vld [vmem:[#allocation2 + $0x159] sm:$0xff] }
 0x456   : > { %4891 = vmatmul.msk.bf16.gmra.mxu3 %vm280_vm1, %v6905_v46  ;;  %v4207_v56 = vpack.c.bf16 %v4178_v35, %v4177_v34  ;;  %v3975_v46 = vld [vmem:[#allocation2 + $0x151] sm:$0xff]  ;;  %v3977_v34 = vld [vmem:[#allocation2 + $0x169] sm:$0xff] }
 0x457   : > { %4916 = vmatmul.msk.bf16.gmra.mxu1 %vm280_vm1, %v4206_v24 }
 0x458   : > { %v3627_v31 = vpop.f32.mrf.mxu2 }
 0x459   : > { %v3701_v7 = vadd.f32 %v3627_v31, %v6298_v32  ;;  %v3849_v43 = vpop.f32.mrf.mxu3  ;;  %v4073_v60 = vpop.f32.mrf.mxu0 }
 0x45b   : > { %v3923_v20 = vadd.f32 %v3849_v43, %v3701_v7  ;;  %v4179_v43 = vld [vmem:[#allocation2 + $0x7a] sm:$0xff] }
 0x45c   : > { %v3442_v44 = vpop.f32.mrf.mxu1 }
 0x45d   : > { %v6444_v1 = vadd.f32 %v3442_v44, %v6284_v59  ;;  %v6446_v16 = vadd.f32 %v4071_v25, %v3923_v20  ;;  %v6906_v59 = vld [vmem:[#allocation16_spill] sm:$0xff]  ;;  %v3995_v25 = vpack.c.bf16 %v3976_v4, %v3975_v46  ;;  %v4180_v20 = vld [vmem:[#allocation2 + $0x82] sm:$0xff] }
 0x45e   : > { %v6913_v4 = vld [vmem:[#allocation24_spill] sm:$0xff] }
 0x460   : > { %v3629_v49 = vpop.f32.mrf.mxu2 }
 0x461   : > { %v3702_v38 = vadd.f32 %v3629_v49, %v6310_v18  ;;  %v3851_v13 = vpop.f32.mrf.mxu3  ;;  %v4076_v28 = vpop.f32.mrf.mxu0  ;;  %v4208_v49 = vpack.c.bf16 %v4180_v20, %v4179_v43  ;;  %v3538_v20 = vld [vmem:[#allocation2 + $0x18a] sm:$0xff] }
 0x463   : > { %4909 = vmatmul.msk.bf16.gmra.mxu0 %vm280_vm1, %v3994_v36  ;;  %v3924_v32 = vadd.f32 %v3851_v13, %v3702_v38  ;;  %v3978_v13 = vld [vmem:[#allocation2 + $0x171] sm:$0xff] }
 0x464   : > { %v3445_v62 = vpop.f32.mrf.mxu1  ;;  %v3996_v35 = vpack.c.bf16 %v3978_v13, %v3977_v34  ;;  %v4187_v34 = vld [vmem:[#allocation2 + $0xda] sm:$0xff] }
 0x465   : > { %v6451_v47 = vadd.f32 %v3445_v62, %v6292_v26  ;;  %4875 = vmatmul.msk.bf16.gmra.mxu2 %vm280_vm1, %v6906_v59  ;;  %v6457_v61 = vadd.f32 %v4073_v60, %v3924_v32  ;;  %v4182_v32 = vld [vmem:[#allocation2 + $0x9a] sm:$0xff] }
 0x466   : > { %4892 = vmatmul.msk.bf16.gmra.mxu3 %vm280_vm1, %v6907_v30  ;;  %v6910_v30 = vld [vmem:[#allocation22_spill] sm:$0xff] }
 0x467   : > { %4917 = vmatmul.msk.bf16.gmra.mxu1 %vm280_vm1, %v4207_v56  ;;  %v6911_v56 = vld [vmem:[#allocation21_spill] sm:$0xff] }
 0x468   : > { %v3632_v18 = vpop.f32.mrf.mxu2 }
 0x469   : > { %v3703_v40 = vadd.f32 %v3632_v18, %v6318_v53  ;;  %v3854_v54 = vpop.f32.mrf.mxu3  ;;  %v4078_v44 = vpop.f32.mrf.mxu0 }
 0x46b   : > { %v3925_v5 = vadd.f32 %v3854_v54, %v3703_v40  ;;  %v4183_v54 = vld [vmem:[#allocation2 + $0xaa] sm:$0xff] }
 0x46c   : > { %v3447_v55 = vpop.f32.mrf.mxu1 }
 0x46d   : > { %v6462_v26 = vadd.f32 %v3447_v55, %v6304_v22  ;;  %v6464_v57 = vadd.f32 %v4076_v28, %v3925_v5  ;;  %v6908_v22 = vld [vmem:[#allocation18_spill] sm:$0xff]  ;;  %v4184_v28 = vld [vmem:[#allocation2 + $0xb2] sm:$0xff]  ;;  %v6912_v55 = vld [vmem:[#allocation25_spill] sm:$0xff] }
 0x46e   : > { %v4210_v46 = vpack.c.bf16 %v4184_v28, %v4183_v54  ;;  %v6535_v54 = vld [vmem:[%s6810_s6] ss:$0 sm:$0xff] }
 0x470   : > { %v3634_v24 = vpop.f32.mrf.mxu2 }
 0x471   : > { %v3704_v31 = vadd.f32 %v3634_v24, %v6330_v37  ;;  %v3856_v7 = vpop.f32.mrf.mxu3  ;;  %v3981_v24 = vld [vmem:[#allocation2 + $0x199] sm:$0xff] }
 0x473   : > { %4910 = vmatmul.msk.bf16.gmra.mxu0 %vm280_vm1, %v3995_v25  ;;  %v3926_v53 = vadd.f32 %v3856_v7, %v3704_v31  ;;  %v3982_v25 = vld [vmem:[#allocation2 + $0x1a1] sm:$0xff] }
 0x474   : > { %v3450_v0 = vpop.f32.mrf.mxu1  ;;  %v3760_v7 = vld [vmem:[#allocation2 + $0x1a0] sm:$0xff]  ;;  %v3998_v43 = vpack.c.bf16 %v3982_v25, %v3981_v24 }
 0x475   : > { %v6469_v60 = vadd.f32 %v3450_v0, %v6312_v33  ;;  %4876 = vmatmul.msk.bf16.gmra.mxu2 %vm280_vm1, %v6908_v22  ;;  %v6475_v36 = vadd.f32 %v4078_v44, %v3926_v53  ;;  %v4181_v33 = vld [vmem:[#allocation2 + $0x92] sm:$0xff]  ;;  %v4185_v44 = vld [vmem:[#allocation2 + $0xc2] sm:$0xff]  ;;  %v4186_v0 = vld [vmem:[#allocation2 + $0xca] sm:$0xff] }
 0x476   : > { %4893 = vmatmul.msk.bf16.gmra.mxu3 %vm280_vm1, %v6909_v3  ;;  %v4209_v18 = vpack.c.bf16 %v4182_v32, %v4181_v33 }
 0x477   : > { %4918 = vmatmul.msk.bf16.gmra.mxu1 %vm280_vm1, %v4208_v49 }
 0x479   : > { %v6554_v25 = vpop.f32.mrf.mxu3 }
 0x47c   : > { %v3452_v37 = vpop.f32.mrf.mxu1 }
 0x47d   : > { %v6479_v38 = vadd.f32 %v3452_v37, %v6324_v42 }
 0x483   : > { %4911 = vmatmul.msk.bf16.gmra.mxu0 %vm280_vm1, %v3996_v35  ;;  %v4188_v35 = vld [vmem:[#allocation2 + $0xe2] sm:$0xff] }
 0x484   : > { %v3455_v62 = vpop.f32.mrf.mxu1 }
 0x485   : > { %v6483_v59 = vadd.f32 %v3455_v62, %v6332_v21  ;;  %4877 = vmatmul.msk.bf16.gmra.mxu2 %vm280_vm1, %v6910_v30 }
 0x486   : > { %4894 = vmatmul.msk.bf16.gmra.mxu3 %vm280_vm1, %v6911_v56  ;;  %v4189_v56 = vld [vmem:[#allocation2 + $0xf2] sm:$0xff] }
 0x487   : > { %4919 = vmatmul.msk.bf16.gmra.mxu1 %vm280_vm1, %v4209_v18  ;;  %v4190_v18 = vld [vmem:[#allocation2 + $0xfa] sm:$0xff] }
 0x488   : > { %v4213_v28 = vpack.c.bf16 %v4190_v18, %v4189_v56 }
 0x48c   : > { %v3457_v42 = vpop.f32.mrf.mxu1 }
 0x48d   : > { %v6491_v40 = vadd.f32 %v3457_v42, %v6343_v50 }
 0x493   : > { %4912 = vmatmul.msk.bf16.gmra.mxu0 %vm280_vm1, %v6400_v63  ;;  %v3759_v63 = vld [vmem:[#allocation2 + $0x198] sm:$0xff] }
 0x494   : > { %v3460_v21 = vpop.f32.mrf.mxu1  ;;  %v3776_v53 = vpack.c.bf16 %v3760_v7, %v3759_v63  ;;  %v4468_v63 = vld [vmem:[%s5035_s10 + $0x8] sm:$0xff] }
 0x495   : > { %v6496_v5 = vadd.f32 %v3460_v21, %v6351_v23  ;;  %4878 = vmatmul.msk.bf16.gmra.mxu2 %vm280_vm1, %v6912_v55  ;;  %v3537_v23 = vld [vmem:[#allocation2 + $0x182] sm:$0xff] }
 0x496   : > { %4895 = vmatmul.msk.bf16.gmra.mxu3 %vm280_vm1, %v6913_v4  ;;  %v6506_v22 = vpack.c.bf16 %v3538_v20, %v3537_v23  ;;  %v4467_v21 = vld [vmem:[%s5035_s10] sm:$0xff]  ;;  %v6541_v4 = vpop.f32.mrf.mxu2  ;;  %v4192_v23 = vld [vmem:[#allocation2 + $0x112] sm:$0xff]  ;;  %v6558_v20 = vpop.f32.mrf.mxu0 }
 0x497   : > { %4920 = vmatmul.msk.bf16.gmra.mxu1 %vm280_vm1, %v4210_v46 }
 0x49c   : > { %v3462_v50 = vpop.f32.mrf.mxu1 }
 0x49d   : > { %v6504_v31 = vadd.f32 %v3462_v50, %v6362_v58  ;;  %v4211_v58 = vpack.c.bf16 %v4186_v0, %v4185_v44 }
 0x49e   : > { %v6560_v44 = vpop.f32.mrf.mxu2 }
 0x4a3   : > { %4913 = vmatmul.msk.bf16.gmra.mxu0 %vm280_vm1, %v3998_v43  ;;  %v4191_v43 = vld [vmem:[#allocation2 + $0x10a] sm:$0xff] }
 0x4a4   : > { %v3465_v3 = vpop.f32.mrf.mxu1 }
 0x4a5   : > { %v6510_v49 = vadd.f32 %v3465_v3, %v6370_v9  ;;  %4879 = vmatmul.msk.bf16.gmra.mxu2 %vm280_vm1, %v6506_v22  ;;  %v4212_v9 = vpack.c.bf16 %v4188_v35, %v4187_v34  ;;  %v4214_v3 = vpack.c.bf16 %v4192_v23, %v4191_v43  ;;  %v6569_v35 = vpop.f32.mrf.mxu3 }
 0x4a6   : > { %4896 = vmatmul.msk.bf16.gmra.mxu3 %vm280_vm1, %v3776_v53 }
 0x4a7   : > { %4921 = vmatmul.msk.bf16.gmra.mxu1 %vm280_vm1, %v4211_v58 }
 0x4ac   : > { %v3467_v37 = vpop.f32.mrf.mxu1 }
 0x4ad   : > { %v6517_v13 = vadd.f32 %v3467_v37, %v6381_v27  ;;  %v6529_v27 = vld [vmem:[%s6809_s5] ss:$0 sm:$0xff]  ;;  %v4469_v37 = vld [vmem:[%s5035_s10 + $0x10] sm:$0xff] }
 0x4b4   : > { %v3470_v33 = vpop.f32.mrf.mxu1 }
 0x4b5   : > { %v6520_v32 = vadd.f32 %v3470_v33, %v6389_v52 }
 0x4b7   : > { %4922 = vmatmul.msk.bf16.gmra.mxu1 %vm280_vm1, %v4212_v9 }
 0x4bc   : > { %v3472_v62 = vpop.f32.mrf.mxu1 }
 0x4bd   : > { %v6524_v30 = vadd.f32 %v3472_v62, %v6402_v10  ;;  %v6571_v62 = vpop.f32.mrf.mxu0 }
 0x4c4   : > { %v4283_v42 = vpop.f32.mrf.mxu1 }
 0x4c5   : > { %v4363_v52 = vadd.f32 %v4283_v42, %v6410_v12  ;;  %v4470_v42 = vld [vmem:[%s5035_s10 + $0x18] sm:$0xff] }
 0x4c7   : > { %v4399_v10 = vmul.f32 %v6529_v27, %v4363_v52  ;;  %4923 = vmatmul.msk.bf16.gmra.mxu1 %vm280_vm1, %v4213_v28  ;;  %v4193_v28 = vld [vmem:[#allocation2 + $0x122] sm:$0xff] }
 0x4c9   : > { %v4435_v55 = vadd.f32 %v6535_v54, %v4399_v10  ;;  %v4194_v10 = vld [vmem:[#allocation2 + $0x12a] sm:$0xff] }
 0x4cb   : > { %v4499_v12 = vadd.f32 %v4467_v21, %v4435_v55  ;;  %v6581_v55 = vpop.f32.mrf.mxu3 }
 0x4cc   : > { %v4285_v46 = vpop.f32.mrf.mxu1 }
 0x4cd   : > { %4531 = vst.msk [vmem:[%s6548_s19] sm:$0xff] %vm280_vm1, %v4499_v12  ;;  %v4364_v50 = vadd.f32 %v4285_v46, %v6421_v48  ;;  %v4215_v46 = vpack.c.bf16 %v4194_v10, %v4193_v28  ;;  %v4473_v10 = vld [vmem:[%s5035_s10 + $0x30] sm:$0xff] }
 0x4cf   : > { %v4400_v24 = vmul.f32 %v6529_v27, %v4364_v50  ;;  %v6586_v50 = vpop.f32.mrf.mxu0 }
 0x4d1   : > { %v4436_v7 = vadd.f32 %v6535_v54, %v4400_v24 }
 0x4d3   : > { %v4500_v53 = vadd.f32 %v4468_v63, %v4436_v7  ;;  %v4471_v7 = vld [vmem:[%s5035_s10 + $0x20] sm:$0xff] }
 0x4d4   : > { %v4288_v0 = vpop.f32.mrf.mxu1 }
 0x4d5   : > { %4532 = vst.msk [vmem:[%s6548_s19 + $0x8] sm:$0xff] %vm280_vm1, %v4500_v53  ;;  %v4365_v48 = vadd.f32 %v4288_v0, %v6428_v51  ;;  %v6576_v51 = vpop.f32.mrf.mxu2 }
 0x4d7   : > { %v4401_v58 = vmul.f32 %v6529_v27, %v4365_v48  ;;  %4924 = vmatmul.msk.bf16.gmra.mxu1 %vm280_vm1, %v4214_v3  ;;  %v4472_v3 = vld [vmem:[%s5035_s10 + $0x28] sm:$0xff] }
 0x4d9   : > { %v4437_v34 = vadd.f32 %v6535_v54, %v4401_v58  ;;  %v6601_v58 = vpop.f32.mrf.mxu0 }
 0x4db   : > { %v4501_v33 = vadd.f32 %v4469_v37, %v4437_v34 }
 0x4dc   : > { %v4290_v9 = vpop.f32.mrf.mxu1 }
 0x4dd   : > { %4533 = vst.msk [vmem:[%s6548_s19 + $0x10] sm:$0xff] %vm280_vm1, %v4501_v33  ;;  %v4366_v56 = vadd.f32 %v4290_v9, %v6439_v19  ;;  %v6590_v63 = vpop.f32.mrf.mxu2  ;;  %v4195_v33 = vld [vmem:[#allocation2 + $0x13a] sm:$0xff]  ;;  %v4196_v9 = vld [vmem:[#allocation2 + $0x142] sm:$0xff] }
 0x4df   : > { %v4402_v18 = vmul.f32 %v6529_v27, %v4366_v56 }
 0x4e1   : > { %v4438_v52 = vadd.f32 %v6535_v54, %v4402_v18 }
 0x4e3   : > { %v4502_v21 = vadd.f32 %v4470_v42, %v4438_v52  ;;  %v4216_v42 = vpack.c.bf16 %v4196_v9, %v4195_v33 }
 0x4e4   : > { %v4293_v12 = vpop.f32.mrf.mxu1 }
 0x4e5   : > { %4534 = vst.msk [vmem:[%s6548_s19 + $0x18] sm:$0xff] %vm280_vm1, %v4502_v21  ;;  %v4367_v19 = vadd.f32 %v4293_v12, %v6446_v16  ;;  %v6597_v16 = vpop.f32.mrf.mxu3  ;;  %v6604_v34 = vpop.f32.mrf.mxu2  ;;  %v3705_v12 = vadd.f32 %v6541_v4, %v6337_v17  ;;  %v4197_v4 = vld [vmem:[#allocation2 + $0x152] sm:$0xff] }
 0x4e7   : > { %v4403_v24 = vmul.f32 %v6529_v27, %v4367_v19  ;;  %4925 = vmatmul.msk.bf16.gmra.mxu1 %vm280_vm1, %v4215_v46  ;;  %v6617_v19 = vpop.f32.mrf.mxu0 }
 0x4e9   : > { %v4439_v43 = vadd.f32 %v6535_v54, %v4403_v24 }
 0x4eb   : > { %v4503_v23 = vadd.f32 %v4471_v7, %v4439_v43  ;;  %v3927_v43 = vadd.f32 %v6554_v25, %v3705_v12 }
 0x4ec   : > { %v4295_v53 = vpop.f32.mrf.mxu1 }
 0x4ed   : > { %4535 = vst.msk [vmem:[%s6548_s19 + $0x20] sm:$0xff] %vm280_vm1, %v4503_v23  ;;  %v4368_v0 = vadd.f32 %v4295_v53, %v6457_v61  ;;  %v6611_v28 = vpop.f32.mrf.mxu3  ;;  %v6619_v24 = vpop.f32.mrf.mxu2  ;;  %v4474_v53 = vld [vmem:[%s5035_s10 + $0x38] sm:$0xff]  ;;  %v4149_v33 = vadd.f32 %v6558_v20, %v3927_v43  ;;  %v3707_v20 = vadd.f32 %v6576_v51, %v6356_v11  ;;  %v4199_v51 = vld [vmem:[#allocation2 + $0x16a] sm:$0xff] }
 0x4ef   : > { %v4404_v48 = vmul.f32 %v6529_v27, %v4368_v0 }
 0x4f1   : > { %v4440_v37 = vadd.f32 %v6535_v54, %v4404_v48  ;;  %v4198_v48 = vld [vmem:[#allocation2 + $0x15a] sm:$0xff] }
 0x4f3   : > { %v4504_v56 = vadd.f32 %v4472_v3, %v4440_v37  ;;  %v3706_v3 = vadd.f32 %v6560_v44, %v6349_v39  ;;  %v4475_v39 = vld [vmem:[%s5035_s10 + $0x40] sm:$0xff] }
 0x4f4   : > { %v4298_v18 = vpop.f32.mrf.mxu1 }
 0x4f5   : > { %4536 = vst.msk [vmem:[%s6548_s19 + $0x28] sm:$0xff] %vm280_vm1, %v4504_v56  ;;  %v4369_v61 = vadd.f32 %v4298_v18, %v6464_v57  ;;  %v6628_v17 = vpop.f32.mrf.mxu3  ;;  %v4217_v56 = vpack.c.bf16 %v4198_v48, %v4197_v4  ;;  %v3652_v18 = vpop.f32.mrf.mxu2 }
 0x4f7   : > { %v4405_v52 = vmul.f32 %v6529_v27, %v4369_v61  ;;  %4926 = vmatmul.msk.bf16.gmra.mxu1 %vm280_vm1, %v4216_v42  ;;  %v3928_v61 = vadd.f32 %v6569_v35, %v3706_v3 }
 0x4f9   : > { %v4441_v21 = vadd.f32 %v6535_v54, %v4405_v52 }
 0x4fb   : > { %v4505_v46 = vadd.f32 %v4473_v10, %v4441_v21  ;;  %v4150_v10 = vadd.f32 %v6571_v62, %v3928_v61  ;;  %v3708_v62 = vadd.f32 %v6590_v63, %v6368_v41 }
 0x4fc   : > { %v4300_v57 = vpop.f32.mrf.mxu1 }
 0x4fd   : > { %4537 = vst.msk [vmem:[%s6548_s19 + $0x30] sm:$0xff] %vm280_vm1, %v4505_v46  ;;  %v4370_v7 = vadd.f32 %v4300_v57, %v6475_v36  ;;  %v6633_v36 = vpop.f32.mrf.mxu0  ;;  %v3874_v21 = vpop.f32.mrf.mxu3  ;;  %v3929_v46 = vadd.f32 %v6581_v55, %v3707_v20 }
 0x4fe   : > { %v3654_v43 = vpop.f32.mrf.mxu2 }
 0x4ff   : > { %v4406_v23 = vmul.f32 %v6529_v27, %v4370_v7  ;;  %v4151_v4 = vadd.f32 %v6586_v50, %v3929_v46  ;;  %v3709_v50 = vadd.f32 %v6604_v34, %v6375_v29  ;;  %v3710_v29 = vadd.f32 %v6619_v24, %v6387_v45 }
 0x501   : > { %v4442_v0 = vadd.f32 %v6535_v54, %v4406_v23  ;;  %v4476_v23 = vld [vmem:[%s5035_s10 + $0x48] sm:$0xff] }
 0x503   : > { %v4506_v37 = vadd.f32 %v4474_v53, %v4442_v0  ;;  %v4200_v53 = vld [vmem:[#allocation2 + $0x172] sm:$0xff] }
 0x504   : > { %v4303_v9 = vpop.f32.mrf.mxu1  ;;  %v4218_v3 = vpack.c.bf16 %v4200_v53, %v4199_v51  ;;  %v4479_v51 = vld [vmem:[%s5035_s10 + $0x60] sm:$0xff] }
 0x505   : > { %4538 = vst.msk [vmem:[%s6548_s19 + $0x38] sm:$0xff] %vm280_vm1, %v4506_v37  ;;  %v4371_v25 = vadd.f32 %v4303_v9, %v4149_v33  ;;  %v6648_v57 = vpop.f32.mrf.mxu0  ;;  %v3876_v37 = vpop.f32.mrf.mxu3  ;;  %v3930_v33 = vadd.f32 %v6597_v16, %v3708_v62 }
 0x506   : > { %v3657_v63 = vpop.f32.mrf.mxu2 }
 0x507   : > { %v4407_v42 = vmul.f32 %v6529_v27, %v4371_v25  ;;  %4927 = vmatmul.msk.bf16.gmra.mxu1 %vm280_vm1, %v4217_v56  ;;  %v4477_v25 = vld [vmem:[%s5035_s10 + $0x50] sm:$0xff] }
 0x509   : > { %v4443_v44 = vadd.f32 %v6535_v54, %v4407_v42  ;;  %v4152_v42 = vadd.f32 %v6601_v58, %v3930_v33  ;;  %v4203_v33 = vld [vmem:[#allocation2 + $0x19a] sm:$0xff] }
 0x50b   : > { %v4507_v52 = vadd.f32 %v4475_v39, %v4443_v44  ;;  %v3931_v44 = vadd.f32 %v6611_v28, %v3709_v50 }
 0x50c   : > { %v4305_v12 = vpop.f32.mrf.mxu1 }
 0x50d   : > { %4539 = vst.msk [vmem:[%s6548_s19 + $0x40] sm:$0xff] %vm280_vm1, %v4507_v52  ;;  %v4372_v35 = vadd.f32 %v4305_v12, %v4150_v10  ;;  %v4098_v56 = vpop.f32.mrf.mxu0  ;;  %v3879_v52 = vpop.f32.mrf.mxu3  ;;  %v4478_v10 = vld [vmem:[%s5035_s10 + $0x58] sm:$0xff]  ;;  %v4153_v58 = vadd.f32 %v6617_v19, %v3931_v44  ;;  %v3711_v19 = vadd.f32 %v3652_v18, %v6394_v14  ;;  %v3712_v14 = vadd.f32 %v3654_v43, %v6408_v6 }
 0x50e   : > { %v3659_v46 = vpop.f32.mrf.mxu2 }
 0x50f   : > { %v4408_v7 = vmul.f32 %v6529_v27, %v4372_v35 }
 0x511   : > { %v4444_v11 = vadd.f32 %v6535_v54, %v4408_v7 }
 0x513   : > { %v4508_v0 = vadd.f32 %v4476_v23, %v4444_v11  ;;  %v3932_v23 = vadd.f32 %v6628_v17, %v3710_v29 }
 0x514   : > { %v4308_v48 = vpop.f32.mrf.mxu1 }
 0x515   : > { %4540 = vst.msk [vmem:[%s6548_s19 + $0x48] sm:$0xff] %vm280_vm1, %v4508_v0  ;;  %v4373_v55 = vadd.f32 %v4308_v48, %v4151_v4  ;;  %v4101_v34 = vpop.f32.mrf.mxu0  ;;  %v3881_v24 = vpop.f32.mrf.mxu3  ;;  %v4154_v62 = vadd.f32 %v6633_v36, %v3932_v23 }
 0x516   : > { %v3662_v48 = vpop.f32.mrf.mxu2 }
 0x517   : > { %v4409_v9 = vmul.f32 %v6529_v27, %v4373_v55  ;;  %4928 = vmatmul.msk.bf16.gmra.mxu1 %vm280_vm1, %v4218_v3  ;;  %v3933_v55 = vadd.f32 %v3874_v21, %v3711_v19 }
 0x519   : > { %v4445_v41 = vadd.f32 %v6535_v54, %v4409_v9  ;;  %v4204_v9 = vld [vmem:[#allocation2 + $0x1a2] sm:$0xff]  ;;  %v4155_v36 = vadd.f32 %v6648_v57, %v3933_v55  ;;  %v3713_v57 = vadd.f32 %v3657_v63, %v6415_v8 }
 0x51b   : > { %v4509_v61 = vadd.f32 %v4477_v25, %v4445_v41  ;;  %v4220_v41 = vpack.c.bf16 %v4204_v9, %v4203_v33  ;;  %v4484_v9 = vld [vmem:[%s5035_s10 + $0x88] sm:$0xff] }
 0x51c   : > { %v4310_v39 = vpop.f32.mrf.mxu1 }
 0x51d   : > { %4541 = vst.msk [vmem:[%s6548_s19 + $0x50] sm:$0xff] %vm280_vm1, %v4509_v61  ;;  %v4374_v16 = vadd.f32 %v4310_v39, %v4152_v42  ;;  %v4103_v4 = vpop.f32.mrf.mxu0  ;;  %v3884_v50 = vpop.f32.mrf.mxu3  ;;  %v3934_v42 = vadd.f32 %v3876_v37, %v3712_v14 }
 0x51e   : > { %v3664_v44 = vpop.f32.mrf.mxu2 }
 0x51f   : > { %v4410_v20 = vmul.f32 %v6529_v27, %v4374_v16 }
 0x521   : > { %v4446_v12 = vadd.f32 %v6535_v54, %v4410_v20  ;;  %v4481_v20 = vld [vmem:[%s5035_s10 + $0x70] sm:$0xff] }
 0x523   : > { %v4510_v35 = vadd.f32 %v4478_v10, %v4446_v12  ;;  %v4156_v10 = vadd.f32 %v4098_v56, %v3934_v42  ;;  %v4485_v42 = vld [vmem:[%s5035_s10 + $0x90] sm:$0xff] }
 0x524   : > { %v4313_v7 = vpop.f32.mrf.mxu1 }
 0x525   : > { %4542 = vst.msk [vmem:[%s6548_s19 + $0x58] sm:$0xff] %vm280_vm1, %v4510_v35  ;;  %v4375_v28 = vadd.f32 %v4313_v7, %v4153_v58  ;;  %v4106_v39 = vpop.f32.mrf.mxu0  ;;  %v3886_v37 = vpop.f32.mrf.mxu3  ;;  %v3935_v35 = vadd.f32 %v3879_v52, %v3713_v57  ;;  %v4482_v7 = vld [vmem:[%s5035_s10 + $0x78] sm:$0xff] }
 0x527   : > { %v4411_v11 = vmul.f32 %v6529_v27, %v4375_v28  ;;  %4929 = vmatmul.msk.bf16.gmra.mxu1 %vm280_vm1, %v6506_v22  ;;  %v4480_v22 = vld [vmem:[%s5035_s10 + $0x68] sm:$0xff]  ;;  %v4157_v63 = vadd.f32 %v4101_v34, %v3935_v35 }
 0x529   : > { %v4447_v45 = vadd.f32 %v6535_v54, %v4411_v11  ;;  %v3667_v11 = vpop.f32.mrf.mxu2 }
 0x52b   : > { %v4511_v53 = vadd.f32 %v4479_v51, %v4447_v45  ;;  %v3714_v51 = vadd.f32 %v3659_v46, %v6426_v2 }
 0x52c   : > { %v4315_v0 = vpop.f32.mrf.mxu1 }
 0x52d   : > { %4543 = vst.msk [vmem:[%s6548_s19 + $0x60] sm:$0xff] %vm280_vm1, %v4511_v53  ;;  %v4376_v17 = vadd.f32 %v4315_v0, %v4154_v62  ;;  %v4108_v28 = vpop.f32.mrf.mxu0  ;;  %v3936_v19 = vadd.f32 %v3881_v24, %v3714_v51  ;;  %v3889_v53 = vpop.f32.mrf.mxu3  ;;  %v4483_v62 = vld [vmem:[%s5035_s10 + $0x80] sm:$0xff] }
 0x52f   : > { %v4412_v3 = vmul.f32 %v6529_v27, %v4376_v17  ;;  %v3715_v17 = vadd.f32 %v3662_v48, %v6433_v15  ;;  %v4158_v2 = vadd.f32 %v4103_v4, %v3936_v19 }
 0x531   : > { %v4448_v25 = vadd.f32 %v6535_v54, %v4412_v3  ;;  %v3669_v46 = vpop.f32.mrf.mxu2  ;;  %v3937_v33 = vadd.f32 %v3884_v50, %v3715_v17 }
 0x533   : > { %v4512_v18 = vadd.f32 %v4480_v22, %v4448_v25  ;;  %v4159_v48 = vadd.f32 %v4106_v39, %v3937_v33 }
 0x534   : > { %v4318_v61 = vpop.f32.mrf.mxu1 }
 0x535   : > { %4544 = vst.msk [vmem:[%s6548_s19 + $0x68] sm:$0xff] %vm280_vm1, %v4512_v18  ;;  %v4377_v21 = vadd.f32 %v4318_v61, %v4155_v36  ;;  %v4111_v55 = vpop.f32.mrf.mxu0  ;;  %v3891_v14 = vpop.f32.mrf.mxu3  ;;  %v3716_v18 = vadd.f32 %v3664_v44, %v6444_v1 }
 0x537   : > { %v4413_v16 = vmul.f32 %v6529_v27, %v4377_v21  ;;  %4930 = vmatmul.msk.bf16.gmra.mxu1 %vm280_vm1, %v4220_v41  ;;  %v3938_v21 = vadd.f32 %v3886_v37, %v3716_v18  ;;  %v4486_v37 = vld [vmem:[%s5035_s10 + $0x98] sm:$0xff] }
 0x539   : > { %v4449_v6 = vadd.f32 %v6535_v54, %v4413_v16  ;;  %v3672_v61 = vpop.f32.mrf.mxu2  ;;  %v4160_v1 = vadd.f32 %v4108_v28, %v3938_v21 }
 0x53b   : > { %v4513_v43 = vadd.f32 %v4481_v20, %v4449_v6  ;;  %v3717_v20 = vadd.f32 %v3667_v11, %v6451_v47 }
 0x53c   : > { %v4320_v12 = vpop.f32.mrf.mxu1 }
 0x53d   : > { %4545 = vst.msk [vmem:[%s6548_s19 + $0x70] sm:$0xff] %vm280_vm1, %v4513_v43  ;;  %v4378_v29 = vadd.f32 %v4320_v12, %v4156_v10  ;;  %v4113_v4 = vpop.f32.mrf.mxu0  ;;  %v3894_v44 = vpop.f32.mrf.mxu3  ;;  %v3939_v43 = vadd.f32 %v3889_v53, %v3717_v20 }
 0x53f   : > { %v4414_v58 = vmul.f32 %v6529_v27, %v4378_v29 }
 0x541   : > { %v4450_v23 = vadd.f32 %v6535_v54, %v4414_v58  ;;  %v3674_v29 = vpop.f32.mrf.mxu2  ;;  %v3718_v58 = vadd.f32 %v3669_v46, %v6462_v26 }
 0x543   : > { %v4514_v8 = vadd.f32 %v4482_v7, %v4450_v23  ;;  %v4161_v7 = vadd.f32 %v4111_v55, %v3939_v43  ;;  %v3940_v51 = vadd.f32 %v3891_v14, %v3718_v58  ;;  %v4491_v58 = vld [vmem:[%s5035_s10 + $0xc0] sm:$0xff] }
 0x544   : > { %v4323_v56 = vpop.f32.mrf.mxu1 }
 0x545   : > { %4546 = vst.msk [vmem:[%s6548_s19 + $0x78] sm:$0xff] %vm280_vm1, %v4514_v8  ;;  %v4379_v45 = vadd.f32 %v4323_v56, %v4157_v63  ;;  %v4116_v10 = vpop.f32.mrf.mxu0  ;;  %v3896_v11 = vpop.f32.mrf.mxu3  ;;  %v4487_v63 = vld [vmem:[%s5035_s10 + $0xa0] sm:$0xff]  ;;  %v4162_v53 = vadd.f32 %v4113_v4, %v3940_v51 }
 0x547   : > { %v4415_v52 = vmul.f32 %v6529_v27, %v4379_v45 }
 0x549   : > { %v4451_v0 = vadd.f32 %v6535_v54, %v4415_v52  ;;  %v3677_v19 = vpop.f32.mrf.mxu2  ;;  %v3719_v52 = vadd.f32 %v3672_v61, %v6469_v60 }
 0x54a   : > { %v3721_v4 = vadd.f32 %v3677_v19, %v6483_v59 }
 0x54b   : > { %v4515_v3 = vadd.f32 %v4483_v62, %v4451_v0  ;;  %v3941_v17 = vadd.f32 %v3894_v44, %v3719_v52 }
 0x54c   : > { %v4325_v34 = vpop.f32.mrf.mxu1 }
 0x54d   : > { %4547 = vst.msk [vmem:[%s6548_s19 + $0x80] sm:$0xff] %vm280_vm1, %v4515_v3  ;;  %v4380_v22 = vadd.f32 %v4325_v34, %v4158_v2  ;;  %v4118_v56 = vpop.f32.mrf.mxu0  ;;  %v3899_v3 = vpop.f32.mrf.mxu3  ;;  %v4488_v2 = vld [vmem:[%s5035_s10 + $0xa8] sm:$0xff]  ;;  %v4163_v60 = vadd.f32 %v4116_v10, %v3941_v17 }
 0x54f   : > { %v4416_v24 = vmul.f32 %v6529_v27, %v4380_v22  ;;  %v3720_v22 = vadd.f32 %v3674_v29, %v6479_v38 }
 0x551   : > { %v4452_v25 = vadd.f32 %v6535_v54, %v4416_v24  ;;  %v3679_v24 = vpop.f32.mrf.mxu2  ;;  %v3942_v14 = vadd.f32 %v3896_v11, %v3720_v22 }
 0x552   : > { %v3722_v44 = vadd.f32 %v3679_v24, %v6491_v40 }
 0x553   : > { %v4516_v15 = vadd.f32 %v4484_v9, %v4452_v25  ;;  %v4164_v38 = vadd.f32 %v4118_v56, %v3942_v14  ;;  %v4492_v56 = vld [vmem:[%s5035_s10 + $0xc8] sm:$0xff] }
 0x554   : > { %v4328_v36 = vpop.f32.mrf.mxu1 }
 0x555   : > { %4548 = vst.msk [vmem:[%s6548_s19 + $0x88] sm:$0xff] %vm280_vm1, %v4516_v15  ;;  %v4381_v41 = vadd.f32 %v4328_v36, %v4159_v48  ;;  %v4121_v34 = vpop.f32.mrf.mxu0  ;;  %v4489_v15 = vld [vmem:[%s5035_s10 + $0xb0] sm:$0xff]  ;;  %v3901_v36 = vpop.f32.mrf.mxu3 }
 0x556   : > { %v3944_v29 = vadd.f32 %v3901_v36, %v3722_v44 }
 0x557   : > { %v4417_v50 = vmul.f32 %v6529_v27, %v4381_v41 }
 0x559   : > { %v4453_v16 = vadd.f32 %v6535_v54, %v4417_v50 }
 0x55b   : > { %v4517_v6 = vadd.f32 %v4485_v42, %v4453_v16  ;;  %v3682_v42 = vpop.f32.mrf.mxu2  ;;  %v3943_v16 = vadd.f32 %v3899_v3, %v3721_v4 }
 0x55c   : > { %v4330_v39 = vpop.f32.mrf.mxu1 }
 0x55d   : > { %4549 = vst.msk [vmem:[%s6548_s19 + $0x90] sm:$0xff] %vm280_vm1, %v4517_v6  ;;  %v4382_v57 = vadd.f32 %v4330_v39, %v4160_v1  ;;  %v4123_v21 = vpop.f32.mrf.mxu0  ;;  %v4490_v6 = vld [vmem:[%s5035_s10 + $0xb8] sm:$0xff]  ;;  %v4165_v59 = vadd.f32 %v4121_v34, %v3943_v16  ;;  %v4495_v16 = vld [vmem:[%s5035_s10 + $0xe0] sm:$0xff] }
 0x55f   : > { %v4418_v12 = vmul.f32 %v6529_v27, %v4382_v57  ;;  %v3904_v57 = vpop.f32.mrf.mxu3 }
 0x561   : > { %v4454_v35 = vadd.f32 %v6535_v54, %v4418_v12 }
 0x563   : > { %v4518_v47 = vadd.f32 %v4486_v37, %v4454_v35  ;;  %v3684_v35 = vpop.f32.mrf.mxu2 }
 0x564   : > { %v4333_v28 = vpop.f32.mrf.mxu1 }
 0x565   : > { %4550 = vst.msk [vmem:[%s6548_s19 + $0x98] sm:$0xff] %vm280_vm1, %v4518_v47  ;;  %v4383_v23 = vadd.f32 %v4333_v28, %v4161_v7  ;;  %v4126_v12 = vpop.f32.mrf.mxu0  ;;  %v3723_v7 = vadd.f32 %v3682_v42, %v6496_v5  ;;  %v4166_v28 = vadd.f32 %v4123_v21, %v3944_v29  ;;  %v4496_v29 = vld [vmem:[%s5035_s10 + $0xe8] sm:$0xff] }
 0x567   : > { %v4419_v8 = vmul.f32 %v6529_v27, %v4383_v23  ;;  %v3906_v51 = vpop.f32.mrf.mxu3 }
 0x569   : > { %v4455_v45 = vadd.f32 %v6535_v54, %v4419_v8  ;;  %v3945_v8 = vadd.f32 %v3904_v57, %v3723_v7 }
 0x56b   : > { %v4519_v26 = vadd.f32 %v4487_v63, %v4455_v45  ;;  %v3687_v52 = vpop.f32.mrf.mxu2 }
 0x56c   : > { %v4335_v62 = vpop.f32.mrf.mxu1  ;;  %v3725_v22 = vadd.f32 %v3687_v52, %v6510_v49  ;;  %v4498_v52 = vld [vmem:[%s5035_s10 + $0xf8] sm:$0xff] }
 0x56d   : > { %4551 = vst.msk [vmem:[%s6548_s19 + $0xa0] sm:$0xff] %vm280_vm1, %v4519_v26  ;;  %v4384_v0 = vadd.f32 %v4335_v62, %v4162_v53  ;;  %v4128_v45 = vpop.f32.mrf.mxu0  ;;  %v3724_v26 = vadd.f32 %v3684_v35, %v6504_v31  ;;  %v4167_v53 = vadd.f32 %v4126_v12, %v3945_v8 }
 0x56f   : > { %v4420_v55 = vmul.f32 %v6529_v27, %v4384_v0  ;;  %v3946_v17 = vadd.f32 %v3906_v51, %v3724_v26  ;;  %v3909_v3 = vpop.f32.mrf.mxu3  ;;  %v4497_v51 = vld [vmem:[%s5035_s10 + $0xf0] sm:$0xff] }
 0x571   : > { %v4456_v46 = vadd.f32 %v6535_v54, %v4420_v55 }
 0x573   : > { %v4520_v33 = vadd.f32 %v4488_v2, %v4456_v46  ;;  %v4493_v2 = vld [vmem:[%s5035_s10 + $0xd0] sm:$0xff] }
 0x574   : > { %v4338_v9 = vpop.f32.mrf.mxu1 }
 0x575   : > { %4552 = vst.msk [vmem:[%s6548_s19 + $0xa8] sm:$0xff] %vm280_vm1, %v4520_v33  ;;  %v4385_v25 = vadd.f32 %v4338_v9, %v4163_v60  ;;  %v4131_v34 = vpop.f32.mrf.mxu0  ;;  %v4168_v33 = vadd.f32 %v4128_v45, %v3946_v17  ;;  %v3689_v60 = vpop.f32.mrf.mxu2 }
 0x576   : > { %v3726_v36 = vadd.f32 %v3689_v60, %v6517_v13 }
 0x577   : > { %v4421_v18 = vmul.f32 %v6529_v27, %v4385_v25  ;;  %v3947_v25 = vadd.f32 %v3909_v3, %v3725_v22 }
 0x579   : > { %v4457_v48 = vadd.f32 %v6535_v54, %v4421_v18  ;;  %v4494_v18 = vld [vmem:[%s5035_s10 + $0xd8] sm:$0xff]  ;;  %v4169_v49 = vadd.f32 %v4131_v34, %v3947_v25 }
 0x57b   : > { %v4521_v41 = vadd.f32 %v4489_v15, %v4457_v48  ;;  %v3911_v48 = vpop.f32.mrf.mxu3 }
 0x57c   : > { %v4340_v61 = vpop.f32.mrf.mxu1 }
 0x57d   : > { %4553 = vst.msk [vmem:[%s6548_s19 + $0xb0] sm:$0xff] %vm280_vm1, %v4521_v41  ;;  %v4386_v50 = vadd.f32 %v4340_v61, %v4164_v38  ;;  %v4133_v61 = vpop.f32.mrf.mxu0  ;;  %v3692_v21 = vpop.f32.mrf.mxu2 }
 0x57f   : > { %v4422_v20 = vmul.f32 %v6529_v27, %v4386_v50  ;;  %v3948_v50 = vadd.f32 %v3911_v48, %v3726_v36 }
 0x581   : > { %v4458_v1 = vadd.f32 %v6535_v54, %v4422_v20  ;;  %v4170_v44 = vadd.f32 %v4133_v61, %v3948_v50 }
 0x583   : > { %v4522_v39 = vadd.f32 %v4490_v6, %v4458_v1  ;;  %v3914_v6 = vpop.f32.mrf.mxu3  ;;  %v3727_v1 = vadd.f32 %v3692_v21, %v6520_v32 }
 0x584   : > { %v4343_v43 = vpop.f32.mrf.mxu1 }
 0x585   : > { %4554 = vst.msk [vmem:[%s6548_s19 + $0xb8] sm:$0xff] %vm280_vm1, %v4522_v39  ;;  %v4387_v10 = vadd.f32 %v4343_v43, %v4165_v59  ;;  %v4136_v57 = vpop.f32.mrf.mxu0  ;;  %v3949_v43 = vadd.f32 %v3914_v6, %v3727_v1  ;;  %v3694_v12 = vpop.f32.mrf.mxu2 }
 0x586   : > { %v3728_v32 = vadd.f32 %v3694_v12, %v6524_v30 }
 0x587   : > { %v4423_v37 = vmul.f32 %v6529_v27, %v4387_v10  ;;  %v4171_v35 = vadd.f32 %v4136_v57, %v3949_v43 }
 0x589   : > { %v4459_v47 = vadd.f32 %v6535_v54, %v4423_v37 }
 0x58b   : > { %v4523_v40 = vadd.f32 %v4491_v58, %v4459_v47  ;;  %v3916_v47 = vpop.f32.mrf.mxu3 }
 0x58c   : > { %v4345_v23 = vpop.f32.mrf.mxu1 }
 0x58d   : > { %4555 = vst.msk [vmem:[%s6548_s19 + $0xc0] sm:$0xff] %vm280_vm1, %v4523_v40  ;;  %v4388_v11 = vadd.f32 %v4345_v23, %v4166_v28  ;;  %v3950_v28 = vadd.f32 %v3916_v47, %v3728_v32 }
 0x58f   : > { %v4424_v63 = vmul.f32 %v6529_v27, %v4388_v11  ;;  %v4138_v11 = vpop.f32.mrf.mxu0 }
 0x591   : > { %v4460_v19 = vadd.f32 %v6535_v54, %v4424_v63  ;;  %v4172_v63 = vadd.f32 %v4138_v11, %v3950_v28 }
 0x593   : > { %v4524_v5 = vadd.f32 %v4492_v56, %v4460_v19 }
 0x594   : > { %v4348_v62 = vpop.f32.mrf.mxu1 }
 0x595   : > { %4556 = vst.msk [vmem:[%s6548_s19 + $0xc8] sm:$0xff] %vm280_vm1, %v4524_v5  ;;  %v4389_v0 = vadd.f32 %v4348_v62, %v4167_v53 }
 0x597   : > { %v4425_v55 = vmul.f32 %v6529_v27, %v4389_v0 }
 0x599   : > { %v4461_v46 = vadd.f32 %v6535_v54, %v4425_v55 }
 0x59b   : > { %v4525_v31 = vadd.f32 %v4493_v2, %v4461_v46 }
 0x59c   : > { %v4350_v24 = vpop.f32.mrf.mxu1 }
 0x59d   : > { %4557 = vst.msk [vmem:[%s6548_s19 + $0xd0] sm:$0xff] %vm280_vm1, %v4525_v31  ;;  %v4390_v9 = vadd.f32 %v4350_v24, %v4168_v33 }
 0x59f   : > { %v4426_v14 = vmul.f32 %v6529_v27, %v4390_v9 }
 0x5a1   : > { %v4462_v15 = vadd.f32 %v6535_v54, %v4426_v14 }
 0x5a3   : > { %v4526_v4 = vadd.f32 %v4494_v18, %v4462_v15 }
 0x5a4   : > { %v4353_v41 = vpop.f32.mrf.mxu1 }
 0x5a5   : > { %4558 = vst.msk [vmem:[%s6548_s19 + $0xd8] sm:$0xff] %vm280_vm1, %v4526_v4  ;;  %v4391_v38 = vadd.f32 %v4353_v41, %v4169_v49 }
 0x5a7   : > { %v4427_v42 = vmul.f32 %v6529_v27, %v4391_v38 }
 0x5a9   : > { %v4463_v20 = vadd.f32 %v6535_v54, %v4427_v42 }
 0x5ab   : > { %v4527_v13 = vadd.f32 %v4495_v16, %v4463_v20 }
 0x5ac   : > { %v4355_v39 = vpop.f32.mrf.mxu1 }
 0x5ad   : > { %4559 = vst.msk [vmem:[%s6548_s19 + $0xe0] sm:$0xff] %vm280_vm1, %v4527_v13  ;;  %v4392_v59 = vadd.f32 %v4355_v39, %v4170_v44 }
 0x5af   : > { %v4428_v10 = vmul.f32 %v6529_v27, %v4392_v59 }
 0x5b1   : > { %v4464_v37 = vadd.f32 %v6535_v54, %v4428_v10 }
 0x5b3   : > { %v4528_v58 = vadd.f32 %v4496_v29, %v4464_v37 }
 0x5b4   : > { %v4358_v7 = vpop.f32.mrf.mxu1 }
 0x5b5   : > { %4560 = vst.msk [vmem:[%s6548_s19 + $0xe8] sm:$0xff] %vm280_vm1, %v4528_v58  ;;  %v4393_v40 = vadd.f32 %v4358_v7, %v4171_v35 }
 0x5b7   : > { %v4429_v23 = vmul.f32 %v6529_v27, %v4393_v40 }
 0x5b9   : > { %v4465_v8 = vadd.f32 %v6535_v54, %v4429_v23 }
 0x5bb   : > { %v4529_v56 = vadd.f32 %v4497_v51, %v4465_v8 }
 0x5bc   : > { %v4360_v45 = vpop.f32.mrf.mxu1 }
 0x5bd   : > { %4561 = vst.msk [vmem:[%s6548_s19 + $0xf0] sm:$0xff] %vm280_vm1, %v4529_v56  ;;  %v4394_v30 = vadd.f32 %v4360_v45, %v4172_v63 }
 0x5bf   : > { %v4430_v19 = vmul.f32 %v6529_v27, %v4394_v30 }
 0x5c1   : > { %v4466_v26 = vadd.f32 %v6535_v54, %v4430_v19 }
 0x5c3   : > { %v4530_v5 = vadd.f32 %v4498_v52, %v4466_v26 }
 0x5c5   : > { %4562 = vst.msk [vmem:[%s6548_s19 + $0xf8] sm:$0xff] %vm280_vm1, %v4530_v5 }
 0x5c6 PF: > { %s17_s24 = sadd.s32 1, %s4958_s24  }
 0x5c7   : > { %p14_p4 = scmp.ge.s32.totalorder %s17_s24, 4  }
 0x5c9   :  { %16 = sbr.rel (!%p14_p4) target bundleno = 1 (0x1), region = 97 }

</bundles_post_ra>
